<compile_context>
chip_gen: v7x
topology: tpu7x:2x2x1
jax: 0.10.0
libtpu: 0.0.40
codegen_flags: <defaults>
</compile_context>

<pallas_src>
import functools
import math

import jax
import jax.numpy as jnp
from jax.experimental import pallas as pl
from jax.experimental.pallas import tpu as pltpu

# ----------------------------------------------------------------------------
# Config (small synthetic sizes; PyTorch defaults are hidden=512, nhead=8,
# ffn=2048, 6 encoder + 6 decoder layers)
# ----------------------------------------------------------------------------
CFG = dict(
    hidden=64,        # d_model
    nhead=4,          # hidden % nhead == 0
    ffn=128,          # feed-forward dim
    num_enc=2,        # nn.Transformer default is 6
    num_dec=2,        # nn.Transformer default is 6
    num_classes=8,
    max_len=50,
    in_channels=3,
)

LN_EPS = 1e-5


def _pick_row_tile(m, cap=128):
    """Largest row tile <= cap that divides m and keeps the (8,128) rule legal."""
    if m <= cap:
        return m
    for tm in range(cap, 7, -8):
        if m % tm == 0:
            return tm
    return m


def _ln(x, gamma, beta, eps):
    mu = jnp.mean(x, axis=-1, keepdims=True)
    var = jnp.mean(jnp.square(x - mu), axis=-1, keepdims=True)
    return (x - mu) * jax.lax.rsqrt(var + eps) * gamma + beta


# ----------------------------------------------------------------------------
# Fused backbone kernel: mean-pool (folded into weights) + proj + max-over-d + PE
# ----------------------------------------------------------------------------
def _backbone_kernel(x_ref, w_ref, b_ref, pe_ref, o_ref):
    # x_ref: (1, d, t, c*h*w); w_ref: (c*h*w, D) already scaled by 1/(h*w)
    x = x_ref[0]                           # (d, t, CHW)
    w = w_ref[...]
    b = b_ref[...]
    d = x.shape[0]
    acc = None
    for j in range(d):                     # static unrolled loop; running max over d
        feat = jnp.dot(x[j], w, preferred_element_type=jnp.float32) + b   # (t, D)
        acc = feat if acc is None else jnp.maximum(acc, feat)
    o_ref[0] = acc + pe_ref[...]           # + positional encoding (dropout: eval)


def backbone_pool_proj_max_pe(images, w, b, pe):
    bsz, d, t, c, h, wdt = images.shape
    hw = h * wdt
    D = w.shape[1]
    x = images.reshape(bsz, d, t, c * hw)
    # mean over (h, w) folded into the projection weight (multiply by 1/hw once).
    w_exp = jnp.repeat(w, hw, axis=0) * (1.0 / hw)          # (c*hw, D)
    pe_t = pe[:t]                                           # (t, D)
    return pl.pallas_call(
        _backbone_kernel,
        grid=(bsz,),
        out_shape=jax.ShapeDtypeStruct((bsz, t, D), jnp.float32),
        in_specs=[
            pl.BlockSpec((1, d, t, c * hw), lambda i: (i, 0, 0, 0)),
            pl.BlockSpec((c * hw, D), lambda i: (0, 0)),
            pl.BlockSpec((1, D), lambda i: (0, 0)),
            pl.BlockSpec((t, D), lambda i: (0, 0)),
        ],
        out_specs=pl.BlockSpec((1, t, D), lambda i: (i, 0, 0)),
        compiler_params=pltpu.CompilerParams(dimension_semantics=("parallel",)),
    )(x, w_exp, b, pe_t)


# ----------------------------------------------------------------------------
# Fused multi-head attention + residual + LayerNorm (one launch per block)
# ----------------------------------------------------------------------------
def _mha_ln_kernel(q_ref, kv_ref, wq_ref, bq_ref, wk_ref, bk_ref, wv_ref, bv_ref,
                   wo_ref, bo_ref, g_ref, be_ref, o_ref, *, nhead, eps):
    x = q_ref[0]                           # (Sq, D) -- also the residual input
    y = kv_ref[0]                          # (Sk, D)
    dh = x.shape[-1] // nhead
    scale = 1.0 / math.sqrt(dh)
    out = None
    for h in range(nhead):                 # static unrolled; only leading-axis ref loads
        qh = (jnp.dot(x, wq_ref[h], preferred_element_type=jnp.float32)
              + bq_ref[h]) * scale                                     # (Sq, Dh)
        kh = jnp.dot(y, wk_ref[h], preferred_element_type=jnp.float32) + bk_ref[h]
        vh = jnp.dot(y, wv_ref[h], preferred_element_type=jnp.float32) + bv_ref[h]
        s = jax.lax.dot_general(qh, kh, (((1,), (1,)), ((), ())),
                                preferred_element_type=jnp.float32)    # (Sq, Sk)
        m = jnp.max(s, axis=-1, keepdims=True)
        p = jnp.exp(s - m)
        p = p * pl.reciprocal(jnp.sum(p, axis=-1, keepdims=True), approx=True)
        oh = jnp.dot(p, vh, preferred_element_type=jnp.float32)        # (Sq, Dh)
        contrib = jnp.dot(oh, wo_ref[h], preferred_element_type=jnp.float32)
        out = contrib if out is None else out + contrib
    out = out + bo_ref[...]
    o_ref[0] = _ln(x + out, g_ref[...], be_ref[...], eps)              # residual + LN


def mha_ln_block(query, kv, p, ln, nhead):
    B, Sq, D = query.shape
    Sk = kv.shape[1]
    H = nhead
    Dh = D // H
    return pl.pallas_call(
        functools.partial(_mha_ln_kernel, nhead=nhead, eps=LN_EPS),
        grid=(B,),
        out_shape=jax.ShapeDtypeStruct((B, Sq, D), jnp.float32),
        in_specs=[
            pl.BlockSpec((1, Sq, D), lambda i: (i, 0, 0)),
            pl.BlockSpec((1, Sk, D), lambda i: (i, 0, 0)),
            pl.BlockSpec((H, D, Dh), lambda i: (0, 0, 0)),   # wq
            pl.BlockSpec((H, 1, Dh), lambda i: (0, 0, 0)),   # bq
            pl.BlockSpec((H, D, Dh), lambda i: (0, 0, 0)),   # wk
            pl.BlockSpec((H, 1, Dh), lambda i: (0, 0, 0)),   # bk
            pl.BlockSpec((H, D, Dh), lambda i: (0, 0, 0)),   # wv
            pl.BlockSpec((H, 1, Dh), lambda i: (0, 0, 0)),   # bv
            pl.BlockSpec((H, Dh, D), lambda i: (0, 0, 0)),   # wo
            pl.BlockSpec((1, D), lambda i: (0, 0)),          # bo
            pl.BlockSpec((1, D), lambda i: (0, 0)),          # gamma
            pl.BlockSpec((1, D), lambda i: (0, 0)),          # beta
        ],
        out_specs=pl.BlockSpec((1, Sq, D), lambda i: (i, 0, 0)),
        compiler_params=pltpu.CompilerParams(dimension_semantics=("parallel",)),
    )(query, kv, p["wq"], p["bq"], p["wk"], p["bk"], p["wv"], p["bv"],
      p["wo"], p["bo"], ln[0], ln[1])


# ----------------------------------------------------------------------------
# Fused feed-forward (linear+ReLU+linear) + residual + LayerNorm
# ----------------------------------------------------------------------------
def _ffn_ln_kernel(x_ref, w1_ref, b1_ref, w2_ref, b2_ref, g_ref, be_ref, o_ref,
                   *, eps):
    x = x_ref[...]                                                     # (tm, D)
    h = jnp.dot(x, w1_ref[...], preferred_element_type=jnp.float32) + b1_ref[...]
    h = jnp.maximum(h, 0.0)
    y = x + jnp.dot(h, w2_ref[...], preferred_element_type=jnp.float32) + b2_ref[...]
    o_ref[...] = _ln(y, g_ref[...], be_ref[...], eps)


def ffn_ln_block(x, p, ln):
    B, S, D = x.shape
    F = p["w1"].shape[1]
    M = B * S
    x2 = x.reshape(M, D)
    tm = _pick_row_tile(M)
    out = pl.pallas_call(
        functools.partial(_ffn_ln_kernel, eps=LN_EPS),
        grid=(M // tm,),
        out_shape=jax.ShapeDtypeStruct((M, D), jnp.float32),
        in_specs=[
            pl.BlockSpec((tm, D), lambda i: (i, 0)),
            pl.BlockSpec((D, F), lambda i: (0, 0)),
            pl.BlockSpec((1, F), lambda i: (0, 0)),
            pl.BlockSpec((F, D), lambda i: (0, 0)),
            pl.BlockSpec((1, D), lambda i: (0, 0)),
            pl.BlockSpec((1, D), lambda i: (0, 0)),
            pl.BlockSpec((1, D), lambda i: (0, 0)),
        ],
        out_specs=pl.BlockSpec((tm, D), lambda i: (i, 0)),
        compiler_params=pltpu.CompilerParams(dimension_semantics=("parallel",)),
    )(x2, p["w1"], p["b1"], p["w2"], p["b2"], ln[0], ln[1])
    return out.reshape(B, S, D)


# ----------------------------------------------------------------------------
# Standalone LayerNorm (encoder final norm only)
# ----------------------------------------------------------------------------
def _ln_kernel(x_ref, g_ref, b_ref, o_ref, *, eps):
    o_ref[...] = _ln(x_ref[...], g_ref[...], b_ref[...], eps)


def layer_norm(x, gamma, beta, eps=LN_EPS):
    shp = x.shape
    D = shp[-1]
    x2 = x.reshape(-1, D)
    M = x2.shape[0]
    tm = _pick_row_tile(M)
    out = pl.pallas_call(
        functools.partial(_ln_kernel, eps=eps),
        grid=(M // tm,),
        out_shape=jax.ShapeDtypeStruct((M, D), jnp.float32),
        in_specs=[
            pl.BlockSpec((tm, D), lambda i: (i, 0)),
            pl.BlockSpec((1, D), lambda i: (0, 0)),
            pl.BlockSpec((1, D), lambda i: (0, 0)),
        ],
        out_specs=pl.BlockSpec((tm, D), lambda i: (i, 0)),
        compiler_params=pltpu.CompilerParams(dimension_semantics=("parallel",)),
    )(x2, gamma, beta)
    return out.reshape(shp)


# ----------------------------------------------------------------------------
# Fused head: final decoder LayerNorm + GroupWiseLinear + log_softmax
# ----------------------------------------------------------------------------
def _head_kernel(hs_ref, g_ref, be_ref, w_ref, b_ref, o_ref, *, eps):
    xn = _ln(hs_ref[...], g_ref[...], be_ref[...], eps)                # (B, C, D)
    logits = jnp.sum(xn * w_ref[...], axis=-1) + b_ref[...]            # (B, C)
    m = jnp.max(logits, axis=1, keepdims=True)
    z = logits - m
    o_ref[...] = z - jnp.log(jnp.sum(jnp.exp(z), axis=1, keepdims=True))


def head_block(hs, gamma, beta, W, b):
    B, C, D = hs.shape
    return pl.pallas_call(
        functools.partial(_head_kernel, eps=LN_EPS),
        out_shape=jax.ShapeDtypeStruct((B, C), jnp.float32),
        in_specs=[
            pl.BlockSpec((B, C, D), lambda: (0, 0, 0)),
            pl.BlockSpec((1, 1, D), lambda: (0, 0, 0)),
            pl.BlockSpec((1, 1, D), lambda: (0, 0, 0)),
            pl.BlockSpec((1, C, D), lambda: (0, 0, 0)),
            pl.BlockSpec((1, C), lambda: (0, 0)),
        ],
        out_specs=pl.BlockSpec((B, C), lambda: (0, 0)),
    )(hs, gamma, beta, W, b)


# ----------------------------------------------------------------------------
# Model blocks
# ----------------------------------------------------------------------------
def encoder_layer(x, p, nhead):
    x = mha_ln_block(x, x, p["self_mha"], p["ln1"], nhead)
    x = ffn_ln_block(x, p["ffn"], p["ln2"])
    return x


def decoder_layer(tgt, memory, p, nhead):
    tgt = mha_ln_block(tgt, tgt, p["self_mha"], p["ln1"], nhead)
    tgt = mha_ln_block(tgt, memory, p["cross_mha"], p["ln2"], nhead)
    tgt = ffn_ln_block(tgt, p["ffn"], p["ln3"])
    return tgt


def transformer(src, tgt, p, nhead):
    x = src
    for lp in p["enc_layers"]:
        x = encoder_layer(x, lp, nhead)
    memory = layer_norm(x, *p["enc_norm"])
    y = tgt
    for lp in p["dec_layers"]:
        y = decoder_layer(y, memory, lp, nhead)
    return y   # final decoder LayerNorm is fused into the classification head


def forward(params, images):
    """Query2Label.forward (eval mode: dropout == identity)."""
    b, d, t, c, h, w = images.shape

    # TODO(synk): timm pretrained backbone has no Pallas equivalent; replaced by a
    # deterministic synthetic backbone = global-average-pool over (h, w) + linear
    # projection to hidden_dim, keeping the (b, d, t, hidden_dim) output contract.
    x = backbone_pool_proj_max_pe(
        images, params["backbone_w"], params["backbone_b"], params["pe"])   # (b,t,D)

    query_embed = jnp.broadcast_to(
        params["query_embed"][None], (b,) + params["query_embed"].shape)
    hs = transformer(x, query_embed, params["transformer"], CFG["nhead"])

    dec_norm = params["transformer"]["dec_norm"]
    return head_block(hs, dec_norm[0], dec_norm[1],
                      params["fc_W"], params["fc_b"])                       # (b, C)


# ----------------------------------------------------------------------------
# Deterministic parameter initialization
# ----------------------------------------------------------------------------
def _uniform(key, shape, bound):
    return jax.random.uniform(key, shape, jnp.float32, minval=-bound, maxval=bound)


def _init_linear(key, fan_in, fan_out):
    k1, k2 = jax.random.split(key)
    bound = 1.0 / math.sqrt(fan_in)
    return (_uniform(k1, (fan_in, fan_out), bound),
            _uniform(k2, (1, fan_out), bound))            # bias pre-shaped (1, N)


def _split_heads_w(w, nhead):          # (D, D) -> (H, D, Dh)
    d_in, d_out = w.shape
    dh = d_out // nhead
    return jnp.transpose(w.reshape(d_in, nhead, dh), (1, 0, 2))


def _split_heads_b(b, nhead):          # (1, D) -> (H, 1, Dh)
    d_out = b.shape[-1]
    dh = d_out // nhead
    return jnp.transpose(b.reshape(1, nhead, dh), (1, 0, 2))


def _init_mha(key, D, nhead):
    ks = jax.random.split(key, 4)
    wq, bq = _init_linear(ks[0], D, D)
    wk, bk = _init_linear(ks[1], D, D)
    wv, bv = _init_linear(ks[2], D, D)
    wo, bo = _init_linear(ks[3], D, D)
    return dict(
        wq=_split_heads_w(wq, nhead), bq=_split_heads_b(bq, nhead),
        wk=_split_heads_w(wk, nhead), bk=_split_heads_b(bk, nhead),
        wv=_split_heads_w(wv, nhead), bv=_split_heads_b(bv, nhead),
        wo=wo.reshape(nhead, D // nhead, D),   # (H, Dh, D): rows grouped per head
        bo=bo,                                 # (1, D)
    )


def _init_ffn(key, D, F):
    k1, k2 = jax.random.split(key)
    w1, b1 = _init_linear(k1, D, F)
    w2, b2 = _init_linear(k2, F, D)
    return dict(w1=w1, b1=b1, w2=w2, b2=b2)


def _ln_params(D):
    return (jnp.ones((1, D), jnp.float32), jnp.zeros((1, D), jnp.float32))


def _init_enc_layer(key, D, F, nhead):
    ks = jax.random.split(key, 2)
    return dict(
        self_mha=_init_mha(ks[0], D, nhead),
        ffn=_init_ffn(ks[1], D, F),
        ln1=_ln_params(D),
        ln2=_ln_params(D),
    )


def _init_dec_layer(key, D, F, nhead):
    ks = jax.random.split(key, 3)
    return dict(
        self_mha=_init_mha(ks[0], D, nhead),
        cross_mha=_init_mha(ks[1], D, nhead),
        ffn=_init_ffn(ks[2], D, F),
        ln1=_ln_params(D),
        ln2=_ln_params(D),
        ln3=_ln_params(D),
    )


def _build_pe(D, max_len):
    position = jnp.arange(max_len, dtype=jnp.float32)[:, None]
    div_term = jnp.exp(
        jnp.arange(0, D, 2, dtype=jnp.float32) * (-math.log(10000.0) / D))
    pe = jnp.zeros((max_len, D), jnp.float32)
    pe = pe.at[:, 0::2].set(jnp.sin(position * div_term))
    pe = pe.at[:, 1::2].set(jnp.cos(position * div_term))
    return pe


def init_params(key, cfg):
    D, F, C = cfg["hidden"], cfg["ffn"], cfg["num_classes"]
    nhead = cfg["nhead"]
    keys = jax.random.split(key, 4 + cfg["num_enc"] + cfg["num_dec"])
    ki = iter(keys)

    backbone_w, backbone_b = _init_linear(next(ki), cfg["in_channels"], D)
    query_embed = jax.random.normal(next(ki), (C, D), jnp.float32)

    stdv = 1.0 / math.sqrt(D)
    fc_W = _uniform(next(ki), (1, C, D), stdv)
    fc_b = _uniform(next(ki), (1, C), stdv)

    enc_layers = [_init_enc_layer(next(ki), D, F, nhead)
                  for _ in range(cfg["num_enc"])]
    dec_layers = [_init_dec_layer(next(ki), D, F, nhead)
                  for _ in range(cfg["num_dec"])]

    return dict(
        backbone_w=backbone_w,
        backbone_b=backbone_b,
        pe=_build_pe(D, cfg["max_len"]),
        query_embed=query_embed,
        transformer=dict(
            enc_layers=enc_layers,
            dec_layers=dec_layers,
            enc_norm=_ln_params(D),
            dec_norm=(jnp.ones((1, 1, D), jnp.float32),
                      jnp.zeros((1, 1, D), jnp.float32)),
        ),
        fc_W=fc_W,
        fc_b=fc_b,
    )


# ----------------------------------------------------------------------------
# Main
# ----------------------------------------------------------------------------
if __name__ == "__main__":
    key = jax.random.PRNGKey(0)
    pkey, ikey = jax.random.split(key)

    params = init_params(pkey, CFG)
    # images: (b, d, t, c, h, w)
    images = jax.random.normal(ikey, (2, 2, 4, 3, 8, 8), dtype=jnp.float32)

    out = jax.jit(forward)(params, images)
    out = jax.block_until_ready(out)

    assert out.shape == (2, CFG["num_classes"]), out.shape
    assert bool(jnp.all(jnp.isfinite(out)))
    # log_softmax over dim=1 -> each row's exp sums to 1
    assert bool(jnp.allclose(jnp.sum(jnp.exp(out), axis=1), 1.0, atol=1e-4))
    print("KERNEL_OK")
</pallas_src>

<mosaic_0001>
module attributes {stable_mosaic.version = 11 : i64} {
  func.func @_mha_ln_kernel(%arg0: i32, %arg1: memref<1x8x64xf32, #tpu.memory_space<vmem>>, %arg2: memref<1x8x64xf32, #tpu.memory_space<vmem>>, %arg3: memref<4x64x16xf32, #tpu.memory_space<vmem>>, %arg4: memref<4x1x16xf32, #tpu.memory_space<vmem>>, %arg5: memref<4x64x16xf32, #tpu.memory_space<vmem>>, %arg6: memref<4x1x16xf32, #tpu.memory_space<vmem>>, %arg7: memref<4x64x16xf32, #tpu.memory_space<vmem>>, %arg8: memref<4x1x16xf32, #tpu.memory_space<vmem>>, %arg9: memref<4x16x64xf32, #tpu.memory_space<vmem>>, %arg10: memref<1x64xf32, #tpu.memory_space<vmem>>, %arg11: memref<1x64xf32, #tpu.memory_space<vmem>>, %arg12: memref<1x64xf32, #tpu.memory_space<vmem>>, %arg13: memref<1x8x64xf32, #tpu.memory_space<vmem>>) attributes {dimension_semantics = [#tpu.dimension_semantics<parallel>], iteration_bounds = array<i64: 2>, scalar_prefetch = 0 : i64, scratch_operands = 0 : i64, tpu.core_type = #tpu.core_type<tc>, window_params = [{transform_indices = @transform_0, window_bounds = array<i64: 1, 8, 64>}, {transform_indices = @transform_1, window_bounds = array<i64: 1, 8, 64>}, {pipeline_mode = #tpu.pipeline_mode<synchronous>, transform_indices = @transform_2, window_bounds = array<i64: 4, 64, 16>}, {pipeline_mode = #tpu.pipeline_mode<synchronous>, transform_indices = @transform_3, window_bounds = array<i64: 4, 1, 16>}, {pipeline_mode = #tpu.pipeline_mode<synchronous>, transform_indices = @transform_4, window_bounds = array<i64: 4, 64, 16>}, {pipeline_mode = #tpu.pipeline_mode<synchronous>, transform_indices = @transform_5, window_bounds = array<i64: 4, 1, 16>}, {pipeline_mode = #tpu.pipeline_mode<synchronous>, transform_indices = @transform_6, window_bounds = array<i64: 4, 64, 16>}, {pipeline_mode = #tpu.pipeline_mode<synchronous>, transform_indices = @transform_7, window_bounds = array<i64: 4, 1, 16>}, {pipeline_mode = #tpu.pipeline_mode<synchronous>, transform_indices = @transform_8, window_bounds = array<i64: 4, 16, 64>}, {pipeline_mode = #tpu.pipeline_mode<synchronous>, transform_indices = @transform_9, window_bounds = array<i64: 1, 64>}, {pipeline_mode = #tpu.pipeline_mode<synchronous>, transform_indices = @transform_10, window_bounds = array<i64: 1, 64>}, {pipeline_mode = #tpu.pipeline_mode<synchronous>, transform_indices = @transform_11, window_bounds = array<i64: 1, 64>}, {transform_indices = @transform_12, window_bounds = array<i64: 1, 8, 64>}]} {
    %c0 = arith.constant 0 : index
    %c0_0 = arith.constant 0 : index
    %c0_1 = arith.constant 0 : index
    %0 = vector.load %arg1[%c0, %c0_0, %c0_1] : memref<1x8x64xf32, #tpu.memory_space<vmem>>, vector<1x8x64xf32>
    %1 = vector.shape_cast %0 : vector<1x8x64xf32> to vector<8x64xf32>
    %c0_2 = arith.constant 0 : index
    %c0_3 = arith.constant 0 : index
    %c0_4 = arith.constant 0 : index
    %2 = vector.load %arg2[%c0_2, %c0_3, %c0_4] : memref<1x8x64xf32, #tpu.memory_space<vmem>>, vector<1x8x64xf32>
    %3 = vector.shape_cast %2 : vector<1x8x64xf32> to vector<8x64xf32>
    %c0_5 = arith.constant 0 : index
    %c0_6 = arith.constant 0 : index
    %c0_7 = arith.constant 0 : index
    %4 = vector.load %arg3[%c0_5, %c0_6, %c0_7] : memref<4x64x16xf32, #tpu.memory_space<vmem>>, vector<1x64x16xf32>
    %5 = vector.shape_cast %4 : vector<1x64x16xf32> to vector<64x16xf32>
    %cst = arith.constant dense<0.000000e+00> : vector<8x16xf32>
    %6 = tpu.matmul %1, %5, %cst {dimension_numbers = #tpu.dot_dimension_numbers<[1], [0], [0], [1], [0, 0, 1, 1], [], []>} : vector<8x64xf32>, vector<64x16xf32>, vector<8x16xf32> -> vector<8x16xf32>
    %c0_8 = arith.constant 0 : index
    %c0_9 = arith.constant 0 : index
    %c0_10 = arith.constant 0 : index
    %7 = vector.load %arg4[%c0_8, %c0_9, %c0_10] : memref<4x1x16xf32, #tpu.memory_space<vmem>>, vector<1x1x16xf32>
    %8 = vector.shape_cast %7 : vector<1x1x16xf32> to vector<1x16xf32>
    %9 = vector.broadcast %8 : vector<1x16xf32> to vector<8x16xf32>
    %10 = arith.addf %6, %9 : vector<8x16xf32>
    %cst_11 = arith.constant 2.500000e-01 : f32
    %11 = vector.broadcast %cst_11 : f32 to vector<8x16xf32>
    %12 = arith.mulf %10, %11 : vector<8x16xf32>
    %c0_12 = arith.constant 0 : index
    %c0_13 = arith.constant 0 : index
    %c0_14 = arith.constant 0 : index
    %13 = vector.load %arg5[%c0_12, %c0_13, %c0_14] : memref<4x64x16xf32, #tpu.memory_space<vmem>>, vector<1x64x16xf32>
    %14 = vector.shape_cast %13 : vector<1x64x16xf32> to vector<64x16xf32>
    %cst_15 = arith.constant dense<0.000000e+00> : vector<8x16xf32>
    %15 = tpu.matmul %3, %14, %cst_15 {dimension_numbers = #tpu.dot_dimension_numbers<[1], [0], [0], [1], [0, 0, 1, 1], [], []>} : vector<8x64xf32>, vector<64x16xf32>, vector<8x16xf32> -> vector<8x16xf32>
    %c0_16 = arith.constant 0 : index
    %c0_17 = arith.constant 0 : index
    %c0_18 = arith.constant 0 : index
    %16 = vector.load %arg6[%c0_16, %c0_17, %c0_18] : memref<4x1x16xf32, #tpu.memory_space<vmem>>, vector<1x1x16xf32>
    %17 = vector.shape_cast %16 : vector<1x1x16xf32> to vector<1x16xf32>
    %18 = vector.broadcast %17 : vector<1x16xf32> to vector<8x16xf32>
    %19 = arith.addf %15, %18 : vector<8x16xf32>
    %c0_19 = arith.constant 0 : index
    %c0_20 = arith.constant 0 : index
    %c0_21 = arith.constant 0 : index
    %20 = vector.load %arg7[%c0_19, %c0_20, %c0_21] : memref<4x64x16xf32, #tpu.memory_space<vmem>>, vector<1x64x16xf32>
    %21 = vector.shape_cast %20 : vector<1x64x16xf32> to vector<64x16xf32>
    %cst_22 = arith.constant dense<0.000000e+00> : vector<8x16xf32>
    %22 = tpu.matmul %3, %21, %cst_22 {dimension_numbers = #tpu.dot_dimension_numbers<[1], [0], [0], [1], [0, 0, 1, 1], [], []>} : vector<8x64xf32>, vector<64x16xf32>, vector<8x16xf32> -> vector<8x16xf32>
    %c0_23 = arith.constant 0 : index
    %c0_24 = arith.constant 0 : index
    %c0_25 = arith.constant 0 : index
    %23 = vector.load %arg8[%c0_23, %c0_24, %c0_25] : memref<4x1x16xf32, #tpu.memory_space<vmem>>, vector<1x1x16xf32>
    %24 = vector.shape_cast %23 : vector<1x1x16xf32> to vector<1x16xf32>
    %25 = vector.broadcast %24 : vector<1x16xf32> to vector<8x16xf32>
    %26 = arith.addf %22, %25 : vector<8x16xf32>
    %cst_26 = arith.constant dense<0.000000e+00> : vector<8x8xf32>
    %27 = tpu.matmul %12, %19, %cst_26 {dimension_numbers = #tpu.dot_dimension_numbers<[1], [1], [0], [0], [0, 0, 1, 0], [], []>} : vector<8x16xf32>, vector<8x16xf32>, vector<8x8xf32> -> vector<8x8xf32>
    %cst_27 = arith.constant dense<0xFF800000> : vector<8xf32>
    %28 = vector.multi_reduction <maximumf>, %27, %cst_27 [1] : vector<8x8xf32> to vector<8xf32>
    %29 = vector.shape_cast %28 : vector<8xf32> to vector<8x1xf32>
    %30 = vector.broadcast %29 : vector<8x1xf32> to vector<8x8xf32>
    %31 = arith.subf %27, %30 : vector<8x8xf32>
    %32 = math.exp %31 : vector<8x8xf32>
    %cst_28 = arith.constant dense<0.000000e+00> : vector<8xf32>
    %33 = vector.multi_reduction <add>, %32, %cst_28 [1] : vector<8x8xf32> to vector<8xf32>
    %34 = vector.shape_cast %33 : vector<8xf32> to vector<8x1xf32>
    %35 = tpu.reciprocal %34 {approx = true} : vector<8x1xf32> -> vector<8x1xf32>
    %36 = vector.broadcast %35 : vector<8x1xf32> to vector<8x8xf32>
    %37 = arith.mulf %32, %36 : vector<8x8xf32>
    %cst_29 = arith.constant dense<0.000000e+00> : vector<8x16xf32>
    %38 = tpu.matmul %37, %26, %cst_29 {dimension_numbers = #tpu.dot_dimension_numbers<[1], [0], [0], [1], [0, 0, 1, 1], [], []>} : vector<8x8xf32>, vector<8x16xf32>, vector<8x16xf32> -> vector<8x16xf32>
    %c0_30 = arith.constant 0 : index
    %c0_31 = arith.constant 0 : index
    %c0_32 = arith.constant 0 : index
    %39 = vector.load %arg9[%c0_30, %c0_31, %c0_32] : memref<4x16x64xf32, #tpu.memory_space<vmem>>, vector<1x16x64xf32>
    %40 = vector.shape_cast %39 : vector<1x16x64xf32> to vector<16x64xf32>
    %cst_33 = arith.constant dense<0.000000e+00> : vector<8x64xf32>
    %41 = tpu.matmul %38, %40, %cst_33 {dimension_numbers = #tpu.dot_dimension_numbers<[1], [0], [0], [1], [0, 0, 1, 1], [], []>} : vector<8x16xf32>, vector<16x64xf32>, vector<8x64xf32> -> vector<8x64xf32>
    %c1 = arith.constant 1 : index
    %c0_34 = arith.constant 0 : index
    %c0_35 = arith.constant 0 : index
    %42 = vector.load %arg3[%c1, %c0_34, %c0_35] : memref<4x64x16xf32, #tpu.memory_space<vmem>>, vector<1x64x16xf32>
    %43 = vector.shape_cast %42 : vector<1x64x16xf32> to vector<64x16xf32>
    %cst_36 = arith.constant dense<0.000000e+00> : vector<8x16xf32>
    %44 = tpu.matmul %1, %43, %cst_36 {dimension_numbers = #tpu.dot_dimension_numbers<[1], [0], [0], [1], [0, 0, 1, 1], [], []>} : vector<8x64xf32>, vector<64x16xf32>, vector<8x16xf32> -> vector<8x16xf32>
    %c1_37 = arith.constant 1 : index
    %c0_38 = arith.constant 0 : index
    %c0_39 = arith.constant 0 : index
    %45 = vector.load %arg4[%c1_37, %c0_38, %c0_39] : memref<4x1x16xf32, #tpu.memory_space<vmem>>, vector<1x1x16xf32>
    %46 = vector.shape_cast %45 : vector<1x1x16xf32> to vector<1x16xf32>
    %47 = vector.broadcast %46 : vector<1x16xf32> to vector<8x16xf32>
    %48 = arith.addf %44, %47 : vector<8x16xf32>
    %cst_40 = arith.constant 2.500000e-01 : f32
    %49 = vector.broadcast %cst_40 : f32 to vector<8x16xf32>
    %50 = arith.mulf %48, %49 : vector<8x16xf32>
    %c1_41 = arith.constant 1 : index
    %c0_42 = arith.constant 0 : index
    %c0_43 = arith.constant 0 : index
    %51 = vector.load %arg5[%c1_41, %c0_42, %c0_43] : memref<4x64x16xf32, #tpu.memory_space<vmem>>, vector<1x64x16xf32>
    %52 = vector.shape_cast %51 : vector<1x64x16xf32> to vector<64x16xf32>
    %cst_44 = arith.constant dense<0.000000e+00> : vector<8x16xf32>
    %53 = tpu.matmul %3, %52, %cst_44 {dimension_numbers = #tpu.dot_dimension_numbers<[1], [0], [0], [1], [0, 0, 1, 1], [], []>} : vector<8x64xf32>, vector<64x16xf32>, vector<8x16xf32> -> vector<8x16xf32>
    %c1_45 = arith.constant 1 : index
    %c0_46 = arith.constant 0 : index
    %c0_47 = arith.constant 0 : index
    %54 = vector.load %arg6[%c1_45, %c0_46, %c0_47] : memref<4x1x16xf32, #tpu.memory_space<vmem>>, vector<1x1x16xf32>
    %55 = vector.shape_cast %54 : vector<1x1x16xf32> to vector<1x16xf32>
    %56 = vector.broadcast %55 : vector<1x16xf32> to vector<8x16xf32>
    %57 = arith.addf %53, %56 : vector<8x16xf32>
    %c1_48 = arith.constant 1 : index
    %c0_49 = arith.constant 0 : index
    %c0_50 = arith.constant 0 : index
    %58 = vector.load %arg7[%c1_48, %c0_49, %c0_50] : memref<4x64x16xf32, #tpu.memory_space<vmem>>, vector<1x64x16xf32>
    %59 = vector.shape_cast %58 : vector<1x64x16xf32> to vector<64x16xf32>
    %cst_51 = arith.constant dense<0.000000e+00> : vector<8x16xf32>
    %60 = tpu.matmul %3, %59, %cst_51 {dimension_numbers = #tpu.dot_dimension_numbers<[1], [0], [0], [1], [0, 0, 1, 1], [], []>} : vector<8x64xf32>, vector<64x16xf32>, vector<8x16xf32> -> vector<8x16xf32>
    %c1_52 = arith.constant 1 : index
    %c0_53 = arith.constant 0 : index
    %c0_54 = arith.constant 0 : index
    %61 = vector.load %arg8[%c1_52, %c0_53, %c0_54] : memref<4x1x16xf32, #tpu.memory_space<vmem>>, vector<1x1x16xf32>
    %62 = vector.shape_cast %61 : vector<1x1x16xf32> to vector<1x16xf32>
    %63 = vector.broadcast %62 : vector<1x16xf32> to vector<8x16xf32>
    %64 = arith.addf %60, %63 : vector<8x16xf32>
    %cst_55 = arith.constant dense<0.000000e+00> : vector<8x8xf32>
    %65 = tpu.matmul %50, %57, %cst_55 {dimension_numbers = #tpu.dot_dimension_numbers<[1], [1], [0], [0], [0, 0, 1, 0], [], []>} : vector<8x16xf32>, vector<8x16xf32>, vector<8x8xf32> -> vector<8x8xf32>
    %cst_56 = arith.constant dense<0xFF800000> : vector<8xf32>
    %66 = vector.multi_reduction <maximumf>, %65, %cst_56 [1] : vector<8x8xf32> to vector<8xf32>
    %67 = vector.shape_cast %66 : vector<8xf32> to vector<8x1xf32>
    %68 = vector.broadcast %67 : vector<8x1xf32> to vector<8x8xf32>
    %69 = arith.subf %65, %68 : vector<8x8xf32>
    %70 = math.exp %69 : vector<8x8xf32>
    %cst_57 = arith.constant dense<0.000000e+00> : vector<8xf32>
    %71 = vector.multi_reduction <add>, %70, %cst_57 [1] : vector<8x8xf32> to vector<8xf32>
    %72 = vector.shape_cast %71 : vector<8xf32> to vector<8x1xf32>
    %73 = tpu.reciprocal %72 {approx = true} : vector<8x1xf32> -> vector<8x1xf32>
    %74 = vector.broadcast %73 : vector<8x1xf32> to vector<8x8xf32>
    %75 = arith.mulf %70, %74 : vector<8x8xf32>
    %cst_58 = arith.constant dense<0.000000e+00> : vector<8x16xf32>
    %76 = tpu.matmul %75, %64, %cst_58 {dimension_numbers = #tpu.dot_dimension_numbers<[1], [0], [0], [1], [0, 0, 1, 1], [], []>} : vector<8x8xf32>, vector<8x16xf32>, vector<8x16xf32> -> vector<8x16xf32>
    %c1_59 = arith.constant 1 : index
    %c0_60 = arith.constant 0 : index
    %c0_61 = arith.constant 0 : index
    %77 = vector.load %arg9[%c1_59, %c0_60, %c0_61] : memref<4x16x64xf32, #tpu.memory_space<vmem>>, vector<1x16x64xf32>
    %78 = vector.shape_cast %77 : vector<1x16x64xf32> to vector<16x64xf32>
    %cst_62 = arith.constant dense<0.000000e+00> : vector<8x64xf32>
    %79 = tpu.matmul %76, %78, %cst_62 {dimension_numbers = #tpu.dot_dimension_numbers<[1], [0], [0], [1], [0, 0, 1, 1], [], []>} : vector<8x16xf32>, vector<16x64xf32>, vector<8x64xf32> -> vector<8x64xf32>
    %80 = arith.addf %41, %79 : vector<8x64xf32>
    %c2 = arith.constant 2 : index
    %c0_63 = arith.constant 0 : index
    %c0_64 = arith.constant 0 : index
    %81 = vector.load %arg3[%c2, %c0_63, %c0_64] : memref<4x64x16xf32, #tpu.memory_space<vmem>>, vector<1x64x16xf32>
    %82 = vector.shape_cast %81 : vector<1x64x16xf32> to vector<64x16xf32>
    %cst_65 = arith.constant dense<0.000000e+00> : vector<8x16xf32>
    %83 = tpu.matmul %1, %82, %cst_65 {dimension_numbers = #tpu.dot_dimension_numbers<[1], [0], [0], [1], [0, 0, 1, 1], [], []>} : vector<8x64xf32>, vector<64x16xf32>, vector<8x16xf32> -> vector<8x16xf32>
    %c2_66 = arith.constant 2 : index
    %c0_67 = arith.constant 0 : index
    %c0_68 = arith.constant 0 : index
    %84 = vector.load %arg4[%c2_66, %c0_67, %c0_68] : memref<4x1x16xf32, #tpu.memory_space<vmem>>, vector<1x1x16xf32>
    %85 = vector.shape_cast %84 : vector<1x1x16xf32> to vector<1x16xf32>
    %86 = vector.broadcast %85 : vector<1x16xf32> to vector<8x16xf32>
    %87 = arith.addf %83, %86 : vector<8x16xf32>
    %cst_69 = arith.constant 2.500000e-01 : f32
    %88 = vector.broadcast %cst_69 : f32 to vector<8x16xf32>
    %89 = arith.mulf %87, %88 : vector<8x16xf32>
    %c2_70 = arith.constant 2 : index
    %c0_71 = arith.constant 0 : index
    %c0_72 = arith.constant 0 : index
    %90 = vector.load %arg5[%c2_70, %c0_71, %c0_72] : memref<4x64x16xf32, #tpu.memory_space<vmem>>, vector<1x64x16xf32>
    %91 = vector.shape_cast %90 : vector<1x64x16xf32> to vector<64x16xf32>
    %cst_73 = arith.constant dense<0.000000e+00> : vector<8x16xf32>
    %92 = tpu.matmul %3, %91, %cst_73 {dimension_numbers = #tpu.dot_dimension_numbers<[1], [0], [0], [1], [0, 0, 1, 1], [], []>} : vector<8x64xf32>, vector<64x16xf32>, vector<8x16xf32> -> vector<8x16xf32>
    %c2_74 = arith.constant 2 : index
    %c0_75 = arith.constant 0 : index
    %c0_76 = arith.constant 0 : index
    %93 = vector.load %arg6[%c2_74, %c0_75, %c0_76] : memref<4x1x16xf32, #tpu.memory_space<vmem>>, vector<1x1x16xf32>
    %94 = vector.shape_cast %93 : vector<1x1x16xf32> to vector<1x16xf32>
    %95 = vector.broadcast %94 : vector<1x16xf32> to vector<8x16xf32>
    %96 = arith.addf %92, %95 : vector<8x16xf32>
    %c2_77 = arith.constant 2 : index
    %c0_78 = arith.constant 0 : index
    %c0_79 = arith.constant 0 : index
    %97 = vector.load %arg7[%c2_77, %c0_78, %c0_79] : memref<4x64x16xf32, #tpu.memory_space<vmem>>, vector<1x64x16xf32>
    %98 = vector.shape_cast %97 : vector<1x64x16xf32> to vector<64x16xf32>
    %cst_80 = arith.constant dense<0.000000e+00> : vector<8x16xf32>
    %99 = tpu.matmul %3, %98, %cst_80 {dimension_numbers = #tpu.dot_dimension_numbers<[1], [0], [0], [1], [0, 0, 1, 1], [], []>} : vector<8x64xf32>, vector<64x16xf32>, vector<8x16xf32> -> vector<8x16xf32>
    %c2_81 = arith.constant 2 : index
    %c0_82 = arith.constant 0 : index
    %c0_83 = arith.constant 0 : index
    %100 = vector.load %arg8[%c2_81, %c0_82, %c0_83] : memref<4x1x16xf32, #tpu.memory_space<vmem>>, vector<1x1x16xf32>
    %101 = vector.shape_cast %100 : vector<1x1x16xf32> to vector<1x16xf32>
    %102 = vector.broadcast %101 : vector<1x16xf32> to vector<8x16xf32>
    %103 = arith.addf %99, %102 : vector<8x16xf32>
    %cst_84 = arith.constant dense<0.000000e+00> : vector<8x8xf32>
    %104 = tpu.matmul %89, %96, %cst_84 {dimension_numbers = #tpu.dot_dimension_numbers<[1], [1], [0], [0], [0, 0, 1, 0], [], []>} : vector<8x16xf32>, vector<8x16xf32>, vector<8x8xf32> -> vector<8x8xf32>
    %cst_85 = arith.constant dense<0xFF800000> : vector<8xf32>
    %105 = vector.multi_reduction <maximumf>, %104, %cst_85 [1] : vector<8x8xf32> to vector<8xf32>
    %106 = vector.shape_cast %105 : vector<8xf32> to vector<8x1xf32>
    %107 = vector.broadcast %106 : vector<8x1xf32> to vector<8x8xf32>
    %108 = arith.subf %104, %107 : vector<8x8xf32>
    %109 = math.exp %108 : vector<8x8xf32>
    %cst_86 = arith.constant dense<0.000000e+00> : vector<8xf32>
    %110 = vector.multi_reduction <add>, %109, %cst_86 [1] : vector<8x8xf32> to vector<8xf32>
    %111 = vector.shape_cast %110 : vector<8xf32> to vector<8x1xf32>
    %112 = tpu.reciprocal %111 {approx = true} : vector<8x1xf32> -> vector<8x1xf32>
    %113 = vector.broadcast %112 : vector<8x1xf32> to vector<8x8xf32>
    %114 = arith.mulf %109, %113 : vector<8x8xf32>
    %cst_87 = arith.constant dense<0.000000e+00> : vector<8x16xf32>
    %115 = tpu.matmul %114, %103, %cst_87 {dimension_numbers = #tpu.dot_dimension_numbers<[1], [0], [0], [1], [0, 0, 1, 1], [], []>} : vector<8x8xf32>, vector<8x16xf32>, vector<8x16xf32> -> vector<8x16xf32>
    %c2_88 = arith.constant 2 : index
    %c0_89 = arith.constant 0 : index
    %c0_90 = arith.constant 0 : index
    %116 = vector.load %arg9[%c2_88, %c0_89, %c0_90] : memref<4x16x64xf32, #tpu.memory_space<vmem>>, vector<1x16x64xf32>
    %117 = vector.shape_cast %116 : vector<1x16x64xf32> to vector<16x64xf32>
    %cst_91 = arith.constant dense<0.000000e+00> : vector<8x64xf32>
    %118 = tpu.matmul %115, %117, %cst_91 {dimension_numbers = #tpu.dot_dimension_numbers<[1], [0], [0], [1], [0, 0, 1, 1], [], []>} : vector<8x16xf32>, vector<16x64xf32>, vector<8x64xf32> -> vector<8x64xf32>
    %119 = arith.addf %80, %118 : vector<8x64xf32>
    %c3 = arith.constant 3 : index
    %c0_92 = arith.constant 0 : index
    %c0_93 = arith.constant 0 : index
    %120 = vector.load %arg3[%c3, %c0_92, %c0_93] : memref<4x64x16xf32, #tpu.memory_space<vmem>>, vector<1x64x16xf32>
    %121 = vector.shape_cast %120 : vector<1x64x16xf32> to vector<64x16xf32>
    %cst_94 = arith.constant dense<0.000000e+00> : vector<8x16xf32>
    %122 = tpu.matmul %1, %121, %cst_94 {dimension_numbers = #tpu.dot_dimension_numbers<[1], [0], [0], [1], [0, 0, 1, 1], [], []>} : vector<8x64xf32>, vector<64x16xf32>, vector<8x16xf32> -> vector<8x16xf32>
    %c3_95 = arith.constant 3 : index
    %c0_96 = arith.constant 0 : index
    %c0_97 = arith.constant 0 : index
    %123 = vector.load %arg4[%c3_95, %c0_96, %c0_97] : memref<4x1x16xf32, #tpu.memory_space<vmem>>, vector<1x1x16xf32>
    %124 = vector.shape_cast %123 : vector<1x1x16xf32> to vector<1x16xf32>
    %125 = vector.broadcast %124 : vector<1x16xf32> to vector<8x16xf32>
    %126 = arith.addf %122, %125 : vector<8x16xf32>
    %cst_98 = arith.constant 2.500000e-01 : f32
    %127 = vector.broadcast %cst_98 : f32 to vector<8x16xf32>
    %128 = arith.mulf %126, %127 : vector<8x16xf32>
    %c3_99 = arith.constant 3 : index
    %c0_100 = arith.constant 0 : index
    %c0_101 = arith.constant 0 : index
    %129 = vector.load %arg5[%c3_99, %c0_100, %c0_101] : memref<4x64x16xf32, #tpu.memory_space<vmem>>, vector<1x64x16xf32>
    %130 = vector.shape_cast %129 : vector<1x64x16xf32> to vector<64x16xf32>
    %cst_102 = arith.constant dense<0.000000e+00> : vector<8x16xf32>
    %131 = tpu.matmul %3, %130, %cst_102 {dimension_numbers = #tpu.dot_dimension_numbers<[1], [0], [0], [1], [0, 0, 1, 1], [], []>} : vector<8x64xf32>, vector<64x16xf32>, vector<8x16xf32> -> vector<8x16xf32>
    %c3_103 = arith.constant 3 : index
    %c0_104 = arith.constant 0 : index
    %c0_105 = arith.constant 0 : index
    %132 = vector.load %arg6[%c3_103, %c0_104, %c0_105] : memref<4x1x16xf32, #tpu.memory_space<vmem>>, vector<1x1x16xf32>
    %133 = vector.shape_cast %132 : vector<1x1x16xf32> to vector<1x16xf32>
    %134 = vector.broadcast %133 : vector<1x16xf32> to vector<8x16xf32>
    %135 = arith.addf %131, %134 : vector<8x16xf32>
    %c3_106 = arith.constant 3 : index
    %c0_107 = arith.constant 0 : index
    %c0_108 = arith.constant 0 : index
    %136 = vector.load %arg7[%c3_106, %c0_107, %c0_108] : memref<4x64x16xf32, #tpu.memory_space<vmem>>, vector<1x64x16xf32>
    %137 = vector.shape_cast %136 : vector<1x64x16xf32> to vector<64x16xf32>
    %cst_109 = arith.constant dense<0.000000e+00> : vector<8x16xf32>
    %138 = tpu.matmul %3, %137, %cst_109 {dimension_numbers = #tpu.dot_dimension_numbers<[1], [0], [0], [1], [0, 0, 1, 1], [], []>} : vector<8x64xf32>, vector<64x16xf32>, vector<8x16xf32> -> vector<8x16xf32>
    %c3_110 = arith.constant 3 : index
    %c0_111 = arith.constant 0 : index
    %c0_112 = arith.constant 0 : index
    %139 = vector.load %arg8[%c3_110, %c0_111, %c0_112] : memref<4x1x16xf32, #tpu.memory_space<vmem>>, vector<1x1x16xf32>
    %140 = vector.shape_cast %139 : vector<1x1x16xf32> to vector<1x16xf32>
    %141 = vector.broadcast %140 : vector<1x16xf32> to vector<8x16xf32>
    %142 = arith.addf %138, %141 : vector<8x16xf32>
    %cst_113 = arith.constant dense<0.000000e+00> : vector<8x8xf32>
    %143 = tpu.matmul %128, %135, %cst_113 {dimension_numbers = #tpu.dot_dimension_numbers<[1], [1], [0], [0], [0, 0, 1, 0], [], []>} : vector<8x16xf32>, vector<8x16xf32>, vector<8x8xf32> -> vector<8x8xf32>
    %cst_114 = arith.constant dense<0xFF800000> : vector<8xf32>
    %144 = vector.multi_reduction <maximumf>, %143, %cst_114 [1] : vector<8x8xf32> to vector<8xf32>
    %145 = vector.shape_cast %144 : vector<8xf32> to vector<8x1xf32>
    %146 = vector.broadcast %145 : vector<8x1xf32> to vector<8x8xf32>
    %147 = arith.subf %143, %146 : vector<8x8xf32>
    %148 = math.exp %147 : vector<8x8xf32>
    %cst_115 = arith.constant dense<0.000000e+00> : vector<8xf32>
    %149 = vector.multi_reduction <add>, %148, %cst_115 [1] : vector<8x8xf32> to vector<8xf32>
    %150 = vector.shape_cast %149 : vector<8xf32> to vector<8x1xf32>
    %151 = tpu.reciprocal %150 {approx = true} : vector<8x1xf32> -> vector<8x1xf32>
    %152 = vector.broadcast %151 : vector<8x1xf32> to vector<8x8xf32>
    %153 = arith.mulf %148, %152 : vector<8x8xf32>
    %cst_116 = arith.constant dense<0.000000e+00> : vector<8x16xf32>
    %154 = tpu.matmul %153, %142, %cst_116 {dimension_numbers = #tpu.dot_dimension_numbers<[1], [0], [0], [1], [0, 0, 1, 1], [], []>} : vector<8x8xf32>, vector<8x16xf32>, vector<8x16xf32> -> vector<8x16xf32>
    %c3_117 = arith.constant 3 : index
    %c0_118 = arith.constant 0 : index
    %c0_119 = arith.constant 0 : index
    %155 = vector.load %arg9[%c3_117, %c0_118, %c0_119] : memref<4x16x64xf32, #tpu.memory_space<vmem>>, vector<1x16x64xf32>
    %156 = vector.shape_cast %155 : vector<1x16x64xf32> to vector<16x64xf32>
    %cst_120 = arith.constant dense<0.000000e+00> : vector<8x64xf32>
    %157 = tpu.matmul %154, %156, %cst_120 {dimension_numbers = #tpu.dot_dimension_numbers<[1], [0], [0], [1], [0, 0, 1, 1], [], []>} : vector<8x16xf32>, vector<16x64xf32>, vector<8x64xf32> -> vector<8x64xf32>
    %158 = arith.addf %119, %157 : vector<8x64xf32>
    %c0_121 = arith.constant 0 : index
    %c0_122 = arith.constant 0 : index
    %159 = vector.load %arg10[%c0_121, %c0_122] : memref<1x64xf32, #tpu.memory_space<vmem>>, vector<1x64xf32>
    %160 = vector.broadcast %159 : vector<1x64xf32> to vector<8x64xf32>
    %161 = arith.addf %158, %160 : vector<8x64xf32>
    %162 = arith.addf %1, %161 : vector<8x64xf32>
    %c0_123 = arith.constant 0 : index
    %c0_124 = arith.constant 0 : index
    %163 = vector.load %arg11[%c0_123, %c0_124] : memref<1x64xf32, #tpu.memory_space<vmem>>, vector<1x64xf32>
    %c0_125 = arith.constant 0 : index
    %c0_126 = arith.constant 0 : index
    %164 = vector.load %arg12[%c0_125, %c0_126] : memref<1x64xf32, #tpu.memory_space<vmem>>, vector<1x64xf32>
    %cst_127 = arith.constant dense<0.000000e+00> : vector<8xf32>
    %165 = vector.multi_reduction <add>, %162, %cst_127 [1] : vector<8x64xf32> to vector<8xf32>
    %166 = vector.shape_cast %165 : vector<8xf32> to vector<8x1xf32>
    %cst_128 = arith.constant 6.400000e+01 : f32
    %167 = vector.broadcast %cst_128 : f32 to vector<8x1xf32>
    %168 = arith.divf %166, %167 : vector<8x1xf32>
    %169 = vector.broadcast %168 : vector<8x1xf32> to vector<8x64xf32>
    %170 = arith.subf %162, %169 : vector<8x64xf32>
    %171 = arith.mulf %170, %170 : vector<8x64xf32>
    %cst_129 = arith.constant dense<0.000000e+00> : vector<8xf32>
    %172 = vector.multi_reduction <add>, %171, %cst_129 [1] : vector<8x64xf32> to vector<8xf32>
    %173 = vector.shape_cast %172 : vector<8xf32> to vector<8x1xf32>
    %cst_130 = arith.constant 6.400000e+01 : f32
    %174 = vector.broadcast %cst_130 : f32 to vector<8x1xf32>
    %175 = arith.divf %173, %174 : vector<8x1xf32>
    %176 = vector.broadcast %168 : vector<8x1xf32> to vector<8x64xf32>
    %177 = arith.subf %162, %176 : vector<8x64xf32>
    %cst_131 = arith.constant 9.99999974E-6 : f32
    %178 = vector.broadcast %cst_131 : f32 to vector<8x1xf32>
    %179 = arith.addf %175, %178 : vector<8x1xf32>
    %180 = math.rsqrt %179 : vector<8x1xf32>
    %181 = vector.broadcast %180 : vector<8x1xf32> to vector<8x64xf32>
    %182 = arith.mulf %177, %181 : vector<8x64xf32>
    %183 = vector.broadcast %163 : vector<1x64xf32> to vector<8x64xf32>
    %184 = arith.mulf %182, %183 : vector<8x64xf32>
    %185 = vector.broadcast %164 : vector<1x64xf32> to vector<8x64xf32>
    %186 = arith.addf %184, %185 : vector<8x64xf32>
    %c0_132 = arith.constant 0 : index
    %c0_133 = arith.constant 0 : index
    %c0_134 = arith.constant 0 : index
    %187 = vector.load %arg13[%c0_132, %c0_133, %c0_134] : memref<1x8x64xf32, #tpu.memory_space<vmem>>, vector<1x8x64xf32>
    %188 = vector.shape_cast %187 : vector<1x8x64xf32> to vector<8x64xf32>
    %189 = vector.shape_cast %186 : vector<8x64xf32> to vector<1x8x64xf32>
    tpu.vector_store %arg13[%c0_132, %c0_133, %c0_134], %189 {strides = array<i32>} : memref<1x8x64xf32, #tpu.memory_space<vmem>>, vector<1x8x64xf32>,
    return
  }
  func.func @transform_0(%arg0: i32) -> (i32, i32, i32) {
    %c0_i32 = arith.constant 0 : i32
    %c0_i32_0 = arith.constant 0 : i32
    %c0_i32_1 = arith.constant 0 : i32
    return %arg0, %c0_i32, %c0_i32_0 : i32, i32, i32
  }
  func.func @transform_1(%arg0: i32) -> (i32, i32, i32) {
    %c0_i32 = arith.constant 0 : i32
    %c0_i32_0 = arith.constant 0 : i32
    %c0_i32_1 = arith.constant 0 : i32
    return %arg0, %c0_i32, %c0_i32_0 : i32, i32, i32
  }
  func.func @transform_2(%arg0: i32) -> (i32, i32, i32) {
    %c0_i32 = arith.constant 0 : i32
    %c0_i32_0 = arith.constant 0 : i32
    %c0_i32_1 = arith.constant 0 : i32
    %c0_i32_2 = arith.constant 0 : i32
    return %c0_i32, %c0_i32_0, %c0_i32_1 : i32, i32, i32
  }
  func.func @transform_3(%arg0: i32) -> (i32, i32, i32) {
    %c0_i32 = arith.constant 0 : i32
    %c0_i32_0 = arith.constant 0 : i32
    %c0_i32_1 = arith.constant 0 : i32
    %c0_i32_2 = arith.constant 0 : i32
    return %c0_i32, %c0_i32_0, %c0_i32_1 : i32, i32, i32
  }
  func.func @transform_4(%arg0: i32) -> (i32, i32, i32) {
    %c0_i32 = arith.constant 0 : i32
    %c0_i32_0 = arith.constant 0 : i32
    %c0_i32_1 = arith.constant 0 : i32
    %c0_i32_2 = arith.constant 0 : i32
    return %c0_i32, %c0_i32_0, %c0_i32_1 : i32, i32, i32
  }
  func.func @transform_5(%arg0: i32) -> (i32, i32, i32) {
    %c0_i32 = arith.constant 0 : i32
    %c0_i32_0 = arith.constant 0 : i32
    %c0_i32_1 = arith.constant 0 : i32
    %c0_i32_2 = arith.constant 0 : i32
    return %c0_i32, %c0_i32_0, %c0_i32_1 : i32, i32, i32
  }
  func.func @transform_6(%arg0: i32) -> (i32, i32, i32) {
    %c0_i32 = arith.constant 0 : i32
    %c0_i32_0 = arith.constant 0 : i32
    %c0_i32_1 = arith.constant 0 : i32
    %c0_i32_2 = arith.constant 0 : i32
    return %c0_i32, %c0_i32_0, %c0_i32_1 : i32, i32, i32
  }
  func.func @transform_7(%arg0: i32) -> (i32, i32, i32) {
    %c0_i32 = arith.constant 0 : i32
    %c0_i32_0 = arith.constant 0 : i32
    %c0_i32_1 = arith.constant 0 : i32
    %c0_i32_2 = arith.constant 0 : i32
    return %c0_i32, %c0_i32_0, %c0_i32_1 : i32, i32, i32
  }
  func.func @transform_8(%arg0: i32) -> (i32, i32, i32) {
    %c0_i32 = arith.constant 0 : i32
    %c0_i32_0 = arith.constant 0 : i32
    %c0_i32_1 = arith.constant 0 : i32
    %c0_i32_2 = arith.constant 0 : i32
    return %c0_i32, %c0_i32_0, %c0_i32_1 : i32, i32, i32
  }
  func.func @transform_9(%arg0: i32) -> (i32, i32) {
    %c0_i32 = arith.constant 0 : i32
    %c0_i32_0 = arith.constant 0 : i32
    %c0_i32_1 = arith.constant 0 : i32
    return %c0_i32, %c0_i32_0 : i32, i32
  }
  func.func @transform_10(%arg0: i32) -> (i32, i32) {
    %c0_i32 = arith.constant 0 : i32
    %c0_i32_0 = arith.constant 0 : i32
    %c0_i32_1 = arith.constant 0 : i32
    return %c0_i32, %c0_i32_0 : i32, i32
  }
  func.func @transform_11(%arg0: i32) -> (i32, i32) {
    %c0_i32 = arith.constant 0 : i32
    %c0_i32_0 = arith.constant 0 : i32
    %c0_i32_1 = arith.constant 0 : i32
    return %c0_i32, %c0_i32_0 : i32, i32
  }
  func.func @transform_12(%arg0: i32) -> (i32, i32, i32) {
    %c0_i32 = arith.constant 0 : i32
    %c0_i32_0 = arith.constant 0 : i32
    %c0_i32_1 = arith.constant 0 : i32
    return %arg0, %c0_i32, %c0_i32_0 : i32, i32, i32
  }
}

module attributes {stable_mosaic.version = 11 : i64} {
  func.func @_backbone_kernel(%arg0: i32, %arg1: memref<1x2x4x192xf32, #tpu.memory_space<vmem>>, %arg2: memref<192x64xf32, #tpu.memory_space<vmem>>, %arg3: memref<1x64xf32, #tpu.memory_space<vmem>>, %arg4: memref<4x64xf32, #tpu.memory_space<vmem>>, %arg5: memref<1x4x64xf32, #tpu.memory_space<vmem>>) attributes {dimension_semantics = [#tpu.dimension_semantics<parallel>], iteration_bounds = array<i64: 2>, scalar_prefetch = 0 : i64, scratch_operands = 0 : i64, tpu.core_type = #tpu.core_type<tc>, window_params = [{transform_indices = @transform_0, window_bounds = array<i64: 1, 2, 4, 192>}, {pipeline_mode = #tpu.pipeline_mode<synchronous>, transform_indices = @transform_1, window_bounds = array<i64: 192, 64>}, {pipeline_mode = #tpu.pipeline_mode<synchronous>, transform_indices = @transform_2, window_bounds = array<i64: 1, 64>}, {pipeline_mode = #tpu.pipeline_mode<synchronous>, transform_indices = @transform_3, window_bounds = array<i64: 4, 64>}, {transform_indices = @transform_4, window_bounds = array<i64: 1, 4, 64>}]} {
    %c0 = arith.constant 0 : index
    %c0_0 = arith.constant 0 : index
    %c0_1 = arith.constant 0 : index
    %c0_2 = arith.constant 0 : index
    %0 = vector.load %arg1[%c0, %c0_0, %c0_1, %c0_2] : memref<1x2x4x192xf32, #tpu.memory_space<vmem>>, vector<1x2x4x192xf32>
    %1 = vector.shape_cast %0 : vector<1x2x4x192xf32> to vector<2x4x192xf32>
    %c0_3 = arith.constant 0 : index
    %c0_4 = arith.constant 0 : index
    %2 = vector.load %arg2[%c0_3, %c0_4] : memref<192x64xf32, #tpu.memory_space<vmem>>, vector<192x64xf32>
    %c0_5 = arith.constant 0 : index
    %c0_6 = arith.constant 0 : index
    %3 = vector.load %arg3[%c0_5, %c0_6] : memref<1x64xf32, #tpu.memory_space<vmem>>, vector<1x64xf32>
    %4 = vector.extract_strided_slice %1 {offsets = [0, 0, 0], sizes = [1, 4, 192], strides = [1, 1, 1]} : vector<2x4x192xf32> to vector<1x4x192xf32>
    %5 = vector.shape_cast %4 : vector<1x4x192xf32> to vector<4x192xf32>
    %cst = arith.constant dense<0.000000e+00> : vector<4x64xf32>
    %6 = tpu.matmul %5, %2, %cst {dimension_numbers = #tpu.dot_dimension_numbers<[1], [0], [0], [1], [0, 0, 1, 1], [], []>} : vector<4x192xf32>, vector<192x64xf32>, vector<4x64xf32> -> vector<4x64xf32>
    %7 = vector.broadcast %3 : vector<1x64xf32> to vector<4x64xf32>
    %8 = arith.addf %6, %7 : vector<4x64xf32>
    %9 = vector.extract_strided_slice %1 {offsets = [1, 0, 0], sizes = [1, 4, 192], strides = [1, 1, 1]} : vector<2x4x192xf32> to vector<1x4x192xf32>
    %10 = vector.shape_cast %9 : vector<1x4x192xf32> to vector<4x192xf32>
    %cst_7 = arith.constant dense<0.000000e+00> : vector<4x64xf32>
    %11 = tpu.matmul %10, %2, %cst_7 {dimension_numbers = #tpu.dot_dimension_numbers<[1], [0], [0], [1], [0, 0, 1, 1], [], []>} : vector<4x192xf32>, vector<192x64xf32>, vector<4x64xf32> -> vector<4x64xf32>
    %12 = vector.broadcast %3 : vector<1x64xf32> to vector<4x64xf32>
    %13 = arith.addf %11, %12 : vector<4x64xf32>
    %14 = arith.maximumf %8, %13 : vector<4x64xf32>
    %c0_8 = arith.constant 0 : index
    %c0_9 = arith.constant 0 : index
    %15 = vector.load %arg4[%c0_8, %c0_9] : memref<4x64xf32, #tpu.memory_space<vmem>>, vector<4x64xf32>
    %16 = arith.addf %14, %15 : vector<4x64xf32>
    %c0_10 = arith.constant 0 : index
    %c0_11 = arith.constant 0 : index
    %c0_12 = arith.constant 0 : index
    %17 = vector.load %arg5[%c0_10, %c0_11, %c0_12] : memref<1x4x64xf32, #tpu.memory_space<vmem>>, vector<1x4x64xf32>
    %18 = vector.shape_cast %17 : vector<1x4x64xf32> to vector<4x64xf32>
    %19 = vector.shape_cast %16 : vector<4x64xf32> to vector<1x4x64xf32>
    tpu.vector_store %arg5[%c0_10, %c0_11, %c0_12], %19 {strides = array<i32>} : memref<1x4x64xf32, #tpu.memory_space<vmem>>, vector<1x4x64xf32>,
    return
  }
  func.func @transform_0(%arg0: i32) -> (i32, i32, i32, i32) {
    %c0_i32 = arith.constant 0 : i32
    %c0_i32_0 = arith.constant 0 : i32
    %c0_i32_1 = arith.constant 0 : i32
    %c0_i32_2 = arith.constant 0 : i32
    return %arg0, %c0_i32, %c0_i32_0, %c0_i32_1 : i32, i32, i32, i32
  }
  func.func @transform_1(%arg0: i32) -> (i32, i32) {
    %c0_i32 = arith.constant 0 : i32
    %c0_i32_0 = arith.constant 0 : i32
    %c0_i32_1 = arith.constant 0 : i32
    return %c0_i32, %c0_i32_0 : i32, i32
  }
  func.func @transform_2(%arg0: i32) -> (i32, i32) {
    %c0_i32 = arith.constant 0 : i32
    %c0_i32_0 = arith.constant 0 : i32
    %c0_i32_1 = arith.constant 0 : i32
    return %c0_i32, %c0_i32_0 : i32, i32
  }
  func.func @transform_3(%arg0: i32) -> (i32, i32) {
    %c0_i32 = arith.constant 0 : i32
    %c0_i32_0 = arith.constant 0 : i32
    %c0_i32_1 = arith.constant 0 : i32
    return %c0_i32, %c0_i32_0 : i32, i32
  }
  func.func @transform_4(%arg0: i32) -> (i32, i32, i32) {
    %c0_i32 = arith.constant 0 : i32
    %c0_i32_0 = arith.constant 0 : i32
    %c0_i32_1 = arith.constant 0 : i32
    return %arg0, %c0_i32, %c0_i32_0 : i32, i32, i32
  }
}

module attributes {stable_mosaic.version = 11 : i64} {
  func.func @_mha_ln_kernel(%arg0: i32, %arg1: memref<1x4x64xf32, #tpu.memory_space<vmem>>, %arg2: memref<1x4x64xf32, #tpu.memory_space<vmem>>, %arg3: memref<4x64x16xf32, #tpu.memory_space<vmem>>, %arg4: memref<4x1x16xf32, #tpu.memory_space<vmem>>, %arg5: memref<4x64x16xf32, #tpu.memory_space<vmem>>, %arg6: memref<4x1x16xf32, #tpu.memory_space<vmem>>, %arg7: memref<4x64x16xf32, #tpu.memory_space<vmem>>, %arg8: memref<4x1x16xf32, #tpu.memory_space<vmem>>, %arg9: memref<4x16x64xf32, #tpu.memory_space<vmem>>, %arg10: memref<1x64xf32, #tpu.memory_space<vmem>>, %arg11: memref<1x64xf32, #tpu.memory_space<vmem>>, %arg12: memref<1x64xf32, #tpu.memory_space<vmem>>, %arg13: memref<1x4x64xf32, #tpu.memory_space<vmem>>) attributes {dimension_semantics = [#tpu.dimension_semantics<parallel>], iteration_bounds = array<i64: 2>, scalar_prefetch = 0 : i64, scratch_operands = 0 : i64, tpu.core_type = #tpu.core_type<tc>, window_params = [{transform_indices = @transform_0, window_bounds = array<i64: 1, 4, 64>}, {transform_indices = @transform_1, window_bounds = array<i64: 1, 4, 64>}, {pipeline_mode = #tpu.pipeline_mode<synchronous>, transform_indices = @transform_2, window_bounds = array<i64: 4, 64, 16>}, {pipeline_mode = #tpu.pipeline_mode<synchronous>, transform_indices = @transform_3, window_bounds = array<i64: 4, 1, 16>}, {pipeline_mode = #tpu.pipeline_mode<synchronous>, transform_indices = @transform_4, window_bounds = array<i64: 4, 64, 16>}, {pipeline_mode = #tpu.pipeline_mode<synchronous>, transform_indices = @transform_5, window_bounds = array<i64: 4, 1, 16>}, {pipeline_mode = #tpu.pipeline_mode<synchronous>, transform_indices = @transform_6, window_bounds = array<i64: 4, 64, 16>}, {pipeline_mode = #tpu.pipeline_mode<synchronous>, transform_indices = @transform_7, window_bounds = array<i64: 4, 1, 16>}, {pipeline_mode = #tpu.pipeline_mode<synchronous>, transform_indices = @transform_8, window_bounds = array<i64: 4, 16, 64>}, {pipeline_mode = #tpu.pipeline_mode<synchronous>, transform_indices = @transform_9, window_bounds = array<i64: 1, 64>}, {pipeline_mode = #tpu.pipeline_mode<synchronous>, transform_indices = @transform_10, window_bounds = array<i64: 1, 64>}, {pipeline_mode = #tpu.pipeline_mode<synchronous>, transform_indices = @transform_11, window_bounds = array<i64: 1, 64>}, {transform_indices = @transform_12, window_bounds = array<i64: 1, 4, 64>}]} {
    %c0 = arith.constant 0 : index
    %c0_0 = arith.constant 0 : index
    %c0_1 = arith.constant 0 : index
    %0 = vector.load %arg1[%c0, %c0_0, %c0_1] : memref<1x4x64xf32, #tpu.memory_space<vmem>>, vector<1x4x64xf32>
    %1 = vector.shape_cast %0 : vector<1x4x64xf32> to vector<4x64xf32>
    %c0_2 = arith.constant 0 : index
    %c0_3 = arith.constant 0 : index
    %c0_4 = arith.constant 0 : index
    %2 = vector.load %arg2[%c0_2, %c0_3, %c0_4] : memref<1x4x64xf32, #tpu.memory_space<vmem>>, vector<1x4x64xf32>
    %3 = vector.shape_cast %2 : vector<1x4x64xf32> to vector<4x64xf32>
    %c0_5 = arith.constant 0 : index
    %c0_6 = arith.constant 0 : index
    %c0_7 = arith.constant 0 : index
    %4 = vector.load %arg3[%c0_5, %c0_6, %c0_7] : memref<4x64x16xf32, #tpu.memory_space<vmem>>, vector<1x64x16xf32>
    %5 = vector.shape_cast %4 : vector<1x64x16xf32> to vector<64x16xf32>
    %cst = arith.constant dense<0.000000e+00> : vector<4x16xf32>
    %6 = tpu.matmul %1, %5, %cst {dimension_numbers = #tpu.dot_dimension_numbers<[1], [0], [0], [1], [0, 0, 1, 1], [], []>} : vector<4x64xf32>, vector<64x16xf32>, vector<4x16xf32> -> vector<4x16xf32>
    %c0_8 = arith.constant 0 : index
    %c0_9 = arith.constant 0 : index
    %c0_10 = arith.constant 0 : index
    %7 = vector.load %arg4[%c0_8, %c0_9, %c0_10] : memref<4x1x16xf32, #tpu.memory_space<vmem>>, vector<1x1x16xf32>
    %8 = vector.shape_cast %7 : vector<1x1x16xf32> to vector<1x16xf32>
    %9 = vector.broadcast %8 : vector<1x16xf32> to vector<4x16xf32>
    %10 = arith.addf %6, %9 : vector<4x16xf32>
    %cst_11 = arith.constant 2.500000e-01 : f32
    %11 = vector.broadcast %cst_11 : f32 to vector<4x16xf32>
    %12 = arith.mulf %10, %11 : vector<4x16xf32>
    %c0_12 = arith.constant 0 : index
    %c0_13 = arith.constant 0 : index
    %c0_14 = arith.constant 0 : index
    %13 = vector.load %arg5[%c0_12, %c0_13, %c0_14] : memref<4x64x16xf32, #tpu.memory_space<vmem>>, vector<1x64x16xf32>
    %14 = vector.shape_cast %13 : vector<1x64x16xf32> to vector<64x16xf32>
    %cst_15 = arith.constant dense<0.000000e+00> : vector<4x16xf32>
    %15 = tpu.matmul %3, %14, %cst_15 {dimension_numbers = #tpu.dot_dimension_numbers<[1], [0], [0], [1], [0, 0, 1, 1], [], []>} : vector<4x64xf32>, vector<64x16xf32>, vector<4x16xf32> -> vector<4x16xf32>
    %c0_16 = arith.constant 0 : index
    %c0_17 = arith.constant 0 : index
    %c0_18 = arith.constant 0 : index
    %16 = vector.load %arg6[%c0_16, %c0_17, %c0_18] : memref<4x1x16xf32, #tpu.memory_space<vmem>>, vector<1x1x16xf32>
    %17 = vector.shape_cast %16 : vector<1x1x16xf32> to vector<1x16xf32>
    %18 = vector.broadcast %17 : vector<1x16xf32> to vector<4x16xf32>
    %19 = arith.addf %15, %18 : vector<4x16xf32>
    %c0_19 = arith.constant 0 : index
    %c0_20 = arith.constant 0 : index
    %c0_21 = arith.constant 0 : index
    %20 = vector.load %arg7[%c0_19, %c0_20, %c0_21] : memref<4x64x16xf32, #tpu.memory_space<vmem>>, vector<1x64x16xf32>
    %21 = vector.shape_cast %20 : vector<1x64x16xf32> to vector<64x16xf32>
    %cst_22 = arith.constant dense<0.000000e+00> : vector<4x16xf32>
    %22 = tpu.matmul %3, %21, %cst_22 {dimension_numbers = #tpu.dot_dimension_numbers<[1], [0], [0], [1], [0, 0, 1, 1], [], []>} : vector<4x64xf32>, vector<64x16xf32>, vector<4x16xf32> -> vector<4x16xf32>
    %c0_23 = arith.constant 0 : index
    %c0_24 = arith.constant 0 : index
    %c0_25 = arith.constant 0 : index
    %23 = vector.load %arg8[%c0_23, %c0_24, %c0_25] : memref<4x1x16xf32, #tpu.memory_space<vmem>>, vector<1x1x16xf32>
    %24 = vector.shape_cast %23 : vector<1x1x16xf32> to vector<1x16xf32>
    %25 = vector.broadcast %24 : vector<1x16xf32> to vector<4x16xf32>
    %26 = arith.addf %22, %25 : vector<4x16xf32>
    %cst_26 = arith.constant dense<0.000000e+00> : vector<4x4xf32>
    %27 = tpu.matmul %12, %19, %cst_26 {dimension_numbers = #tpu.dot_dimension_numbers<[1], [1], [0], [0], [0, 0, 1, 0], [], []>} : vector<4x16xf32>, vector<4x16xf32>, vector<4x4xf32> -> vector<4x4xf32>
    %cst_27 = arith.constant dense<0xFF800000> : vector<4xf32>
    %28 = vector.multi_reduction <maximumf>, %27, %cst_27 [1] : vector<4x4xf32> to vector<4xf32>
    %29 = vector.shape_cast %28 : vector<4xf32> to vector<4x1xf32>
    %30 = vector.broadcast %29 : vector<4x1xf32> to vector<4x4xf32>
    %31 = arith.subf %27, %30 : vector<4x4xf32>
    %32 = math.exp %31 : vector<4x4xf32>
    %cst_28 = arith.constant dense<0.000000e+00> : vector<4xf32>
    %33 = vector.multi_reduction <add>, %32, %cst_28 [1] : vector<4x4xf32> to vector<4xf32>
    %34 = vector.shape_cast %33 : vector<4xf32> to vector<4x1xf32>
    %35 = tpu.reciprocal %34 {approx = true} : vector<4x1xf32> -> vector<4x1xf32>
    %36 = vector.broadcast %35 : vector<4x1xf32> to vector<4x4xf32>
    %37 = arith.mulf %32, %36 : vector<4x4xf32>
    %cst_29 = arith.constant dense<0.000000e+00> : vector<4x16xf32>
    %38 = tpu.matmul %37, %26, %cst_29 {dimension_numbers = #tpu.dot_dimension_numbers<[1], [0], [0], [1], [0, 0, 1, 1], [], []>} : vector<4x4xf32>, vector<4x16xf32>, vector<4x16xf32> -> vector<4x16xf32>
    %c0_30 = arith.constant 0 : index
    %c0_31 = arith.constant 0 : index
    %c0_32 = arith.constant 0 : index
    %39 = vector.load %arg9[%c0_30, %c0_31, %c0_32] : memref<4x16x64xf32, #tpu.memory_space<vmem>>, vector<1x16x64xf32>
    %40 = vector.shape_cast %39 : vector<1x16x64xf32> to vector<16x64xf32>
    %cst_33 = arith.constant dense<0.000000e+00> : vector<4x64xf32>
    %41 = tpu.matmul %38, %40, %cst_33 {dimension_numbers = #tpu.dot_dimension_numbers<[1], [0], [0], [1], [0, 0, 1, 1], [], []>} : vector<4x16xf32>, vector<16x64xf32>, vector<4x64xf32> -> vector<4x64xf32>
    %c1 = arith.constant 1 : index
    %c0_34 = arith.constant 0 : index
    %c0_35 = arith.constant 0 : index
    %42 = vector.load %arg3[%c1, %c0_34, %c0_35] : memref<4x64x16xf32, #tpu.memory_space<vmem>>, vector<1x64x16xf32>
    %43 = vector.shape_cast %42 : vector<1x64x16xf32> to vector<64x16xf32>
    %cst_36 = arith.constant dense<0.000000e+00> : vector<4x16xf32>
    %44 = tpu.matmul %1, %43, %cst_36 {dimension_numbers = #tpu.dot_dimension_numbers<[1], [0], [0], [1], [0, 0, 1, 1], [], []>} : vector<4x64xf32>, vector<64x16xf32>, vector<4x16xf32> -> vector<4x16xf32>
    %c1_37 = arith.constant 1 : index
    %c0_38 = arith.constant 0 : index
    %c0_39 = arith.constant 0 : index
    %45 = vector.load %arg4[%c1_37, %c0_38, %c0_39] : memref<4x1x16xf32, #tpu.memory_space<vmem>>, vector<1x1x16xf32>
    %46 = vector.shape_cast %45 : vector<1x1x16xf32> to vector<1x16xf32>
    %47 = vector.broadcast %46 : vector<1x16xf32> to vector<4x16xf32>
    %48 = arith.addf %44, %47 : vector<4x16xf32>
    %cst_40 = arith.constant 2.500000e-01 : f32
    %49 = vector.broadcast %cst_40 : f32 to vector<4x16xf32>
    %50 = arith.mulf %48, %49 : vector<4x16xf32>
    %c1_41 = arith.constant 1 : index
    %c0_42 = arith.constant 0 : index
    %c0_43 = arith.constant 0 : index
    %51 = vector.load %arg5[%c1_41, %c0_42, %c0_43] : memref<4x64x16xf32, #tpu.memory_space<vmem>>, vector<1x64x16xf32>
    %52 = vector.shape_cast %51 : vector<1x64x16xf32> to vector<64x16xf32>
    %cst_44 = arith.constant dense<0.000000e+00> : vector<4x16xf32>
    %53 = tpu.matmul %3, %52, %cst_44 {dimension_numbers = #tpu.dot_dimension_numbers<[1], [0], [0], [1], [0, 0, 1, 1], [], []>} : vector<4x64xf32>, vector<64x16xf32>, vector<4x16xf32> -> vector<4x16xf32>
    %c1_45 = arith.constant 1 : index
    %c0_46 = arith.constant 0 : index
    %c0_47 = arith.constant 0 : index
    %54 = vector.load %arg6[%c1_45, %c0_46, %c0_47] : memref<4x1x16xf32, #tpu.memory_space<vmem>>, vector<1x1x16xf32>
    %55 = vector.shape_cast %54 : vector<1x1x16xf32> to vector<1x16xf32>
    %56 = vector.broadcast %55 : vector<1x16xf32> to vector<4x16xf32>
    %57 = arith.addf %53, %56 : vector<4x16xf32>
    %c1_48 = arith.constant 1 : index
    %c0_49 = arith.constant 0 : index
    %c0_50 = arith.constant 0 : index
    %58 = vector.load %arg7[%c1_48, %c0_49, %c0_50] : memref<4x64x16xf32, #tpu.memory_space<vmem>>, vector<1x64x16xf32>
    %59 = vector.shape_cast %58 : vector<1x64x16xf32> to vector<64x16xf32>
    %cst_51 = arith.constant dense<0.000000e+00> : vector<4x16xf32>
    %60 = tpu.matmul %3, %59, %cst_51 {dimension_numbers = #tpu.dot_dimension_numbers<[1], [0], [0], [1], [0, 0, 1, 1], [], []>} : vector<4x64xf32>, vector<64x16xf32>, vector<4x16xf32> -> vector<4x16xf32>
    %c1_52 = arith.constant 1 : index
    %c0_53 = arith.constant 0 : index
    %c0_54 = arith.constant 0 : index
    %61 = vector.load %arg8[%c1_52, %c0_53, %c0_54] : memref<4x1x16xf32, #tpu.memory_space<vmem>>, vector<1x1x16xf32>
    %62 = vector.shape_cast %61 : vector<1x1x16xf32> to vector<1x16xf32>
    %63 = vector.broadcast %62 : vector<1x16xf32> to vector<4x16xf32>
    %64 = arith.addf %60, %63 : vector<4x16xf32>
    %cst_55 = arith.constant dense<0.000000e+00> : vector<4x4xf32>
    %65 = tpu.matmul %50, %57, %cst_55 {dimension_numbers = #tpu.dot_dimension_numbers<[1], [1], [0], [0], [0, 0, 1, 0], [], []>} : vector<4x16xf32>, vector<4x16xf32>, vector<4x4xf32> -> vector<4x4xf32>
    %cst_56 = arith.constant dense<0xFF800000> : vector<4xf32>
    %66 = vector.multi_reduction <maximumf>, %65, %cst_56 [1] : vector<4x4xf32> to vector<4xf32>
    %67 = vector.shape_cast %66 : vector<4xf32> to vector<4x1xf32>
    %68 = vector.broadcast %67 : vector<4x1xf32> to vector<4x4xf32>
    %69 = arith.subf %65, %68 : vector<4x4xf32>
    %70 = math.exp %69 : vector<4x4xf32>
    %cst_57 = arith.constant dense<0.000000e+00> : vector<4xf32>
    %71 = vector.multi_reduction <add>, %70, %cst_57 [1] : vector<4x4xf32> to vector<4xf32>
    %72 = vector.shape_cast %71 : vector<4xf32> to vector<4x1xf32>
    %73 = tpu.reciprocal %72 {approx = true} : vector<4x1xf32> -> vector<4x1xf32>
    %74 = vector.broadcast %73 : vector<4x1xf32> to vector<4x4xf32>
    %75 = arith.mulf %70, %74 : vector<4x4xf32>
    %cst_58 = arith.constant dense<0.000000e+00> : vector<4x16xf32>
    %76 = tpu.matmul %75, %64, %cst_58 {dimension_numbers = #tpu.dot_dimension_numbers<[1], [0], [0], [1], [0, 0, 1, 1], [], []>} : vector<4x4xf32>, vector<4x16xf32>, vector<4x16xf32> -> vector<4x16xf32>
    %c1_59 = arith.constant 1 : index
    %c0_60 = arith.constant 0 : index
    %c0_61 = arith.constant 0 : index
    %77 = vector.load %arg9[%c1_59, %c0_60, %c0_61] : memref<4x16x64xf32, #tpu.memory_space<vmem>>, vector<1x16x64xf32>
    %78 = vector.shape_cast %77 : vector<1x16x64xf32> to vector<16x64xf32>
    %cst_62 = arith.constant dense<0.000000e+00> : vector<4x64xf32>
    %79 = tpu.matmul %76, %78, %cst_62 {dimension_numbers = #tpu.dot_dimension_numbers<[1], [0], [0], [1], [0, 0, 1, 1], [], []>} : vector<4x16xf32>, vector<16x64xf32>, vector<4x64xf32> -> vector<4x64xf32>
    %80 = arith.addf %41, %79 : vector<4x64xf32>
    %c2 = arith.constant 2 : index
    %c0_63 = arith.constant 0 : index
    %c0_64 = arith.constant 0 : index
    %81 = vector.load %arg3[%c2, %c0_63, %c0_64] : memref<4x64x16xf32, #tpu.memory_space<vmem>>, vector<1x64x16xf32>
    %82 = vector.shape_cast %81 : vector<1x64x16xf32> to vector<64x16xf32>
    %cst_65 = arith.constant dense<0.000000e+00> : vector<4x16xf32>
    %83 = tpu.matmul %1, %82, %cst_65 {dimension_numbers = #tpu.dot_dimension_numbers<[1], [0], [0], [1], [0, 0, 1, 1], [], []>} : vector<4x64xf32>, vector<64x16xf32>, vector<4x16xf32> -> vector<4x16xf32>
    %c2_66 = arith.constant 2 : index
    %c0_67 = arith.constant 0 : index
    %c0_68 = arith.constant 0 : index
    %84 = vector.load %arg4[%c2_66, %c0_67, %c0_68] : memref<4x1x16xf32, #tpu.memory_space<vmem>>, vector<1x1x16xf32>
    %85 = vector.shape_cast %84 : vector<1x1x16xf32> to vector<1x16xf32>
    %86 = vector.broadcast %85 : vector<1x16xf32> to vector<4x16xf32>
    %87 = arith.addf %83, %86 : vector<4x16xf32>
    %cst_69 = arith.constant 2.500000e-01 : f32
    %88 = vector.broadcast %cst_69 : f32 to vector<4x16xf32>
    %89 = arith.mulf %87, %88 : vector<4x16xf32>
    %c2_70 = arith.constant 2 : index
    %c0_71 = arith.constant 0 : index
    %c0_72 = arith.constant 0 : index
    %90 = vector.load %arg5[%c2_70, %c0_71, %c0_72] : memref<4x64x16xf32, #tpu.memory_space<vmem>>, vector<1x64x16xf32>
    %91 = vector.shape_cast %90 : vector<1x64x16xf32> to vector<64x16xf32>
    %cst_73 = arith.constant dense<0.000000e+00> : vector<4x16xf32>
    %92 = tpu.matmul %3, %91, %cst_73 {dimension_numbers = #tpu.dot_dimension_numbers<[1], [0], [0], [1], [0, 0, 1, 1], [], []>} : vector<4x64xf32>, vector<64x16xf32>, vector<4x16xf32> -> vector<4x16xf32>
    %c2_74 = arith.constant 2 : index
    %c0_75 = arith.constant 0 : index
    %c0_76 = arith.constant 0 : index
    %93 = vector.load %arg6[%c2_74, %c0_75, %c0_76] : memref<4x1x16xf32, #tpu.memory_space<vmem>>, vector<1x1x16xf32>
    %94 = vector.shape_cast %93 : vector<1x1x16xf32> to vector<1x16xf32>
    %95 = vector.broadcast %94 : vector<1x16xf32> to vector<4x16xf32>
    %96 = arith.addf %92, %95 : vector<4x16xf32>
    %c2_77 = arith.constant 2 : index
    %c0_78 = arith.constant 0 : index
    %c0_79 = arith.constant 0 : index
    %97 = vector.load %arg7[%c2_77, %c0_78, %c0_79] : memref<4x64x16xf32, #tpu.memory_space<vmem>>, vector<1x64x16xf32>
    %98 = vector.shape_cast %97 : vector<1x64x16xf32> to vector<64x16xf32>
    %cst_80 = arith.constant dense<0.000000e+00> : vector<4x16xf32>
    %99 = tpu.matmul %3, %98, %cst_80 {dimension_numbers = #tpu.dot_dimension_numbers<[1], [0], [0], [1], [0, 0, 1, 1], [], []>} : vector<4x64xf32>, vector<64x16xf32>, vector<4x16xf32> -> vector<4x16xf32>
    %c2_81 = arith.constant 2 : index
    %c0_82 = arith.constant 0 : index
    %c0_83 = arith.constant 0 : index
    %100 = vector.load %arg8[%c2_81, %c0_82, %c0_83] : memref<4x1x16xf32, #tpu.memory_space<vmem>>, vector<1x1x16xf32>
    %101 = vector.shape_cast %100 : vector<1x1x16xf32> to vector<1x16xf32>
    %102 = vector.broadcast %101 : vector<1x16xf32> to vector<4x16xf32>
    %103 = arith.addf %99, %102 : vector<4x16xf32>
    %cst_84 = arith.constant dense<0.000000e+00> : vector<4x4xf32>
    %104 = tpu.matmul %89, %96, %cst_84 {dimension_numbers = #tpu.dot_dimension_numbers<[1], [1], [0], [0], [0, 0, 1, 0], [], []>} : vector<4x16xf32>, vector<4x16xf32>, vector<4x4xf32> -> vector<4x4xf32>
    %cst_85 = arith.constant dense<0xFF800000> : vector<4xf32>
    %105 = vector.multi_reduction <maximumf>, %104, %cst_85 [1] : vector<4x4xf32> to vector<4xf32>
    %106 = vector.shape_cast %105 : vector<4xf32> to vector<4x1xf32>
    %107 = vector.broadcast %106 : vector<4x1xf32> to vector<4x4xf32>
    %108 = arith.subf %104, %107 : vector<4x4xf32>
    %109 = math.exp %108 : vector<4x4xf32>
    %cst_86 = arith.constant dense<0.000000e+00> : vector<4xf32>
    %110 = vector.multi_reduction <add>, %109, %cst_86 [1] : vector<4x4xf32> to vector<4xf32>
    %111 = vector.shape_cast %110 : vector<4xf32> to vector<4x1xf32>
    %112 = tpu.reciprocal %111 {approx = true} : vector<4x1xf32> -> vector<4x1xf32>
    %113 = vector.broadcast %112 : vector<4x1xf32> to vector<4x4xf32>
    %114 = arith.mulf %109, %113 : vector<4x4xf32>
    %cst_87 = arith.constant dense<0.000000e+00> : vector<4x16xf32>
    %115 = tpu.matmul %114, %103, %cst_87 {dimension_numbers = #tpu.dot_dimension_numbers<[1], [0], [0], [1], [0, 0, 1, 1], [], []>} : vector<4x4xf32>, vector<4x16xf32>, vector<4x16xf32> -> vector<4x16xf32>
    %c2_88 = arith.constant 2 : index
    %c0_89 = arith.constant 0 : index
    %c0_90 = arith.constant 0 : index
    %116 = vector.load %arg9[%c2_88, %c0_89, %c0_90] : memref<4x16x64xf32, #tpu.memory_space<vmem>>, vector<1x16x64xf32>
    %117 = vector.shape_cast %116 : vector<1x16x64xf32> to vector<16x64xf32>
    %cst_91 = arith.constant dense<0.000000e+00> : vector<4x64xf32>
    %118 = tpu.matmul %115, %117, %cst_91 {dimension_numbers = #tpu.dot_dimension_numbers<[1], [0], [0], [1], [0, 0, 1, 1], [], []>} : vector<4x16xf32>, vector<16x64xf32>, vector<4x64xf32> -> vector<4x64xf32>
    %119 = arith.addf %80, %118 : vector<4x64xf32>
    %c3 = arith.constant 3 : index
    %c0_92 = arith.constant 0 : index
    %c0_93 = arith.constant 0 : index
    %120 = vector.load %arg3[%c3, %c0_92, %c0_93] : memref<4x64x16xf32, #tpu.memory_space<vmem>>, vector<1x64x16xf32>
    %121 = vector.shape_cast %120 : vector<1x64x16xf32> to vector<64x16xf32>
    %cst_94 = arith.constant dense<0.000000e+00> : vector<4x16xf32>
    %122 = tpu.matmul %1, %121, %cst_94 {dimension_numbers = #tpu.dot_dimension_numbers<[1], [0], [0], [1], [0, 0, 1, 1], [], []>} : vector<4x64xf32>, vector<64x16xf32>, vector<4x16xf32> -> vector<4x16xf32>
    %c3_95 = arith.constant 3 : index
    %c0_96 = arith.constant 0 : index
    %c0_97 = arith.constant 0 : index
    %123 = vector.load %arg4[%c3_95, %c0_96, %c0_97] : memref<4x1x16xf32, #tpu.memory_space<vmem>>, vector<1x1x16xf32>
    %124 = vector.shape_cast %123 : vector<1x1x16xf32> to vector<1x16xf32>
    %125 = vector.broadcast %124 : vector<1x16xf32> to vector<4x16xf32>
    %126 = arith.addf %122, %125 : vector<4x16xf32>
    %cst_98 = arith.constant 2.500000e-01 : f32
    %127 = vector.broadcast %cst_98 : f32 to vector<4x16xf32>
    %128 = arith.mulf %126, %127 : vector<4x16xf32>
    %c3_99 = arith.constant 3 : index
    %c0_100 = arith.constant 0 : index
    %c0_101 = arith.constant 0 : index
    %129 = vector.load %arg5[%c3_99, %c0_100, %c0_101] : memref<4x64x16xf32, #tpu.memory_space<vmem>>, vector<1x64x16xf32>
    %130 = vector.shape_cast %129 : vector<1x64x16xf32> to vector<64x16xf32>
    %cst_102 = arith.constant dense<0.000000e+00> : vector<4x16xf32>
    %131 = tpu.matmul %3, %130, %cst_102 {dimension_numbers = #tpu.dot_dimension_numbers<[1], [0], [0], [1], [0, 0, 1, 1], [], []>} : vector<4x64xf32>, vector<64x16xf32>, vector<4x16xf32> -> vector<4x16xf32>
    %c3_103 = arith.constant 3 : index
    %c0_104 = arith.constant 0 : index
    %c0_105 = arith.constant 0 : index
    %132 = vector.load %arg6[%c3_103, %c0_104, %c0_105] : memref<4x1x16xf32, #tpu.memory_space<vmem>>, vector<1x1x16xf32>
    %133 = vector.shape_cast %132 : vector<1x1x16xf32> to vector<1x16xf32>
    %134 = vector.broadcast %133 : vector<1x16xf32> to vector<4x16xf32>
    %135 = arith.addf %131, %134 : vector<4x16xf32>
    %c3_106 = arith.constant 3 : index
    %c0_107 = arith.constant 0 : index
    %c0_108 = arith.constant 0 : index
    %136 = vector.load %arg7[%c3_106, %c0_107, %c0_108] : memref<4x64x16xf32, #tpu.memory_space<vmem>>, vector<1x64x16xf32>
    %137 = vector.shape_cast %136 : vector<1x64x16xf32> to vector<64x16xf32>
    %cst_109 = arith.constant dense<0.000000e+00> : vector<4x16xf32>
    %138 = tpu.matmul %3, %137, %cst_109 {dimension_numbers = #tpu.dot_dimension_numbers<[1], [0], [0], [1], [0, 0, 1, 1], [], []>} : vector<4x64xf32>, vector<64x16xf32>, vector<4x16xf32> -> vector<4x16xf32>
    %c3_110 = arith.constant 3 : index
    %c0_111 = arith.constant 0 : index
    %c0_112 = arith.constant 0 : index
    %139 = vector.load %arg8[%c3_110, %c0_111, %c0_112] : memref<4x1x16xf32, #tpu.memory_space<vmem>>, vector<1x1x16xf32>
    %140 = vector.shape_cast %139 : vector<1x1x16xf32> to vector<1x16xf32>
    %141 = vector.broadcast %140 : vector<1x16xf32> to vector<4x16xf32>
    %142 = arith.addf %138, %141 : vector<4x16xf32>
    %cst_113 = arith.constant dense<0.000000e+00> : vector<4x4xf32>
    %143 = tpu.matmul %128, %135, %cst_113 {dimension_numbers = #tpu.dot_dimension_numbers<[1], [1], [0], [0], [0, 0, 1, 0], [], []>} : vector<4x16xf32>, vector<4x16xf32>, vector<4x4xf32> -> vector<4x4xf32>
    %cst_114 = arith.constant dense<0xFF800000> : vector<4xf32>
    %144 = vector.multi_reduction <maximumf>, %143, %cst_114 [1] : vector<4x4xf32> to vector<4xf32>
    %145 = vector.shape_cast %144 : vector<4xf32> to vector<4x1xf32>
    %146 = vector.broadcast %145 : vector<4x1xf32> to vector<4x4xf32>
    %147 = arith.subf %143, %146 : vector<4x4xf32>
    %148 = math.exp %147 : vector<4x4xf32>
    %cst_115 = arith.constant dense<0.000000e+00> : vector<4xf32>
    %149 = vector.multi_reduction <add>, %148, %cst_115 [1] : vector<4x4xf32> to vector<4xf32>
    %150 = vector.shape_cast %149 : vector<4xf32> to vector<4x1xf32>
    %151 = tpu.reciprocal %150 {approx = true} : vector<4x1xf32> -> vector<4x1xf32>
    %152 = vector.broadcast %151 : vector<4x1xf32> to vector<4x4xf32>
    %153 = arith.mulf %148, %152 : vector<4x4xf32>
    %cst_116 = arith.constant dense<0.000000e+00> : vector<4x16xf32>
    %154 = tpu.matmul %153, %142, %cst_116 {dimension_numbers = #tpu.dot_dimension_numbers<[1], [0], [0], [1], [0, 0, 1, 1], [], []>} : vector<4x4xf32>, vector<4x16xf32>, vector<4x16xf32> -> vector<4x16xf32>
    %c3_117 = arith.constant 3 : index
    %c0_118 = arith.constant 0 : index
    %c0_119 = arith.constant 0 : index
    %155 = vector.load %arg9[%c3_117, %c0_118, %c0_119] : memref<4x16x64xf32, #tpu.memory_space<vmem>>, vector<1x16x64xf32>
    %156 = vector.shape_cast %155 : vector<1x16x64xf32> to vector<16x64xf32>
    %cst_120 = arith.constant dense<0.000000e+00> : vector<4x64xf32>
    %157 = tpu.matmul %154, %156, %cst_120 {dimension_numbers = #tpu.dot_dimension_numbers<[1], [0], [0], [1], [0, 0, 1, 1], [], []>} : vector<4x16xf32>, vector<16x64xf32>, vector<4x64xf32> -> vector<4x64xf32>
    %158 = arith.addf %119, %157 : vector<4x64xf32>
    %c0_121 = arith.constant 0 : index
    %c0_122 = arith.constant 0 : index
    %159 = vector.load %arg10[%c0_121, %c0_122] : memref<1x64xf32, #tpu.memory_space<vmem>>, vector<1x64xf32>
    %160 = vector.broadcast %159 : vector<1x64xf32> to vector<4x64xf32>
    %161 = arith.addf %158, %160 : vector<4x64xf32>
    %162 = arith.addf %1, %161 : vector<4x64xf32>
    %c0_123 = arith.constant 0 : index
    %c0_124 = arith.constant 0 : index
    %163 = vector.load %arg11[%c0_123, %c0_124] : memref<1x64xf32, #tpu.memory_space<vmem>>, vector<1x64xf32>
    %c0_125 = arith.constant 0 : index
    %c0_126 = arith.constant 0 : index
    %164 = vector.load %arg12[%c0_125, %c0_126] : memref<1x64xf32, #tpu.memory_space<vmem>>, vector<1x64xf32>
    %cst_127 = arith.constant dense<0.000000e+00> : vector<4xf32>
    %165 = vector.multi_reduction <add>, %162, %cst_127 [1] : vector<4x64xf32> to vector<4xf32>
    %166 = vector.shape_cast %165 : vector<4xf32> to vector<4x1xf32>
    %cst_128 = arith.constant 6.400000e+01 : f32
    %167 = vector.broadcast %cst_128 : f32 to vector<4x1xf32>
    %168 = arith.divf %166, %167 : vector<4x1xf32>
    %169 = vector.broadcast %168 : vector<4x1xf32> to vector<4x64xf32>
    %170 = arith.subf %162, %169 : vector<4x64xf32>
    %171 = arith.mulf %170, %170 : vector<4x64xf32>
    %cst_129 = arith.constant dense<0.000000e+00> : vector<4xf32>
    %172 = vector.multi_reduction <add>, %171, %cst_129 [1] : vector<4x64xf32> to vector<4xf32>
    %173 = vector.shape_cast %172 : vector<4xf32> to vector<4x1xf32>
    %cst_130 = arith.constant 6.400000e+01 : f32
    %174 = vector.broadcast %cst_130 : f32 to vector<4x1xf32>
    %175 = arith.divf %173, %174 : vector<4x1xf32>
    %176 = vector.broadcast %168 : vector<4x1xf32> to vector<4x64xf32>
    %177 = arith.subf %162, %176 : vector<4x64xf32>
    %cst_131 = arith.constant 9.99999974E-6 : f32
    %178 = vector.broadcast %cst_131 : f32 to vector<4x1xf32>
    %179 = arith.addf %175, %178 : vector<4x1xf32>
    %180 = math.rsqrt %179 : vector<4x1xf32>
    %181 = vector.broadcast %180 : vector<4x1xf32> to vector<4x64xf32>
    %182 = arith.mulf %177, %181 : vector<4x64xf32>
    %183 = vector.broadcast %163 : vector<1x64xf32> to vector<4x64xf32>
    %184 = arith.mulf %182, %183 : vector<4x64xf32>
    %185 = vector.broadcast %164 : vector<1x64xf32> to vector<4x64xf32>
    %186 = arith.addf %184, %185 : vector<4x64xf32>
    %c0_132 = arith.constant 0 : index
    %c0_133 = arith.constant 0 : index
    %c0_134 = arith.constant 0 : index
    %187 = vector.load %arg13[%c0_132, %c0_133, %c0_134] : memref<1x4x64xf32, #tpu.memory_space<vmem>>, vector<1x4x64xf32>
    %188 = vector.shape_cast %187 : vector<1x4x64xf32> to vector<4x64xf32>
    %189 = vector.shape_cast %186 : vector<4x64xf32> to vector<1x4x64xf32>
    tpu.vector_store %arg13[%c0_132, %c0_133, %c0_134], %189 {strides = array<i32>} : memref<1x4x64xf32, #tpu.memory_space<vmem>>, vector<1x4x64xf32>,
    return
  }
  func.func @transform_0(%arg0: i32) -> (i32, i32, i32) {
    %c0_i32 = arith.constant 0 : i32
    %c0_i32_0 = arith.constant 0 : i32
    %c0_i32_1 = arith.constant 0 : i32
    return %arg0, %c0_i32, %c0_i32_0 : i32, i32, i32
  }
  func.func @transform_1(%arg0: i32) -> (i32, i32, i32) {
    %c0_i32 = arith.constant 0 : i32
    %c0_i32_0 = arith.constant 0 : i32
    %c0_i32_1 = arith.constant 0 : i32
    return %arg0, %c0_i32, %c0_i32_0 : i32, i32, i32
  }
  func.func @transform_2(%arg0: i32) -> (i32, i32, i32) {
    %c0_i32 = arith.constant 0 : i32
    %c0_i32_0 = arith.constant 0 : i32
    %c0_i32_1 = arith.constant 0 : i32
    %c0_i32_2 = arith.constant 0 : i32
    return %c0_i32, %c0_i32_0, %c0_i32_1 : i32, i32, i32
  }
  func.func @transform_3(%arg0: i32) -> (i32, i32, i32) {
    %c0_i32 = arith.constant 0 : i32
    %c0_i32_0 = arith.constant 0 : i32
    %c0_i32_1 = arith.constant 0 : i32
    %c0_i32_2 = arith.constant 0 : i32
    return %c0_i32, %c0_i32_0, %c0_i32_1 : i32, i32, i32
  }
  func.func @transform_4(%arg0: i32) -> (i32, i32, i32) {
    %c0_i32 = arith.constant 0 : i32
    %c0_i32_0 = arith.constant 0 : i32
    %c0_i32_1 = arith.constant 0 : i32
    %c0_i32_2 = arith.constant 0 : i32
    return %c0_i32, %c0_i32_0, %c0_i32_1 : i32, i32, i32
  }
  func.func @transform_5(%arg0: i32) -> (i32, i32, i32) {
    %c0_i32 = arith.constant 0 : i32
    %c0_i32_0 = arith.constant 0 : i32
    %c0_i32_1 = arith.constant 0 : i32
    %c0_i32_2 = arith.constant 0 : i32
    return %c0_i32, %c0_i32_0, %c0_i32_1 : i32, i32, i32
  }
  func.func @transform_6(%arg0: i32) -> (i32, i32, i32) {
    %c0_i32 = arith.constant 0 : i32
    %c0_i32_0 = arith.constant 0 : i32
    %c0_i32_1 = arith.constant 0 : i32
    %c0_i32_2 = arith.constant 0 : i32
    return %c0_i32, %c0_i32_0, %c0_i32_1 : i32, i32, i32
  }
  func.func @transform_7(%arg0: i32) -> (i32, i32, i32) {
    %c0_i32 = arith.constant 0 : i32
    %c0_i32_0 = arith.constant 0 : i32
    %c0_i32_1 = arith.constant 0 : i32
    %c0_i32_2 = arith.constant 0 : i32
    return %c0_i32, %c0_i32_0, %c0_i32_1 : i32, i32, i32
  }
  func.func @transform_8(%arg0: i32) -> (i32, i32, i32) {
    %c0_i32 = arith.constant 0 : i32
    %c0_i32_0 = arith.constant 0 : i32
    %c0_i32_1 = arith.constant 0 : i32
    %c0_i32_2 = arith.constant 0 : i32
    return %c0_i32, %c0_i32_0, %c0_i32_1 : i32, i32, i32
  }
  func.func @transform_9(%arg0: i32) -> (i32, i32) {
    %c0_i32 = arith.constant 0 : i32
    %c0_i32_0 = arith.constant 0 : i32
    %c0_i32_1 = arith.constant 0 : i32
    return %c0_i32, %c0_i32_0 : i32, i32
  }
  func.func @transform_10(%arg0: i32) -> (i32, i32) {
    %c0_i32 = arith.constant 0 : i32
    %c0_i32_0 = arith.constant 0 : i32
    %c0_i32_1 = arith.constant 0 : i32
    return %c0_i32, %c0_i32_0 : i32, i32
  }
  func.func @transform_11(%arg0: i32) -> (i32, i32) {
    %c0_i32 = arith.constant 0 : i32
    %c0_i32_0 = arith.constant 0 : i32
    %c0_i32_1 = arith.constant 0 : i32
    return %c0_i32, %c0_i32_0 : i32, i32
  }
  func.func @transform_12(%arg0: i32) -> (i32, i32, i32) {
    %c0_i32 = arith.constant 0 : i32
    %c0_i32_0 = arith.constant 0 : i32
    %c0_i32_1 = arith.constant 0 : i32
    return %arg0, %c0_i32, %c0_i32_0 : i32, i32, i32
  }
}

module attributes {stable_mosaic.version = 11 : i64} {
  func.func @_ffn_ln_kernel(%arg0: i32, %arg1: memref<8x64xf32, #tpu.memory_space<vmem>>, %arg2: memref<64x128xf32, #tpu.memory_space<vmem>>, %arg3: memref<1x128xf32, #tpu.memory_space<vmem>>, %arg4: memref<128x64xf32, #tpu.memory_space<vmem>>, %arg5: memref<1x64xf32, #tpu.memory_space<vmem>>, %arg6: memref<1x64xf32, #tpu.memory_space<vmem>>, %arg7: memref<1x64xf32, #tpu.memory_space<vmem>>, %arg8: memref<8x64xf32, #tpu.memory_space<vmem>>) attributes {dimension_semantics = [#tpu.dimension_semantics<parallel>], iteration_bounds = array<i64: 1>, scalar_prefetch = 0 : i64, scratch_operands = 0 : i64, tpu.core_type = #tpu.core_type<tc>, window_params = [{transform_indices = @transform_0, window_bounds = array<i64: 8, 64>}, {pipeline_mode = #tpu.pipeline_mode<synchronous>, transform_indices = @transform_1, window_bounds = array<i64: 64, 128>}, {pipeline_mode = #tpu.pipeline_mode<synchronous>, transform_indices = @transform_2, window_bounds = array<i64: 1, 128>}, {pipeline_mode = #tpu.pipeline_mode<synchronous>, transform_indices = @transform_3, window_bounds = array<i64: 128, 64>}, {pipeline_mode = #tpu.pipeline_mode<synchronous>, transform_indices = @transform_4, window_bounds = array<i64: 1, 64>}, {pipeline_mode = #tpu.pipeline_mode<synchronous>, transform_indices = @transform_5, window_bounds = array<i64: 1, 64>}, {pipeline_mode = #tpu.pipeline_mode<synchronous>, transform_indices = @transform_6, window_bounds = array<i64: 1, 64>}, {transform_indices = @transform_7, window_bounds = array<i64: 8, 64>}]} {
    %c0 = arith.constant 0 : index
    %c0_0 = arith.constant 0 : index
    %0 = vector.load %arg1[%c0, %c0_0] : memref<8x64xf32, #tpu.memory_space<vmem>>, vector<8x64xf32>
    %c0_1 = arith.constant 0 : index
    %c0_2 = arith.constant 0 : index
    %1 = vector.load %arg2[%c0_1, %c0_2] : memref<64x128xf32, #tpu.memory_space<vmem>>, vector<64x128xf32>
    %cst = arith.constant dense<0.000000e+00> : vector<8x128xf32>
    %2 = tpu.matmul %0, %1, %cst {dimension_numbers = #tpu.dot_dimension_numbers<[1], [0], [0], [1], [0, 0, 1, 1], [], []>} : vector<8x64xf32>, vector<64x128xf32>, vector<8x128xf32> -> vector<8x128xf32>
    %c0_3 = arith.constant 0 : index
    %c0_4 = arith.constant 0 : index
    %3 = vector.load %arg3[%c0_3, %c0_4] : memref<1x128xf32, #tpu.memory_space<vmem>>, vector<1x128xf32>
    %4 = vector.broadcast %3 : vector<1x128xf32> to vector<8x128xf32>
    %5 = arith.addf %2, %4 : vector<8x128xf32>
    %cst_5 = arith.constant 0.000000e+00 : f32
    %6 = vector.broadcast %cst_5 : f32 to vector<8x128xf32>
    %7 = arith.maximumf %5, %6 : vector<8x128xf32>
    %c0_6 = arith.constant 0 : index
    %c0_7 = arith.constant 0 : index
    %8 = vector.load %arg4[%c0_6, %c0_7] : memref<128x64xf32, #tpu.memory_space<vmem>>, vector<128x64xf32>
    %cst_8 = arith.constant dense<0.000000e+00> : vector<8x64xf32>
    %9 = tpu.matmul %7, %8, %cst_8 {dimension_numbers = #tpu.dot_dimension_numbers<[1], [0], [0], [1], [0, 0, 1, 1], [], []>} : vector<8x128xf32>, vector<128x64xf32>, vector<8x64xf32> -> vector<8x64xf32>
    %10 = arith.addf %0, %9 : vector<8x64xf32>
    %c0_9 = arith.constant 0 : index
    %c0_10 = arith.constant 0 : index
    %11 = vector.load %arg5[%c0_9, %c0_10] : memref<1x64xf32, #tpu.memory_space<vmem>>, vector<1x64xf32>
    %12 = vector.broadcast %11 : vector<1x64xf32> to vector<8x64xf32>
    %13 = arith.addf %10, %12 : vector<8x64xf32>
    %c0_11 = arith.constant 0 : index
    %c0_12 = arith.constant 0 : index
    %14 = vector.load %arg6[%c0_11, %c0_12] : memref<1x64xf32, #tpu.memory_space<vmem>>, vector<1x64xf32>
    %c0_13 = arith.constant 0 : index
    %c0_14 = arith.constant 0 : index
    %15 = vector.load %arg7[%c0_13, %c0_14] : memref<1x64xf32, #tpu.memory_space<vmem>>, vector<1x64xf32>
    %cst_15 = arith.constant dense<0.000000e+00> : vector<8xf32>
    %16 = vector.multi_reduction <add>, %13, %cst_15 [1] : vector<8x64xf32> to vector<8xf32>
    %17 = vector.shape_cast %16 : vector<8xf32> to vector<8x1xf32>
    %cst_16 = arith.constant 6.400000e+01 : f32
    %18 = vector.broadcast %cst_16 : f32 to vector<8x1xf32>
    %19 = arith.divf %17, %18 : vector<8x1xf32>
    %20 = vector.broadcast %19 : vector<8x1xf32> to vector<8x64xf32>
    %21 = arith.subf %13, %20 : vector<8x64xf32>
    %22 = arith.mulf %21, %21 : vector<8x64xf32>
    %cst_17 = arith.constant dense<0.000000e+00> : vector<8xf32>
    %23 = vector.multi_reduction <add>, %22, %cst_17 [1] : vector<8x64xf32> to vector<8xf32>
    %24 = vector.shape_cast %23 : vector<8xf32> to vector<8x1xf32>
    %cst_18 = arith.constant 6.400000e+01 : f32
    %25 = vector.broadcast %cst_18 : f32 to vector<8x1xf32>
    %26 = arith.divf %24, %25 : vector<8x1xf32>
    %27 = vector.broadcast %19 : vector<8x1xf32> to vector<8x64xf32>
    %28 = arith.subf %13, %27 : vector<8x64xf32>
    %cst_19 = arith.constant 9.99999974E-6 : f32
    %29 = vector.broadcast %cst_19 : f32 to vector<8x1xf32>
    %30 = arith.addf %26, %29 : vector<8x1xf32>
    %31 = math.rsqrt %30 : vector<8x1xf32>
    %32 = vector.broadcast %31 : vector<8x1xf32> to vector<8x64xf32>
    %33 = arith.mulf %28, %32 : vector<8x64xf32>
    %34 = vector.broadcast %14 : vector<1x64xf32> to vector<8x64xf32>
    %35 = arith.mulf %33, %34 : vector<8x64xf32>
    %36 = vector.broadcast %15 : vector<1x64xf32> to vector<8x64xf32>
    %37 = arith.addf %35, %36 : vector<8x64xf32>
    %c0_20 = arith.constant 0 : index
    %c0_21 = arith.constant 0 : index
    %38 = vector.load %arg8[%c0_20, %c0_21] : memref<8x64xf32, #tpu.memory_space<vmem>>, vector<8x64xf32>
    tpu.vector_store %arg8[%c0_20, %c0_21], %37 {strides = array<i32>} : memref<8x64xf32, #tpu.memory_space<vmem>>, vector<8x64xf32>,
    return
  }
  func.func @transform_0(%arg0: i32) -> (i32, i32) {
    %c0_i32 = arith.constant 0 : i32
    %c0_i32_0 = arith.constant 0 : i32
    return %arg0, %c0_i32 : i32, i32
  }
  func.func @transform_1(%arg0: i32) -> (i32, i32) {
    %c0_i32 = arith.constant 0 : i32
    %c0_i32_0 = arith.constant 0 : i32
    %c0_i32_1 = arith.constant 0 : i32
    return %c0_i32, %c0_i32_0 : i32, i32
  }
  func.func @transform_2(%arg0: i32) -> (i32, i32) {
    %c0_i32 = arith.constant 0 : i32
    %c0_i32_0 = arith.constant 0 : i32
    %c0_i32_1 = arith.constant 0 : i32
    return %c0_i32, %c0_i32_0 : i32, i32
  }
  func.func @transform_3(%arg0: i32) -> (i32, i32) {
    %c0_i32 = arith.constant 0 : i32
    %c0_i32_0 = arith.constant 0 : i32
    %c0_i32_1 = arith.constant 0 : i32
    return %c0_i32, %c0_i32_0 : i32, i32
  }
  func.func @transform_4(%arg0: i32) -> (i32, i32) {
    %c0_i32 = arith.constant 0 : i32
    %c0_i32_0 = arith.constant 0 : i32
    %c0_i32_1 = arith.constant 0 : i32
    return %c0_i32, %c0_i32_0 : i32, i32
  }
  func.func @transform_5(%arg0: i32) -> (i32, i32) {
    %c0_i32 = arith.constant 0 : i32
    %c0_i32_0 = arith.constant 0 : i32
    %c0_i32_1 = arith.constant 0 : i32
    return %c0_i32, %c0_i32_0 : i32, i32
  }
  func.func @transform_6(%arg0: i32) -> (i32, i32) {
    %c0_i32 = arith.constant 0 : i32
    %c0_i32_0 = arith.constant 0 : i32
    %c0_i32_1 = arith.constant 0 : i32
    return %c0_i32, %c0_i32_0 : i32, i32
  }
  func.func @transform_7(%arg0: i32) -> (i32, i32) {
    %c0_i32 = arith.constant 0 : i32
    %c0_i32_0 = arith.constant 0 : i32
    return %arg0, %c0_i32 : i32, i32
  }
}

module attributes {stable_mosaic.version = 11 : i64} {
  func.func @_ln_kernel(%arg0: i32, %arg1: memref<8x64xf32, #tpu.memory_space<vmem>>, %arg2: memref<1x64xf32, #tpu.memory_space<vmem>>, %arg3: memref<1x64xf32, #tpu.memory_space<vmem>>, %arg4: memref<8x64xf32, #tpu.memory_space<vmem>>) attributes {dimension_semantics = [#tpu.dimension_semantics<parallel>], iteration_bounds = array<i64: 1>, scalar_prefetch = 0 : i64, scratch_operands = 0 : i64, tpu.core_type = #tpu.core_type<tc>, window_params = [{transform_indices = @transform_0, window_bounds = array<i64: 8, 64>}, {pipeline_mode = #tpu.pipeline_mode<synchronous>, transform_indices = @transform_1, window_bounds = array<i64: 1, 64>}, {pipeline_mode = #tpu.pipeline_mode<synchronous>, transform_indices = @transform_2, window_bounds = array<i64: 1, 64>}, {transform_indices = @transform_3, window_bounds = array<i64: 8, 64>}]} {
    %c0 = arith.constant 0 : index
    %c0_0 = arith.constant 0 : index
    %0 = vector.load %arg1[%c0, %c0_0] : memref<8x64xf32, #tpu.memory_space<vmem>>, vector<8x64xf32>
    %c0_1 = arith.constant 0 : index
    %c0_2 = arith.constant 0 : index
    %1 = vector.load %arg2[%c0_1, %c0_2] : memref<1x64xf32, #tpu.memory_space<vmem>>, vector<1x64xf32>
    %c0_3 = arith.constant 0 : index
    %c0_4 = arith.constant 0 : index
    %2 = vector.load %arg3[%c0_3, %c0_4] : memref<1x64xf32, #tpu.memory_space<vmem>>, vector<1x64xf32>
    %cst = arith.constant dense<0.000000e+00> : vector<8xf32>
    %3 = vector.multi_reduction <add>, %0, %cst [1] : vector<8x64xf32> to vector<8xf32>
    %4 = vector.shape_cast %3 : vector<8xf32> to vector<8x1xf32>
    %cst_5 = arith.constant 6.400000e+01 : f32
    %5 = vector.broadcast %cst_5 : f32 to vector<8x1xf32>
    %6 = arith.divf %4, %5 : vector<8x1xf32>
    %7 = vector.broadcast %6 : vector<8x1xf32> to vector<8x64xf32>
    %8 = arith.subf %0, %7 : vector<8x64xf32>
    %9 = arith.mulf %8, %8 : vector<8x64xf32>
    %cst_6 = arith.constant dense<0.000000e+00> : vector<8xf32>
    %10 = vector.multi_reduction <add>, %9, %cst_6 [1] : vector<8x64xf32> to vector<8xf32>
    %11 = vector.shape_cast %10 : vector<8xf32> to vector<8x1xf32>
    %cst_7 = arith.constant 6.400000e+01 : f32
    %12 = vector.broadcast %cst_7 : f32 to vector<8x1xf32>
    %13 = arith.divf %11, %12 : vector<8x1xf32>
    %14 = vector.broadcast %6 : vector<8x1xf32> to vector<8x64xf32>
    %15 = arith.subf %0, %14 : vector<8x64xf32>
    %cst_8 = arith.constant 9.99999974E-6 : f32
    %16 = vector.broadcast %cst_8 : f32 to vector<8x1xf32>
    %17 = arith.addf %13, %16 : vector<8x1xf32>
    %18 = math.rsqrt %17 : vector<8x1xf32>
    %19 = vector.broadcast %18 : vector<8x1xf32> to vector<8x64xf32>
    %20 = arith.mulf %15, %19 : vector<8x64xf32>
    %21 = vector.broadcast %1 : vector<1x64xf32> to vector<8x64xf32>
    %22 = arith.mulf %20, %21 : vector<8x64xf32>
    %23 = vector.broadcast %2 : vector<1x64xf32> to vector<8x64xf32>
    %24 = arith.addf %22, %23 : vector<8x64xf32>
    %c0_9 = arith.constant 0 : index
    %c0_10 = arith.constant 0 : index
    %25 = vector.load %arg4[%c0_9, %c0_10] : memref<8x64xf32, #tpu.memory_space<vmem>>, vector<8x64xf32>
    tpu.vector_store %arg4[%c0_9, %c0_10], %24 {strides = array<i32>} : memref<8x64xf32, #tpu.memory_space<vmem>>, vector<8x64xf32>,
    return
  }
  func.func @transform_0(%arg0: i32) -> (i32, i32) {
    %c0_i32 = arith.constant 0 : i32
    %c0_i32_0 = arith.constant 0 : i32
    return %arg0, %c0_i32 : i32, i32
  }
  func.func @transform_1(%arg0: i32) -> (i32, i32) {
    %c0_i32 = arith.constant 0 : i32
    %c0_i32_0 = arith.constant 0 : i32
    %c0_i32_1 = arith.constant 0 : i32
    return %c0_i32, %c0_i32_0 : i32, i32
  }
  func.func @transform_2(%arg0: i32) -> (i32, i32) {
    %c0_i32 = arith.constant 0 : i32
    %c0_i32_0 = arith.constant 0 : i32
    %c0_i32_1 = arith.constant 0 : i32
    return %c0_i32, %c0_i32_0 : i32, i32
  }
  func.func @transform_3(%arg0: i32) -> (i32, i32) {
    %c0_i32 = arith.constant 0 : i32
    %c0_i32_0 = arith.constant 0 : i32
    return %arg0, %c0_i32 : i32, i32
  }
}

module attributes {stable_mosaic.version = 11 : i64} {
  func.func @_mha_ln_kernel(%arg0: i32, %arg1: memref<1x8x64xf32, #tpu.memory_space<vmem>>, %arg2: memref<1x4x64xf32, #tpu.memory_space<vmem>>, %arg3: memref<4x64x16xf32, #tpu.memory_space<vmem>>, %arg4: memref<4x1x16xf32, #tpu.memory_space<vmem>>, %arg5: memref<4x64x16xf32, #tpu.memory_space<vmem>>, %arg6: memref<4x1x16xf32, #tpu.memory_space<vmem>>, %arg7: memref<4x64x16xf32, #tpu.memory_space<vmem>>, %arg8: memref<4x1x16xf32, #tpu.memory_space<vmem>>, %arg9: memref<4x16x64xf32, #tpu.memory_space<vmem>>, %arg10: memref<1x64xf32, #tpu.memory_space<vmem>>, %arg11: memref<1x64xf32, #tpu.memory_space<vmem>>, %arg12: memref<1x64xf32, #tpu.memory_space<vmem>>, %arg13: memref<1x8x64xf32, #tpu.memory_space<vmem>>) attributes {dimension_semantics = [#tpu.dimension_semantics<parallel>], iteration_bounds = array<i64: 2>, scalar_prefetch = 0 : i64, scratch_operands = 0 : i64, tpu.core_type = #tpu.core_type<tc>, window_params = [{transform_indices = @transform_0, window_bounds = array<i64: 1, 8, 64>}, {transform_indices = @transform_1, window_bounds = array<i64: 1, 4, 64>}, {pipeline_mode = #tpu.pipeline_mode<synchronous>, transform_indices = @transform_2, window_bounds = array<i64: 4, 64, 16>}, {pipeline_mode = #tpu.pipeline_mode<synchronous>, transform_indices = @transform_3, window_bounds = array<i64: 4, 1, 16>}, {pipeline_mode = #tpu.pipeline_mode<synchronous>, transform_indices = @transform_4, window_bounds = array<i64: 4, 64, 16>}, {pipeline_mode = #tpu.pipeline_mode<synchronous>, transform_indices = @transform_5, window_bounds = array<i64: 4, 1, 16>}, {pipeline_mode = #tpu.pipeline_mode<synchronous>, transform_indices = @transform_6, window_bounds = array<i64: 4, 64, 16>}, {pipeline_mode = #tpu.pipeline_mode<synchronous>, transform_indices = @transform_7, window_bounds = array<i64: 4, 1, 16>}, {pipeline_mode = #tpu.pipeline_mode<synchronous>, transform_indices = @transform_8, window_bounds = array<i64: 4, 16, 64>}, {pipeline_mode = #tpu.pipeline_mode<synchronous>, transform_indices = @transform_9, window_bounds = array<i64: 1, 64>}, {pipeline_mode = #tpu.pipeline_mode<synchronous>, transform_indices = @transform_10, window_bounds = array<i64: 1, 64>}, {pipeline_mode = #tpu.pipeline_mode<synchronous>, transform_indices = @transform_11, window_bounds = array<i64: 1, 64>}, {transform_indices = @transform_12, window_bounds = array<i64: 1, 8, 64>}]} {
    %c0 = arith.constant 0 : index
    %c0_0 = arith.constant 0 : index
    %c0_1 = arith.constant 0 : index
    %0 = vector.load %arg1[%c0, %c0_0, %c0_1] : memref<1x8x64xf32, #tpu.memory_space<vmem>>, vector<1x8x64xf32>
    %1 = vector.shape_cast %0 : vector<1x8x64xf32> to vector<8x64xf32>
    %c0_2 = arith.constant 0 : index
    %c0_3 = arith.constant 0 : index
    %c0_4 = arith.constant 0 : index
    %2 = vector.load %arg2[%c0_2, %c0_3, %c0_4] : memref<1x4x64xf32, #tpu.memory_space<vmem>>, vector<1x4x64xf32>
    %3 = vector.shape_cast %2 : vector<1x4x64xf32> to vector<4x64xf32>
    %c0_5 = arith.constant 0 : index
    %c0_6 = arith.constant 0 : index
    %c0_7 = arith.constant 0 : index
    %4 = vector.load %arg3[%c0_5, %c0_6, %c0_7] : memref<4x64x16xf32, #tpu.memory_space<vmem>>, vector<1x64x16xf32>
    %5 = vector.shape_cast %4 : vector<1x64x16xf32> to vector<64x16xf32>
    %cst = arith.constant dense<0.000000e+00> : vector<8x16xf32>
    %6 = tpu.matmul %1, %5, %cst {dimension_numbers = #tpu.dot_dimension_numbers<[1], [0], [0], [1], [0, 0, 1, 1], [], []>} : vector<8x64xf32>, vector<64x16xf32>, vector<8x16xf32> -> vector<8x16xf32>
    %c0_8 = arith.constant 0 : index
    %c0_9 = arith.constant 0 : index
    %c0_10 = arith.constant 0 : index
    %7 = vector.load %arg4[%c0_8, %c0_9, %c0_10] : memref<4x1x16xf32, #tpu.memory_space<vmem>>, vector<1x1x16xf32>
    %8 = vector.shape_cast %7 : vector<1x1x16xf32> to vector<1x16xf32>
    %9 = vector.broadcast %8 : vector<1x16xf32> to vector<8x16xf32>
    %10 = arith.addf %6, %9 : vector<8x16xf32>
    %cst_11 = arith.constant 2.500000e-01 : f32
    %11 = vector.broadcast %cst_11 : f32 to vector<8x16xf32>
    %12 = arith.mulf %10, %11 : vector<8x16xf32>
    %c0_12 = arith.constant 0 : index
    %c0_13 = arith.constant 0 : index
    %c0_14 = arith.constant 0 : index
    %13 = vector.load %arg5[%c0_12, %c0_13, %c0_14] : memref<4x64x16xf32, #tpu.memory_space<vmem>>, vector<1x64x16xf32>
    %14 = vector.shape_cast %13 : vector<1x64x16xf32> to vector<64x16xf32>
    %cst_15 = arith.constant dense<0.000000e+00> : vector<4x16xf32>
    %15 = tpu.matmul %3, %14, %cst_15 {dimension_numbers = #tpu.dot_dimension_numbers<[1], [0], [0], [1], [0, 0, 1, 1], [], []>} : vector<4x64xf32>, vector<64x16xf32>, vector<4x16xf32> -> vector<4x16xf32>
    %c0_16 = arith.constant 0 : index
    %c0_17 = arith.constant 0 : index
    %c0_18 = arith.constant 0 : index
    %16 = vector.load %arg6[%c0_16, %c0_17, %c0_18] : memref<4x1x16xf32, #tpu.memory_space<vmem>>, vector<1x1x16xf32>
    %17 = vector.shape_cast %16 : vector<1x1x16xf32> to vector<1x16xf32>
    %18 = vector.broadcast %17 : vector<1x16xf32> to vector<4x16xf32>
    %19 = arith.addf %15, %18 : vector<4x16xf32>
    %c0_19 = arith.constant 0 : index
    %c0_20 = arith.constant 0 : index
    %c0_21 = arith.constant 0 : index
    %20 = vector.load %arg7[%c0_19, %c0_20, %c0_21] : memref<4x64x16xf32, #tpu.memory_space<vmem>>, vector<1x64x16xf32>
    %21 = vector.shape_cast %20 : vector<1x64x16xf32> to vector<64x16xf32>
    %cst_22 = arith.constant dense<0.000000e+00> : vector<4x16xf32>
    %22 = tpu.matmul %3, %21, %cst_22 {dimension_numbers = #tpu.dot_dimension_numbers<[1], [0], [0], [1], [0, 0, 1, 1], [], []>} : vector<4x64xf32>, vector<64x16xf32>, vector<4x16xf32> -> vector<4x16xf32>
    %c0_23 = arith.constant 0 : index
    %c0_24 = arith.constant 0 : index
    %c0_25 = arith.constant 0 : index
    %23 = vector.load %arg8[%c0_23, %c0_24, %c0_25] : memref<4x1x16xf32, #tpu.memory_space<vmem>>, vector<1x1x16xf32>
    %24 = vector.shape_cast %23 : vector<1x1x16xf32> to vector<1x16xf32>
    %25 = vector.broadcast %24 : vector<1x16xf32> to vector<4x16xf32>
    %26 = arith.addf %22, %25 : vector<4x16xf32>
    %cst_26 = arith.constant dense<0.000000e+00> : vector<8x4xf32>
    %27 = tpu.matmul %12, %19, %cst_26 {dimension_numbers = #tpu.dot_dimension_numbers<[1], [1], [0], [0], [0, 0, 1, 0], [], []>} : vector<8x16xf32>, vector<4x16xf32>, vector<8x4xf32> -> vector<8x4xf32>
    %cst_27 = arith.constant dense<0xFF800000> : vector<8xf32>
    %28 = vector.multi_reduction <maximumf>, %27, %cst_27 [1] : vector<8x4xf32> to vector<8xf32>
    %29 = vector.shape_cast %28 : vector<8xf32> to vector<8x1xf32>
    %30 = vector.broadcast %29 : vector<8x1xf32> to vector<8x4xf32>
    %31 = arith.subf %27, %30 : vector<8x4xf32>
    %32 = math.exp %31 : vector<8x4xf32>
    %cst_28 = arith.constant dense<0.000000e+00> : vector<8xf32>
    %33 = vector.multi_reduction <add>, %32, %cst_28 [1] : vector<8x4xf32> to vector<8xf32>
    %34 = vector.shape_cast %33 : vector<8xf32> to vector<8x1xf32>
    %35 = tpu.reciprocal %34 {approx = true} : vector<8x1xf32> -> vector<8x1xf32>
    %36 = vector.broadcast %35 : vector<8x1xf32> to vector<8x4xf32>
    %37 = arith.mulf %32, %36 : vector<8x4xf32>
    %cst_29 = arith.constant dense<0.000000e+00> : vector<8x16xf32>
    %38 = tpu.matmul %37, %26, %cst_29 {dimension_numbers = #tpu.dot_dimension_numbers<[1], [0], [0], [1], [0, 0, 1, 1], [], []>} : vector<8x4xf32>, vector<4x16xf32>, vector<8x16xf32> -> vector<8x16xf32>
    %c0_30 = arith.constant 0 : index
    %c0_31 = arith.constant 0 : index
    %c0_32 = arith.constant 0 : index
    %39 = vector.load %arg9[%c0_30, %c0_31, %c0_32] : memref<4x16x64xf32, #tpu.memory_space<vmem>>, vector<1x16x64xf32>
    %40 = vector.shape_cast %39 : vector<1x16x64xf32> to vector<16x64xf32>
    %cst_33 = arith.constant dense<0.000000e+00> : vector<8x64xf32>
    %41 = tpu.matmul %38, %40, %cst_33 {dimension_numbers = #tpu.dot_dimension_numbers<[1], [0], [0], [1], [0, 0, 1, 1], [], []>} : vector<8x16xf32>, vector<16x64xf32>, vector<8x64xf32> -> vector<8x64xf32>
    %c1 = arith.constant 1 : index
    %c0_34 = arith.constant 0 : index
    %c0_35 = arith.constant 0 : index
    %42 = vector.load %arg3[%c1, %c0_34, %c0_35] : memref<4x64x16xf32, #tpu.memory_space<vmem>>, vector<1x64x16xf32>
    %43 = vector.shape_cast %42 : vector<1x64x16xf32> to vector<64x16xf32>
    %cst_36 = arith.constant dense<0.000000e+00> : vector<8x16xf32>
    %44 = tpu.matmul %1, %43, %cst_36 {dimension_numbers = #tpu.dot_dimension_numbers<[1], [0], [0], [1], [0, 0, 1, 1], [], []>} : vector<8x64xf32>, vector<64x16xf32>, vector<8x16xf32> -> vector<8x16xf32>
    %c1_37 = arith.constant 1 : index
    %c0_38 = arith.constant 0 : index
    %c0_39 = arith.constant 0 : index
    %45 = vector.load %arg4[%c1_37, %c0_38, %c0_39] : memref<4x1x16xf32, #tpu.memory_space<vmem>>, vector<1x1x16xf32>
    %46 = vector.shape_cast %45 : vector<1x1x16xf32> to vector<1x16xf32>
    %47 = vector.broadcast %46 : vector<1x16xf32> to vector<8x16xf32>
    %48 = arith.addf %44, %47 : vector<8x16xf32>
    %cst_40 = arith.constant 2.500000e-01 : f32
    %49 = vector.broadcast %cst_40 : f32 to vector<8x16xf32>
    %50 = arith.mulf %48, %49 : vector<8x16xf32>
    %c1_41 = arith.constant 1 : index
    %c0_42 = arith.constant 0 : index
    %c0_43 = arith.constant 0 : index
    %51 = vector.load %arg5[%c1_41, %c0_42, %c0_43] : memref<4x64x16xf32, #tpu.memory_space<vmem>>, vector<1x64x16xf32>
    %52 = vector.shape_cast %51 : vector<1x64x16xf32> to vector<64x16xf32>
    %cst_44 = arith.constant dense<0.000000e+00> : vector<4x16xf32>
    %53 = tpu.matmul %3, %52, %cst_44 {dimension_numbers = #tpu.dot_dimension_numbers<[1], [0], [0], [1], [0, 0, 1, 1], [], []>} : vector<4x64xf32>, vector<64x16xf32>, vector<4x16xf32> -> vector<4x16xf32>
    %c1_45 = arith.constant 1 : index
    %c0_46 = arith.constant 0 : index
    %c0_47 = arith.constant 0 : index
    %54 = vector.load %arg6[%c1_45, %c0_46, %c0_47] : memref<4x1x16xf32, #tpu.memory_space<vmem>>, vector<1x1x16xf32>
    %55 = vector.shape_cast %54 : vector<1x1x16xf32> to vector<1x16xf32>
    %56 = vector.broadcast %55 : vector<1x16xf32> to vector<4x16xf32>
    %57 = arith.addf %53, %56 : vector<4x16xf32>
    %c1_48 = arith.constant 1 : index
    %c0_49 = arith.constant 0 : index
    %c0_50 = arith.constant 0 : index
    %58 = vector.load %arg7[%c1_48, %c0_49, %c0_50] : memref<4x64x16xf32, #tpu.memory_space<vmem>>, vector<1x64x16xf32>
    %59 = vector.shape_cast %58 : vector<1x64x16xf32> to vector<64x16xf32>
    %cst_51 = arith.constant dense<0.000000e+00> : vector<4x16xf32>
    %60 = tpu.matmul %3, %59, %cst_51 {dimension_numbers = #tpu.dot_dimension_numbers<[1], [0], [0], [1], [0, 0, 1, 1], [], []>} : vector<4x64xf32>, vector<64x16xf32>, vector<4x16xf32> -> vector<4x16xf32>
    %c1_52 = arith.constant 1 : index
    %c0_53 = arith.constant 0 : index
    %c0_54 = arith.constant 0 : index
    %61 = vector.load %arg8[%c1_52, %c0_53, %c0_54] : memref<4x1x16xf32, #tpu.memory_space<vmem>>, vector<1x1x16xf32>
    %62 = vector.shape_cast %61 : vector<1x1x16xf32> to vector<1x16xf32>
    %63 = vector.broadcast %62 : vector<1x16xf32> to vector<4x16xf32>
    %64 = arith.addf %60, %63 : vector<4x16xf32>
    %cst_55 = arith.constant dense<0.000000e+00> : vector<8x4xf32>
    %65 = tpu.matmul %50, %57, %cst_55 {dimension_numbers = #tpu.dot_dimension_numbers<[1], [1], [0], [0], [0, 0, 1, 0], [], []>} : vector<8x16xf32>, vector<4x16xf32>, vector<8x4xf32> -> vector<8x4xf32>
    %cst_56 = arith.constant dense<0xFF800000> : vector<8xf32>
    %66 = vector.multi_reduction <maximumf>, %65, %cst_56 [1] : vector<8x4xf32> to vector<8xf32>
    %67 = vector.shape_cast %66 : vector<8xf32> to vector<8x1xf32>
    %68 = vector.broadcast %67 : vector<8x1xf32> to vector<8x4xf32>
    %69 = arith.subf %65, %68 : vector<8x4xf32>
    %70 = math.exp %69 : vector<8x4xf32>
    %cst_57 = arith.constant dense<0.000000e+00> : vector<8xf32>
    %71 = vector.multi_reduction <add>, %70, %cst_57 [1] : vector<8x4xf32> to vector<8xf32>
    %72 = vector.shape_cast %71 : vector<8xf32> to vector<8x1xf32>
    %73 = tpu.reciprocal %72 {approx = true} : vector<8x1xf32> -> vector<8x1xf32>
    %74 = vector.broadcast %73 : vector<8x1xf32> to vector<8x4xf32>
    %75 = arith.mulf %70, %74 : vector<8x4xf32>
    %cst_58 = arith.constant dense<0.000000e+00> : vector<8x16xf32>
    %76 = tpu.matmul %75, %64, %cst_58 {dimension_numbers = #tpu.dot_dimension_numbers<[1], [0], [0], [1], [0, 0, 1, 1], [], []>} : vector<8x4xf32>, vector<4x16xf32>, vector<8x16xf32> -> vector<8x16xf32>
    %c1_59 = arith.constant 1 : index
    %c0_60 = arith.constant 0 : index
    %c0_61 = arith.constant 0 : index
    %77 = vector.load %arg9[%c1_59, %c0_60, %c0_61] : memref<4x16x64xf32, #tpu.memory_space<vmem>>, vector<1x16x64xf32>
    %78 = vector.shape_cast %77 : vector<1x16x64xf32> to vector<16x64xf32>
    %cst_62 = arith.constant dense<0.000000e+00> : vector<8x64xf32>
    %79 = tpu.matmul %76, %78, %cst_62 {dimension_numbers = #tpu.dot_dimension_numbers<[1], [0], [0], [1], [0, 0, 1, 1], [], []>} : vector<8x16xf32>, vector<16x64xf32>, vector<8x64xf32> -> vector<8x64xf32>
    %80 = arith.addf %41, %79 : vector<8x64xf32>
    %c2 = arith.constant 2 : index
    %c0_63 = arith.constant 0 : index
    %c0_64 = arith.constant 0 : index
    %81 = vector.load %arg3[%c2, %c0_63, %c0_64] : memref<4x64x16xf32, #tpu.memory_space<vmem>>, vector<1x64x16xf32>
    %82 = vector.shape_cast %81 : vector<1x64x16xf32> to vector<64x16xf32>
    %cst_65 = arith.constant dense<0.000000e+00> : vector<8x16xf32>
    %83 = tpu.matmul %1, %82, %cst_65 {dimension_numbers = #tpu.dot_dimension_numbers<[1], [0], [0], [1], [0, 0, 1, 1], [], []>} : vector<8x64xf32>, vector<64x16xf32>, vector<8x16xf32> -> vector<8x16xf32>
    %c2_66 = arith.constant 2 : index
    %c0_67 = arith.constant 0 : index
    %c0_68 = arith.constant 0 : index
    %84 = vector.load %arg4[%c2_66, %c0_67, %c0_68] : memref<4x1x16xf32, #tpu.memory_space<vmem>>, vector<1x1x16xf32>
    %85 = vector.shape_cast %84 : vector<1x1x16xf32> to vector<1x16xf32>
    %86 = vector.broadcast %85 : vector<1x16xf32> to vector<8x16xf32>
    %87 = arith.addf %83, %86 : vector<8x16xf32>
    %cst_69 = arith.constant 2.500000e-01 : f32
    %88 = vector.broadcast %cst_69 : f32 to vector<8x16xf32>
    %89 = arith.mulf %87, %88 : vector<8x16xf32>
    %c2_70 = arith.constant 2 : index
    %c0_71 = arith.constant 0 : index
    %c0_72 = arith.constant 0 : index
    %90 = vector.load %arg5[%c2_70, %c0_71, %c0_72] : memref<4x64x16xf32, #tpu.memory_space<vmem>>, vector<1x64x16xf32>
    %91 = vector.shape_cast %90 : vector<1x64x16xf32> to vector<64x16xf32>
    %cst_73 = arith.constant dense<0.000000e+00> : vector<4x16xf32>
    %92 = tpu.matmul %3, %91, %cst_73 {dimension_numbers = #tpu.dot_dimension_numbers<[1], [0], [0], [1], [0, 0, 1, 1], [], []>} : vector<4x64xf32>, vector<64x16xf32>, vector<4x16xf32> -> vector<4x16xf32>
    %c2_74 = arith.constant 2 : index
    %c0_75 = arith.constant 0 : index
    %c0_76 = arith.constant 0 : index
    %93 = vector.load %arg6[%c2_74, %c0_75, %c0_76] : memref<4x1x16xf32, #tpu.memory_space<vmem>>, vector<1x1x16xf32>
    %94 = vector.shape_cast %93 : vector<1x1x16xf32> to vector<1x16xf32>
    %95 = vector.broadcast %94 : vector<1x16xf32> to vector<4x16xf32>
    %96 = arith.addf %92, %95 : vector<4x16xf32>
    %c2_77 = arith.constant 2 : index
    %c0_78 = arith.constant 0 : index
    %c0_79 = arith.constant 0 : index
    %97 = vector.load %arg7[%c2_77, %c0_78, %c0_79] : memref<4x64x16xf32, #tpu.memory_space<vmem>>, vector<1x64x16xf32>
    %98 = vector.shape_cast %97 : vector<1x64x16xf32> to vector<64x16xf32>
    %cst_80 = arith.constant dense<0.000000e+00> : vector<4x16xf32>
    %99 = tpu.matmul %3, %98, %cst_80 {dimension_numbers = #tpu.dot_dimension_numbers<[1], [0], [0], [1], [0, 0, 1, 1], [], []>} : vector<4x64xf32>, vector<64x16xf32>, vector<4x16xf32> -> vector<4x16xf32>
    %c2_81 = arith.constant 2 : index
    %c0_82 = arith.constant 0 : index
    %c0_83 = arith.constant 0 : index
    %100 = vector.load %arg8[%c2_81, %c0_82, %c0_83] : memref<4x1x16xf32, #tpu.memory_space<vmem>>, vector<1x1x16xf32>
    %101 = vector.shape_cast %100 : vector<1x1x16xf32> to vector<1x16xf32>
    %102 = vector.broadcast %101 : vector<1x16xf32> to vector<4x16xf32>
    %103 = arith.addf %99, %102 : vector<4x16xf32>
    %cst_84 = arith.constant dense<0.000000e+00> : vector<8x4xf32>
    %104 = tpu.matmul %89, %96, %cst_84 {dimension_numbers = #tpu.dot_dimension_numbers<[1], [1], [0], [0], [0, 0, 1, 0], [], []>} : vector<8x16xf32>, vector<4x16xf32>, vector<8x4xf32> -> vector<8x4xf32>
    %cst_85 = arith.constant dense<0xFF800000> : vector<8xf32>
    %105 = vector.multi_reduction <maximumf>, %104, %cst_85 [1] : vector<8x4xf32> to vector<8xf32>
    %106 = vector.shape_cast %105 : vector<8xf32> to vector<8x1xf32>
    %107 = vector.broadcast %106 : vector<8x1xf32> to vector<8x4xf32>
    %108 = arith.subf %104, %107 : vector<8x4xf32>
    %109 = math.exp %108 : vector<8x4xf32>
    %cst_86 = arith.constant dense<0.000000e+00> : vector<8xf32>
    %110 = vector.multi_reduction <add>, %109, %cst_86 [1] : vector<8x4xf32> to vector<8xf32>
    %111 = vector.shape_cast %110 : vector<8xf32> to vector<8x1xf32>
    %112 = tpu.reciprocal %111 {approx = true} : vector<8x1xf32> -> vector<8x1xf32>
    %113 = vector.broadcast %112 : vector<8x1xf32> to vector<8x4xf32>
    %114 = arith.mulf %109, %113 : vector<8x4xf32>
    %cst_87 = arith.constant dense<0.000000e+00> : vector<8x16xf32>
    %115 = tpu.matmul %114, %103, %cst_87 {dimension_numbers = #tpu.dot_dimension_numbers<[1], [0], [0], [1], [0, 0, 1, 1], [], []>} : vector<8x4xf32>, vector<4x16xf32>, vector<8x16xf32> -> vector<8x16xf32>
    %c2_88 = arith.constant 2 : index
    %c0_89 = arith.constant 0 : index
    %c0_90 = arith.constant 0 : index
    %116 = vector.load %arg9[%c2_88, %c0_89, %c0_90] : memref<4x16x64xf32, #tpu.memory_space<vmem>>, vector<1x16x64xf32>
    %117 = vector.shape_cast %116 : vector<1x16x64xf32> to vector<16x64xf32>
    %cst_91 = arith.constant dense<0.000000e+00> : vector<8x64xf32>
    %118 = tpu.matmul %115, %117, %cst_91 {dimension_numbers = #tpu.dot_dimension_numbers<[1], [0], [0], [1], [0, 0, 1, 1], [], []>} : vector<8x16xf32>, vector<16x64xf32>, vector<8x64xf32> -> vector<8x64xf32>
    %119 = arith.addf %80, %118 : vector<8x64xf32>
    %c3 = arith.constant 3 : index
    %c0_92 = arith.constant 0 : index
    %c0_93 = arith.constant 0 : index
    %120 = vector.load %arg3[%c3, %c0_92, %c0_93] : memref<4x64x16xf32, #tpu.memory_space<vmem>>, vector<1x64x16xf32>
    %121 = vector.shape_cast %120 : vector<1x64x16xf32> to vector<64x16xf32>
    %cst_94 = arith.constant dense<0.000000e+00> : vector<8x16xf32>
    %122 = tpu.matmul %1, %121, %cst_94 {dimension_numbers = #tpu.dot_dimension_numbers<[1], [0], [0], [1], [0, 0, 1, 1], [], []>} : vector<8x64xf32>, vector<64x16xf32>, vector<8x16xf32> -> vector<8x16xf32>
    %c3_95 = arith.constant 3 : index
    %c0_96 = arith.constant 0 : index
    %c0_97 = arith.constant 0 : index
    %123 = vector.load %arg4[%c3_95, %c0_96, %c0_97] : memref<4x1x16xf32, #tpu.memory_space<vmem>>, vector<1x1x16xf32>
    %124 = vector.shape_cast %123 : vector<1x1x16xf32> to vector<1x16xf32>
    %125 = vector.broadcast %124 : vector<1x16xf32> to vector<8x16xf32>
    %126 = arith.addf %122, %125 : vector<8x16xf32>
    %cst_98 = arith.constant 2.500000e-01 : f32
    %127 = vector.broadcast %cst_98 : f32 to vector<8x16xf32>
    %128 = arith.mulf %126, %127 : vector<8x16xf32>
    %c3_99 = arith.constant 3 : index
    %c0_100 = arith.constant 0 : index
    %c0_101 = arith.constant 0 : index
    %129 = vector.load %arg5[%c3_99, %c0_100, %c0_101] : memref<4x64x16xf32, #tpu.memory_space<vmem>>, vector<1x64x16xf32>
    %130 = vector.shape_cast %129 : vector<1x64x16xf32> to vector<64x16xf32>
    %cst_102 = arith.constant dense<0.000000e+00> : vector<4x16xf32>
    %131 = tpu.matmul %3, %130, %cst_102 {dimension_numbers = #tpu.dot_dimension_numbers<[1], [0], [0], [1], [0, 0, 1, 1], [], []>} : vector<4x64xf32>, vector<64x16xf32>, vector<4x16xf32> -> vector<4x16xf32>
    %c3_103 = arith.constant 3 : index
    %c0_104 = arith.constant 0 : index
    %c0_105 = arith.constant 0 : index
    %132 = vector.load %arg6[%c3_103, %c0_104, %c0_105] : memref<4x1x16xf32, #tpu.memory_space<vmem>>, vector<1x1x16xf32>
    %133 = vector.shape_cast %132 : vector<1x1x16xf32> to vector<1x16xf32>
    %134 = vector.broadcast %133 : vector<1x16xf32> to vector<4x16xf32>
    %135 = arith.addf %131, %134 : vector<4x16xf32>
    %c3_106 = arith.constant 3 : index
    %c0_107 = arith.constant 0 : index
    %c0_108 = arith.constant 0 : index
    %136 = vector.load %arg7[%c3_106, %c0_107, %c0_108] : memref<4x64x16xf32, #tpu.memory_space<vmem>>, vector<1x64x16xf32>
    %137 = vector.shape_cast %136 : vector<1x64x16xf32> to vector<64x16xf32>
    %cst_109 = arith.constant dense<0.000000e+00> : vector<4x16xf32>
    %138 = tpu.matmul %3, %137, %cst_109 {dimension_numbers = #tpu.dot_dimension_numbers<[1], [0], [0], [1], [0, 0, 1, 1], [], []>} : vector<4x64xf32>, vector<64x16xf32>, vector<4x16xf32> -> vector<4x16xf32>
    %c3_110 = arith.constant 3 : index
    %c0_111 = arith.constant 0 : index
    %c0_112 = arith.constant 0 : index
    %139 = vector.load %arg8[%c3_110, %c0_111, %c0_112] : memref<4x1x16xf32, #tpu.memory_space<vmem>>, vector<1x1x16xf32>
    %140 = vector.shape_cast %139 : vector<1x1x16xf32> to vector<1x16xf32>
    %141 = vector.broadcast %140 : vector<1x16xf32> to vector<4x16xf32>
    %142 = arith.addf %138, %141 : vector<4x16xf32>
    %cst_113 = arith.constant dense<0.000000e+00> : vector<8x4xf32>
    %143 = tpu.matmul %128, %135, %cst_113 {dimension_numbers = #tpu.dot_dimension_numbers<[1], [1], [0], [0], [0, 0, 1, 0], [], []>} : vector<8x16xf32>, vector<4x16xf32>, vector<8x4xf32> -> vector<8x4xf32>
    %cst_114 = arith.constant dense<0xFF800000> : vector<8xf32>
    %144 = vector.multi_reduction <maximumf>, %143, %cst_114 [1] : vector<8x4xf32> to vector<8xf32>
    %145 = vector.shape_cast %144 : vector<8xf32> to vector<8x1xf32>
    %146 = vector.broadcast %145 : vector<8x1xf32> to vector<8x4xf32>
    %147 = arith.subf %143, %146 : vector<8x4xf32>
    %148 = math.exp %147 : vector<8x4xf32>
    %cst_115 = arith.constant dense<0.000000e+00> : vector<8xf32>
    %149 = vector.multi_reduction <add>, %148, %cst_115 [1] : vector<8x4xf32> to vector<8xf32>
    %150 = vector.shape_cast %149 : vector<8xf32> to vector<8x1xf32>
    %151 = tpu.reciprocal %150 {approx = true} : vector<8x1xf32> -> vector<8x1xf32>
    %152 = vector.broadcast %151 : vector<8x1xf32> to vector<8x4xf32>
    %153 = arith.mulf %148, %152 : vector<8x4xf32>
    %cst_116 = arith.constant dense<0.000000e+00> : vector<8x16xf32>
    %154 = tpu.matmul %153, %142, %cst_116 {dimension_numbers = #tpu.dot_dimension_numbers<[1], [0], [0], [1], [0, 0, 1, 1], [], []>} : vector<8x4xf32>, vector<4x16xf32>, vector<8x16xf32> -> vector<8x16xf32>
    %c3_117 = arith.constant 3 : index
    %c0_118 = arith.constant 0 : index
    %c0_119 = arith.constant 0 : index
    %155 = vector.load %arg9[%c3_117, %c0_118, %c0_119] : memref<4x16x64xf32, #tpu.memory_space<vmem>>, vector<1x16x64xf32>
    %156 = vector.shape_cast %155 : vector<1x16x64xf32> to vector<16x64xf32>
    %cst_120 = arith.constant dense<0.000000e+00> : vector<8x64xf32>
    %157 = tpu.matmul %154, %156, %cst_120 {dimension_numbers = #tpu.dot_dimension_numbers<[1], [0], [0], [1], [0, 0, 1, 1], [], []>} : vector<8x16xf32>, vector<16x64xf32>, vector<8x64xf32> -> vector<8x64xf32>
    %158 = arith.addf %119, %157 : vector<8x64xf32>
    %c0_121 = arith.constant 0 : index
    %c0_122 = arith.constant 0 : index
    %159 = vector.load %arg10[%c0_121, %c0_122] : memref<1x64xf32, #tpu.memory_space<vmem>>, vector<1x64xf32>
    %160 = vector.broadcast %159 : vector<1x64xf32> to vector<8x64xf32>
    %161 = arith.addf %158, %160 : vector<8x64xf32>
    %162 = arith.addf %1, %161 : vector<8x64xf32>
    %c0_123 = arith.constant 0 : index
    %c0_124 = arith.constant 0 : index
    %163 = vector.load %arg11[%c0_123, %c0_124] : memref<1x64xf32, #tpu.memory_space<vmem>>, vector<1x64xf32>
    %c0_125 = arith.constant 0 : index
    %c0_126 = arith.constant 0 : index
    %164 = vector.load %arg12[%c0_125, %c0_126] : memref<1x64xf32, #tpu.memory_space<vmem>>, vector<1x64xf32>
    %cst_127 = arith.constant dense<0.000000e+00> : vector<8xf32>
    %165 = vector.multi_reduction <add>, %162, %cst_127 [1] : vector<8x64xf32> to vector<8xf32>
    %166 = vector.shape_cast %165 : vector<8xf32> to vector<8x1xf32>
    %cst_128 = arith.constant 6.400000e+01 : f32
    %167 = vector.broadcast %cst_128 : f32 to vector<8x1xf32>
    %168 = arith.divf %166, %167 : vector<8x1xf32>
    %169 = vector.broadcast %168 : vector<8x1xf32> to vector<8x64xf32>
    %170 = arith.subf %162, %169 : vector<8x64xf32>
    %171 = arith.mulf %170, %170 : vector<8x64xf32>
    %cst_129 = arith.constant dense<0.000000e+00> : vector<8xf32>
    %172 = vector.multi_reduction <add>, %171, %cst_129 [1] : vector<8x64xf32> to vector<8xf32>
    %173 = vector.shape_cast %172 : vector<8xf32> to vector<8x1xf32>
    %cst_130 = arith.constant 6.400000e+01 : f32
    %174 = vector.broadcast %cst_130 : f32 to vector<8x1xf32>
    %175 = arith.divf %173, %174 : vector<8x1xf32>
    %176 = vector.broadcast %168 : vector<8x1xf32> to vector<8x64xf32>
    %177 = arith.subf %162, %176 : vector<8x64xf32>
    %cst_131 = arith.constant 9.99999974E-6 : f32
    %178 = vector.broadcast %cst_131 : f32 to vector<8x1xf32>
    %179 = arith.addf %175, %178 : vector<8x1xf32>
    %180 = math.rsqrt %179 : vector<8x1xf32>
    %181 = vector.broadcast %180 : vector<8x1xf32> to vector<8x64xf32>
    %182 = arith.mulf %177, %181 : vector<8x64xf32>
    %183 = vector.broadcast %163 : vector<1x64xf32> to vector<8x64xf32>
    %184 = arith.mulf %182, %183 : vector<8x64xf32>
    %185 = vector.broadcast %164 : vector<1x64xf32> to vector<8x64xf32>
    %186 = arith.addf %184, %185 : vector<8x64xf32>
    %c0_132 = arith.constant 0 : index
    %c0_133 = arith.constant 0 : index
    %c0_134 = arith.constant 0 : index
    %187 = vector.load %arg13[%c0_132, %c0_133, %c0_134] : memref<1x8x64xf32, #tpu.memory_space<vmem>>, vector<1x8x64xf32>
    %188 = vector.shape_cast %187 : vector<1x8x64xf32> to vector<8x64xf32>
    %189 = vector.shape_cast %186 : vector<8x64xf32> to vector<1x8x64xf32>
    tpu.vector_store %arg13[%c0_132, %c0_133, %c0_134], %189 {strides = array<i32>} : memref<1x8x64xf32, #tpu.memory_space<vmem>>, vector<1x8x64xf32>,
    return
  }
  func.func @transform_0(%arg0: i32) -> (i32, i32, i32) {
    %c0_i32 = arith.constant 0 : i32
    %c0_i32_0 = arith.constant 0 : i32
    %c0_i32_1 = arith.constant 0 : i32
    return %arg0, %c0_i32, %c0_i32_0 : i32, i32, i32
  }
  func.func @transform_1(%arg0: i32) -> (i32, i32, i32) {
    %c0_i32 = arith.constant 0 : i32
    %c0_i32_0 = arith.constant 0 : i32
    %c0_i32_1 = arith.constant 0 : i32
    return %arg0, %c0_i32, %c0_i32_0 : i32, i32, i32
  }
  func.func @transform_2(%arg0: i32) -> (i32, i32, i32) {
    %c0_i32 = arith.constant 0 : i32
    %c0_i32_0 = arith.constant 0 : i32
    %c0_i32_1 = arith.constant 0 : i32
    %c0_i32_2 = arith.constant 0 : i32
    return %c0_i32, %c0_i32_0, %c0_i32_1 : i32, i32, i32
  }
  func.func @transform_3(%arg0: i32) -> (i32, i32, i32) {
    %c0_i32 = arith.constant 0 : i32
    %c0_i32_0 = arith.constant 0 : i32
    %c0_i32_1 = arith.constant 0 : i32
    %c0_i32_2 = arith.constant 0 : i32
    return %c0_i32, %c0_i32_0, %c0_i32_1 : i32, i32, i32
  }
  func.func @transform_4(%arg0: i32) -> (i32, i32, i32) {
    %c0_i32 = arith.constant 0 : i32
    %c0_i32_0 = arith.constant 0 : i32
    %c0_i32_1 = arith.constant 0 : i32
    %c0_i32_2 = arith.constant 0 : i32
    return %c0_i32, %c0_i32_0, %c0_i32_1 : i32, i32, i32
  }
  func.func @transform_5(%arg0: i32) -> (i32, i32, i32) {
    %c0_i32 = arith.constant 0 : i32
    %c0_i32_0 = arith.constant 0 : i32
    %c0_i32_1 = arith.constant 0 : i32
    %c0_i32_2 = arith.constant 0 : i32
    return %c0_i32, %c0_i32_0, %c0_i32_1 : i32, i32, i32
  }
  func.func @transform_6(%arg0: i32) -> (i32, i32, i32) {
    %c0_i32 = arith.constant 0 : i32
    %c0_i32_0 = arith.constant 0 : i32
    %c0_i32_1 = arith.constant 0 : i32
    %c0_i32_2 = arith.constant 0 : i32
    return %c0_i32, %c0_i32_0, %c0_i32_1 : i32, i32, i32
  }
  func.func @transform_7(%arg0: i32) -> (i32, i32, i32) {
    %c0_i32 = arith.constant 0 : i32
    %c0_i32_0 = arith.constant 0 : i32
    %c0_i32_1 = arith.constant 0 : i32
    %c0_i32_2 = arith.constant 0 : i32
    return %c0_i32, %c0_i32_0, %c0_i32_1 : i32, i32, i32
  }
  func.func @transform_8(%arg0: i32) -> (i32, i32, i32) {
    %c0_i32 = arith.constant 0 : i32
    %c0_i32_0 = arith.constant 0 : i32
    %c0_i32_1 = arith.constant 0 : i32
    %c0_i32_2 = arith.constant 0 : i32
    return %c0_i32, %c0_i32_0, %c0_i32_1 : i32, i32, i32
  }
  func.func @transform_9(%arg0: i32) -> (i32, i32) {
    %c0_i32 = arith.constant 0 : i32
    %c0_i32_0 = arith.constant 0 : i32
    %c0_i32_1 = arith.constant 0 : i32
    return %c0_i32, %c0_i32_0 : i32, i32
  }
  func.func @transform_10(%arg0: i32) -> (i32, i32) {
    %c0_i32 = arith.constant 0 : i32
    %c0_i32_0 = arith.constant 0 : i32
    %c0_i32_1 = arith.constant 0 : i32
    return %c0_i32, %c0_i32_0 : i32, i32
  }
  func.func @transform_11(%arg0: i32) -> (i32, i32) {
    %c0_i32 = arith.constant 0 : i32
    %c0_i32_0 = arith.constant 0 : i32
    %c0_i32_1 = arith.constant 0 : i32
    return %c0_i32, %c0_i32_0 : i32, i32
  }
  func.func @transform_12(%arg0: i32) -> (i32, i32, i32) {
    %c0_i32 = arith.constant 0 : i32
    %c0_i32_0 = arith.constant 0 : i32
    %c0_i32_1 = arith.constant 0 : i32
    return %arg0, %c0_i32, %c0_i32_0 : i32, i32, i32
  }
}

module attributes {stable_mosaic.version = 11 : i64} {
  func.func @_ffn_ln_kernel(%arg0: i32, %arg1: memref<16x64xf32, #tpu.memory_space<vmem>>, %arg2: memref<64x128xf32, #tpu.memory_space<vmem>>, %arg3: memref<1x128xf32, #tpu.memory_space<vmem>>, %arg4: memref<128x64xf32, #tpu.memory_space<vmem>>, %arg5: memref<1x64xf32, #tpu.memory_space<vmem>>, %arg6: memref<1x64xf32, #tpu.memory_space<vmem>>, %arg7: memref<1x64xf32, #tpu.memory_space<vmem>>, %arg8: memref<16x64xf32, #tpu.memory_space<vmem>>) attributes {dimension_semantics = [#tpu.dimension_semantics<parallel>], iteration_bounds = array<i64: 1>, scalar_prefetch = 0 : i64, scratch_operands = 0 : i64, tpu.core_type = #tpu.core_type<tc>, window_params = [{transform_indices = @transform_0, window_bounds = array<i64: 16, 64>}, {pipeline_mode = #tpu.pipeline_mode<synchronous>, transform_indices = @transform_1, window_bounds = array<i64: 64, 128>}, {pipeline_mode = #tpu.pipeline_mode<synchronous>, transform_indices = @transform_2, window_bounds = array<i64: 1, 128>}, {pipeline_mode = #tpu.pipeline_mode<synchronous>, transform_indices = @transform_3, window_bounds = array<i64: 128, 64>}, {pipeline_mode = #tpu.pipeline_mode<synchronous>, transform_indices = @transform_4, window_bounds = array<i64: 1, 64>}, {pipeline_mode = #tpu.pipeline_mode<synchronous>, transform_indices = @transform_5, window_bounds = array<i64: 1, 64>}, {pipeline_mode = #tpu.pipeline_mode<synchronous>, transform_indices = @transform_6, window_bounds = array<i64: 1, 64>}, {transform_indices = @transform_7, window_bounds = array<i64: 16, 64>}]} {
    %c0 = arith.constant 0 : index
    %c0_0 = arith.constant 0 : index
    %0 = vector.load %arg1[%c0, %c0_0] : memref<16x64xf32, #tpu.memory_space<vmem>>, vector<16x64xf32>
    %c0_1 = arith.constant 0 : index
    %c0_2 = arith.constant 0 : index
    %1 = vector.load %arg2[%c0_1, %c0_2] : memref<64x128xf32, #tpu.memory_space<vmem>>, vector<64x128xf32>
    %cst = arith.constant dense<0.000000e+00> : vector<16x128xf32>
    %2 = tpu.matmul %0, %1, %cst {dimension_numbers = #tpu.dot_dimension_numbers<[1], [0], [0], [1], [0, 0, 1, 1], [], []>} : vector<16x64xf32>, vector<64x128xf32>, vector<16x128xf32> -> vector<16x128xf32>
    %c0_3 = arith.constant 0 : index
    %c0_4 = arith.constant 0 : index
    %3 = vector.load %arg3[%c0_3, %c0_4] : memref<1x128xf32, #tpu.memory_space<vmem>>, vector<1x128xf32>
    %4 = vector.broadcast %3 : vector<1x128xf32> to vector<16x128xf32>
    %5 = arith.addf %2, %4 : vector<16x128xf32>
    %cst_5 = arith.constant 0.000000e+00 : f32
    %6 = vector.broadcast %cst_5 : f32 to vector<16x128xf32>
    %7 = arith.maximumf %5, %6 : vector<16x128xf32>
    %c0_6 = arith.constant 0 : index
    %c0_7 = arith.constant 0 : index
    %8 = vector.load %arg4[%c0_6, %c0_7] : memref<128x64xf32, #tpu.memory_space<vmem>>, vector<128x64xf32>
    %cst_8 = arith.constant dense<0.000000e+00> : vector<16x64xf32>
    %9 = tpu.matmul %7, %8, %cst_8 {dimension_numbers = #tpu.dot_dimension_numbers<[1], [0], [0], [1], [0, 0, 1, 1], [], []>} : vector<16x128xf32>, vector<128x64xf32>, vector<16x64xf32> -> vector<16x64xf32>
    %10 = arith.addf %0, %9 : vector<16x64xf32>
    %c0_9 = arith.constant 0 : index
    %c0_10 = arith.constant 0 : index
    %11 = vector.load %arg5[%c0_9, %c0_10] : memref<1x64xf32, #tpu.memory_space<vmem>>, vector<1x64xf32>
    %12 = vector.broadcast %11 : vector<1x64xf32> to vector<16x64xf32>
    %13 = arith.addf %10, %12 : vector<16x64xf32>
    %c0_11 = arith.constant 0 : index
    %c0_12 = arith.constant 0 : index
    %14 = vector.load %arg6[%c0_11, %c0_12] : memref<1x64xf32, #tpu.memory_space<vmem>>, vector<1x64xf32>
    %c0_13 = arith.constant 0 : index
    %c0_14 = arith.constant 0 : index
    %15 = vector.load %arg7[%c0_13, %c0_14] : memref<1x64xf32, #tpu.memory_space<vmem>>, vector<1x64xf32>
    %cst_15 = arith.constant dense<0.000000e+00> : vector<16xf32>
    %16 = vector.multi_reduction <add>, %13, %cst_15 [1] : vector<16x64xf32> to vector<16xf32>
    %17 = vector.shape_cast %16 : vector<16xf32> to vector<16x1xf32>
    %cst_16 = arith.constant 6.400000e+01 : f32
    %18 = vector.broadcast %cst_16 : f32 to vector<16x1xf32>
    %19 = arith.divf %17, %18 : vector<16x1xf32>
    %20 = vector.broadcast %19 : vector<16x1xf32> to vector<16x64xf32>
    %21 = arith.subf %13, %20 : vector<16x64xf32>
    %22 = arith.mulf %21, %21 : vector<16x64xf32>
    %cst_17 = arith.constant dense<0.000000e+00> : vector<16xf32>
    %23 = vector.multi_reduction <add>, %22, %cst_17 [1] : vector<16x64xf32> to vector<16xf32>
    %24 = vector.shape_cast %23 : vector<16xf32> to vector<16x1xf32>
    %cst_18 = arith.constant 6.400000e+01 : f32
    %25 = vector.broadcast %cst_18 : f32 to vector<16x1xf32>
    %26 = arith.divf %24, %25 : vector<16x1xf32>
    %27 = vector.broadcast %19 : vector<16x1xf32> to vector<16x64xf32>
    %28 = arith.subf %13, %27 : vector<16x64xf32>
    %cst_19 = arith.constant 9.99999974E-6 : f32
    %29 = vector.broadcast %cst_19 : f32 to vector<16x1xf32>
    %30 = arith.addf %26, %29 : vector<16x1xf32>
    %31 = math.rsqrt %30 : vector<16x1xf32>
    %32 = vector.broadcast %31 : vector<16x1xf32> to vector<16x64xf32>
    %33 = arith.mulf %28, %32 : vector<16x64xf32>
    %34 = vector.broadcast %14 : vector<1x64xf32> to vector<16x64xf32>
    %35 = arith.mulf %33, %34 : vector<16x64xf32>
    %36 = vector.broadcast %15 : vector<1x64xf32> to vector<16x64xf32>
    %37 = arith.addf %35, %36 : vector<16x64xf32>
    %c0_20 = arith.constant 0 : index
    %c0_21 = arith.constant 0 : index
    %38 = vector.load %arg8[%c0_20, %c0_21] : memref<16x64xf32, #tpu.memory_space<vmem>>, vector<16x64xf32>
    tpu.vector_store %arg8[%c0_20, %c0_21], %37 {strides = array<i32>} : memref<16x64xf32, #tpu.memory_space<vmem>>, vector<16x64xf32>,
    return
  }
  func.func @transform_0(%arg0: i32) -> (i32, i32) {
    %c0_i32 = arith.constant 0 : i32
    %c0_i32_0 = arith.constant 0 : i32
    return %arg0, %c0_i32 : i32, i32
  }
  func.func @transform_1(%arg0: i32) -> (i32, i32) {
    %c0_i32 = arith.constant 0 : i32
    %c0_i32_0 = arith.constant 0 : i32
    %c0_i32_1 = arith.constant 0 : i32
    return %c0_i32, %c0_i32_0 : i32, i32
  }
  func.func @transform_2(%arg0: i32) -> (i32, i32) {
    %c0_i32 = arith.constant 0 : i32
    %c0_i32_0 = arith.constant 0 : i32
    %c0_i32_1 = arith.constant 0 : i32
    return %c0_i32, %c0_i32_0 : i32, i32
  }
  func.func @transform_3(%arg0: i32) -> (i32, i32) {
    %c0_i32 = arith.constant 0 : i32
    %c0_i32_0 = arith.constant 0 : i32
    %c0_i32_1 = arith.constant 0 : i32
    return %c0_i32, %c0_i32_0 : i32, i32
  }
  func.func @transform_4(%arg0: i32) -> (i32, i32) {
    %c0_i32 = arith.constant 0 : i32
    %c0_i32_0 = arith.constant 0 : i32
    %c0_i32_1 = arith.constant 0 : i32
    return %c0_i32, %c0_i32_0 : i32, i32
  }
  func.func @transform_5(%arg0: i32) -> (i32, i32) {
    %c0_i32 = arith.constant 0 : i32
    %c0_i32_0 = arith.constant 0 : i32
    %c0_i32_1 = arith.constant 0 : i32
    return %c0_i32, %c0_i32_0 : i32, i32
  }
  func.func @transform_6(%arg0: i32) -> (i32, i32) {
    %c0_i32 = arith.constant 0 : i32
    %c0_i32_0 = arith.constant 0 : i32
    %c0_i32_1 = arith.constant 0 : i32
    return %c0_i32, %c0_i32_0 : i32, i32
  }
  func.func @transform_7(%arg0: i32) -> (i32, i32) {
    %c0_i32 = arith.constant 0 : i32
    %c0_i32_0 = arith.constant 0 : i32
    return %arg0, %c0_i32 : i32, i32
  }
}

module attributes {stable_mosaic.version = 11 : i64} {
  func.func @_head_kernel(%arg0: memref<2x8x64xf32, #tpu.memory_space<vmem>>, %arg1: memref<1x1x64xf32, #tpu.memory_space<vmem>>, %arg2: memref<1x1x64xf32, #tpu.memory_space<vmem>>, %arg3: memref<1x8x64xf32, #tpu.memory_space<vmem>>, %arg4: memref<1x8xf32, #tpu.memory_space<vmem>>, %arg5: memref<2x8xf32, #tpu.memory_space<vmem>>) attributes {dimension_semantics = [], scalar_prefetch = 0 : i64, scratch_operands = 0 : i64, tpu.core_type = #tpu.core_type<tc>} {
    %c0 = arith.constant 0 : index
    %c0_0 = arith.constant 0 : index
    %c0_1 = arith.constant 0 : index
    %0 = vector.load %arg0[%c0, %c0_0, %c0_1] : memref<2x8x64xf32, #tpu.memory_space<vmem>>, vector<2x8x64xf32>
    %c0_2 = arith.constant 0 : index
    %c0_3 = arith.constant 0 : index
    %c0_4 = arith.constant 0 : index
    %1 = vector.load %arg1[%c0_2, %c0_3, %c0_4] : memref<1x1x64xf32, #tpu.memory_space<vmem>>, vector<1x1x64xf32>
    %c0_5 = arith.constant 0 : index
    %c0_6 = arith.constant 0 : index
    %c0_7 = arith.constant 0 : index
    %2 = vector.load %arg2[%c0_5, %c0_6, %c0_7] : memref<1x1x64xf32, #tpu.memory_space<vmem>>, vector<1x1x64xf32>
    %cst = arith.constant dense<0.000000e+00> : vector<2x8xf32>
    %3 = vector.multi_reduction <add>, %0, %cst [2] : vector<2x8x64xf32> to vector<2x8xf32>
    %4 = vector.shape_cast %3 : vector<2x8xf32> to vector<2x8x1xf32>
    %cst_8 = arith.constant 6.400000e+01 : f32
    %5 = vector.broadcast %cst_8 : f32 to vector<2x8x1xf32>
    %6 = arith.divf %4, %5 : vector<2x8x1xf32>
    %7 = vector.broadcast %6 : vector<2x8x1xf32> to vector<2x8x64xf32>
    %8 = arith.subf %0, %7 : vector<2x8x64xf32>
    %9 = arith.mulf %8, %8 : vector<2x8x64xf32>
    %cst_9 = arith.constant dense<0.000000e+00> : vector<2x8xf32>
    %10 = vector.multi_reduction <add>, %9, %cst_9 [2] : vector<2x8x64xf32> to vector<2x8xf32>
    %11 = vector.shape_cast %10 : vector<2x8xf32> to vector<2x8x1xf32>
    %cst_10 = arith.constant 6.400000e+01 : f32
    %12 = vector.broadcast %cst_10 : f32 to vector<2x8x1xf32>
    %13 = arith.divf %11, %12 : vector<2x8x1xf32>
    %14 = vector.broadcast %6 : vector<2x8x1xf32> to vector<2x8x64xf32>
    %15 = arith.subf %0, %14 : vector<2x8x64xf32>
    %cst_11 = arith.constant 9.99999974E-6 : f32
    %16 = vector.broadcast %cst_11 : f32 to vector<2x8x1xf32>
    %17 = arith.addf %13, %16 : vector<2x8x1xf32>
    %18 = math.rsqrt %17 : vector<2x8x1xf32>
    %19 = vector.broadcast %18 : vector<2x8x1xf32> to vector<2x8x64xf32>
    %20 = arith.mulf %15, %19 : vector<2x8x64xf32>
    %21 = vector.broadcast %1 : vector<1x1x64xf32> to vector<2x8x64xf32>
    %22 = arith.mulf %20, %21 : vector<2x8x64xf32>
    %23 = vector.broadcast %2 : vector<1x1x64xf32> to vector<2x8x64xf32>
    %24 = arith.addf %22, %23 : vector<2x8x64xf32>
    %c0_12 = arith.constant 0 : index
    %c0_13 = arith.constant 0 : index
    %c0_14 = arith.constant 0 : index
    %25 = vector.load %arg3[%c0_12, %c0_13, %c0_14] : memref<1x8x64xf32, #tpu.memory_space<vmem>>, vector<1x8x64xf32>
    %26 = vector.broadcast %25 : vector<1x8x64xf32> to vector<2x8x64xf32>
    %27 = arith.mulf %24, %26 : vector<2x8x64xf32>
    %cst_15 = arith.constant dense<0.000000e+00> : vector<2x8xf32>
    %28 = vector.multi_reduction <add>, %27, %cst_15 [2] : vector<2x8x64xf32> to vector<2x8xf32>
    %c0_16 = arith.constant 0 : index
    %c0_17 = arith.constant 0 : index
    %29 = vector.load %arg4[%c0_16, %c0_17] : memref<1x8xf32, #tpu.memory_space<vmem>>, vector<1x8xf32>
    %30 = vector.broadcast %29 : vector<1x8xf32> to vector<2x8xf32>
    %31 = arith.addf %28, %30 : vector<2x8xf32>
    %cst_18 = arith.constant dense<0xFF800000> : vector<2xf32>
    %32 = vector.multi_reduction <maximumf>, %31, %cst_18 [1] : vector<2x8xf32> to vector<2xf32>
    %33 = vector.shape_cast %32 : vector<2xf32> to vector<2x1xf32>
    %34 = vector.broadcast %33 : vector<2x1xf32> to vector<2x8xf32>
    %35 = arith.subf %31, %34 : vector<2x8xf32>
    %36 = math.exp %35 : vector<2x8xf32>
    %cst_19 = arith.constant dense<0.000000e+00> : vector<2xf32>
    %37 = vector.multi_reduction <add>, %36, %cst_19 [1] : vector<2x8xf32> to vector<2xf32>
    %38 = vector.shape_cast %37 : vector<2xf32> to vector<2x1xf32>
    %39 = math.log %38 : vector<2x1xf32>
    %40 = vector.broadcast %39 : vector<2x1xf32> to vector<2x8xf32>
    %41 = arith.subf %35, %40 : vector<2x8xf32>
    %c0_20 = arith.constant 0 : index
    %c0_21 = arith.constant 0 : index
    %42 = vector.load %arg5[%c0_20, %c0_21] : memref<2x8xf32, #tpu.memory_space<vmem>>, vector<2x8xf32>
    tpu.vector_store %arg5[%c0_20, %c0_21], %41 {strides = array<i32>} : memref<2x8xf32, #tpu.memory_space<vmem>>, vector<2x8xf32>,
    return
  }
}

</mosaic_0001>

<bundles_post_ra>
// kernel: forward.13
= control target key start
LH: loop header
LB: loop body
LE: loop exit
PB: predicated region body
PF: predicated region fallthrough
CT: control target
= control target key end

     0   :  { %s567_s15 = smov 0   ;;  %s700_s0 = inlined_call_operand.vmem [shape: f32[2,2,4,192], index: 0, kind: input, shape index: {}]   ;;  %s701_s1 = inlined_call_operand.vmem [shape: f32[192,64], index: 1, kind: input, shape index: {}]   ;;  %s702_s2 = inlined_call_operand.vmem [shape: f32[1,64], index: 2, kind: input, shape index: {}]   ;;  %s703_s3 = inlined_call_operand.vmem [shape: f32[4,64], index: 3, kind: input, shape index: {}]   ;;  %s704_s4 = inlined_call_operand.vmem [shape: f32[2,4,64], index: 4, kind: output, shape index: {}]  }
   0x1 LB: > { %s436_s16 = sadd.s32 4294967295, %s539_s15   ;;  %p440_p0 = scmp.ge.s32.totalorder %s539_s15, 1  ;;  %s539_s15 = sphi %s567_s15, %s14_s15  }
   0x2   : > { %p162_p1 = scmp.lt.s32.totalorder %s539_s15, 3 }
   0x4   : > { %p163_p2 = pnand %p440_p0, %p162_p1 }
   0x5   : > { %v198_v0 = vld [vmem:[%s701_s1] sm:$0xff] (!%p163_p2)  ;;  %v199_v1 = vld [vmem:[%s701_s1 + $0x8] sm:$0xff] (!%p163_p2)  ;;  %v200_v2 = vld [vmem:[%s701_s1 + $0x10] sm:$0xff] (!%p163_p2)  ;;  %p187_p3 = scmp.lt.s32.totalorder (!%p163_p2), %s436_s16, 1  ;;  %v541_v3 = vmov (!%p163_p2), 0.0|0.0   ;;  %vm231_vm0 = vcmask (!%p163_p2), 523264  }
   0x6   : > { %166 = sbr.rel (%p163_p2) target bundleno = 274 (0x112), region = 36  ;;  %450 = vmatprep.subr.bf16.mxu0 (!%p163_p2), %v541_v3  ;;  %486 = vmatprep.subr.bf16.mxu1 (!%p163_p2), %v541_v3  ;;  %v451_v4 = vpack.c.bf16 (!%p163_p2), %v199_v1, %v198_v0  ;;  %v201_v5 = vld [vmem:[%s701_s1 + $0x18] sm:$0xff] (!%p163_p2)  ;;  %v202_v7 = vld [vmem:[%s701_s1 + $0x20] sm:$0xff] (!%p163_p2)  ;;  %v203_v8 = vld [vmem:[%s701_s1 + $0x28] sm:$0xff] (!%p163_p2)  ;;  %vm381_vm1 = vcmask (!%p163_p2), 519168  }
   0x7   : > { %v454_v6 = vpack.c.bf16 (!%p163_p2), %v201_v5, %v200_v2  ;;  %v457_v9 = vpack.c.bf16 (!%p163_p2), %v203_v8, %v202_v7  ;;  %v204_v10 = vld [vmem:[%s701_s1 + $0x30] sm:$0xff] (!%p163_p2)  ;;  %v205_v11 = vld [vmem:[%s701_s1 + $0x38] sm:$0xff] (!%p163_p2)  ;;  %v206_v17 = vld [vmem:[%s701_s1 + $0x40] sm:$0xff] (!%p163_p2) }
   0x8   : > { %452 = vmatpush1.bf16.msra.mxu0 (!%p163_p2), %v451_v4  ;;  %488 = vmatpush1.bf16.msra.mxu1 (!%p163_p2), %v451_v4  ;;  %v460_v16 = vpack.c.bf16 (!%p163_p2), %v205_v11, %v204_v10  ;;  %v207_v18 = vld [vmem:[%s701_s1 + $0x48] sm:$0xff] (!%p163_p2)  ;;  %v208_v20 = vld [vmem:[%s701_s1 + $0x50] sm:$0xff] (!%p163_p2)  ;;  %v209_v21 = vld [vmem:[%s701_s1 + $0x58] sm:$0xff] (!%p163_p2) }
   0x9   : > { %453 = vmatprep.subr.bf16.mxu0 (!%p163_p2), %v541_v3  ;;  %489 = vmatprep.subr.bf16.mxu1 (!%p163_p2), %v541_v3  ;;  %v463_v19 = vpack.c.bf16 (!%p163_p2), %v207_v18, %v206_v17  ;;  %v466_v22 = vpack.c.bf16 (!%p163_p2), %v209_v21, %v208_v20  ;;  %v210_v23 = vld [vmem:[%s701_s1 + $0x60] sm:$0xff] (!%p163_p2)  ;;  %v211_v24 = vld [vmem:[%s701_s1 + $0x68] sm:$0xff] (!%p163_p2)  ;;  %v212_v26 = vld [vmem:[%s701_s1 + $0x70] sm:$0xff] (!%p163_p2) }
   0xa   : > { %v469_v25 = vpack.c.bf16 (!%p163_p2), %v211_v24, %v210_v23  ;;  %v213_v27 = vld [vmem:[%s701_s1 + $0x78] sm:$0xff] (!%p163_p2)  ;;  %v214_v29 = vld [vmem:[%s701_s1 + $0x80] sm:$0xff] (!%p163_p2)  ;;  %v215_v30 = vld [vmem:[%s701_s1 + $0x88] sm:$0xff] (!%p163_p2) }
   0xb   : > { %v472_v28 = vpack.c.bf16 (!%p163_p2), %v213_v27, %v212_v26  ;;  %v475_v31 = vpack.c.bf16 (!%p163_p2), %v215_v30, %v214_v29  ;;  %v216_v32 = vld [vmem:[%s701_s1 + $0x90] sm:$0xff] (!%p163_p2)  ;;  %v217_v33 = vld [vmem:[%s701_s1 + $0x98] sm:$0xff] (!%p163_p2)  ;;  %v218_v35 = vld [vmem:[%s701_s1 + $0xa0] sm:$0xff] (!%p163_p2) }
   0xc   : > { %455 = vmatpush1.bf16.msra.mxu0 (!%p163_p2), %v454_v6  ;;  %491 = vmatpush1.bf16.msra.mxu1 (!%p163_p2), %v454_v6  ;;  %v478_v34 = vpack.c.bf16 (!%p163_p2), %v217_v33, %v216_v32  ;;  %v219_v36 = vld [vmem:[%s701_s1 + $0xa8] sm:$0xff] (!%p163_p2)  ;;  %v220_v38 = vld [vmem:[%s701_s1 + $0xb0] sm:$0xff] (!%p163_p2)  ;;  %v221_v39 = vld [vmem:[%s701_s1 + $0xb8] sm:$0xff] (!%p163_p2) }
   0xd   : > { %s706_s16 = smov (!%p187_p3, %s436_s16), 1  ;;  %456 = vmatprep.subr.bf16.mxu0 %v541_v3  ;;  %492 = vmatprep.subr.bf16.mxu1 %v541_v3  ;;  %v481_v37 = vpack.c.bf16 %v219_v36, %v218_v35  ;;  %v484_v40 = vpack.c.bf16 %v221_v39, %v220_v38  ;;  %v444_v41 = vld [vmem:[%s702_s2] ss:$0 sm:$0xff] }
   0xe   : > { %s449_s29 = sshll.u32 %s706_s16, 4  ;;  %s443_s23 = sshll.u32 %s706_s16, 2  ;;  %v379_v48 = vld [vmem:[%s703_s3] sm:$0xf] }
   0xf   : > { %s191_s6 = scalar_lea.vmem %s700_s0, %s449_s29  ;;  %s195_s28 = scalar_lea.vmem %s704_s4, %s443_s23 }
  0x10   : > { %v611_v12 = vld [vmem:[%s191_s6] sm:$0xff]  ;;  %v613_v13 = vld [vmem:[%s191_s6 + $0x8] sm:$0xff]  ;;  %458 = vmatpush1.bf16.msra.mxu0 %v457_v9  ;;  %494 = vmatpush1.bf16.msra.mxu1 %v457_v9 }
  0x11   : > { %v230_v14 = vcombine.high %v611_v12, %v611_v12  ;;  %v305_v15 = vcombine.high %v613_v13, %v613_v13  ;;  %459 = vmatprep.subr.bf16.mxu0 %v541_v3  ;;  %495 = vmatprep.subr.bf16.mxu1 %v541_v3 }
  0x13   : > { %445 = vmatprep.mubr.msk.f32.mxu0 %vm231_vm0, %v230_v14  ;;  %446 = vmatprep.mubr.msk.f32.mxu1 %vm231_vm0, %v305_v15 }
  0x14   : > { %461 = vmatpush1.bf16.msra.mxu0 %v460_v16  ;;  %497 = vmatpush1.bf16.msra.mxu1 %v460_v16 }
  0x15   : > { %462 = vmatprep.subr.bf16.mxu0 %v541_v3  ;;  %498 = vmatprep.subr.bf16.mxu1 %v541_v3 }
  0x18   : > { %464 = vmatpush1.bf16.msra.mxu0 %v463_v19  ;;  %500 = vmatpush1.bf16.msra.mxu1 %v463_v19 }
  0x19   : > { %465 = vmatprep.subr.bf16.mxu0 %v541_v3  ;;  %501 = vmatprep.subr.bf16.mxu1 %v541_v3 }
  0x1c   : > { %467 = vmatpush1.bf16.msra.mxu0 %v466_v22  ;;  %503 = vmatpush1.bf16.msra.mxu1 %v466_v22 }
  0x1d   : > { %468 = vmatprep.subr.bf16.mxu0 %v541_v3  ;;  %504 = vmatprep.subr.bf16.mxu1 %v541_v3 }
  0x20   : > { %470 = vmatpush1.bf16.msra.mxu0 %v469_v25  ;;  %506 = vmatpush1.bf16.msra.mxu1 %v469_v25 }
  0x21   : > { %471 = vmatprep.subr.bf16.mxu0 %v541_v3  ;;  %507 = vmatprep.subr.bf16.mxu1 %v541_v3 }
  0x24   : > { %473 = vmatpush1.bf16.msra.mxu0 %v472_v28  ;;  %509 = vmatpush1.bf16.msra.mxu1 %v472_v28 }
  0x25   : > { %474 = vmatprep.subr.bf16.mxu0 %v541_v3  ;;  %510 = vmatprep.subr.bf16.mxu1 %v541_v3 }
  0x28   : > { %476 = vmatpush1.bf16.msra.mxu0 %v475_v31  ;;  %512 = vmatpush1.bf16.msra.mxu1 %v475_v31 }
  0x29   : > { %477 = vmatprep.subr.bf16.mxu0 %v541_v3  ;;  %513 = vmatprep.subr.bf16.mxu1 %v541_v3 }
  0x2c   : > { %479 = vmatpush1.bf16.msra.mxu0 %v478_v34  ;;  %515 = vmatpush1.bf16.msra.mxu1 %v478_v34 }
  0x2d   : > { %480 = vmatprep.subr.bf16.mxu0 %v541_v3  ;;  %516 = vmatprep.subr.bf16.mxu1 %v541_v3 }
  0x30   : > { %482 = vmatpush1.bf16.msra.mxu0 %v481_v37  ;;  %518 = vmatpush1.bf16.msra.mxu1 %v481_v37 }
  0x31   : > { %483 = vmatprep.subr.bf16.mxu0 %v541_v3  ;;  %519 = vmatprep.subr.bf16.mxu1 %v541_v3 }
  0x34   : > { %485 = vmatpush1.bf16.msra.mxu0 %v484_v40  ;;  %521 = vmatpush1.bf16.msra.mxu1 %v484_v40 }
  0x37   : > { %299 = vmatmul.mubr.f32.vlgmr.msra.gmra.mrb[0].mxu0 %v611_v12  ;;  %373 = vmatmul.mubr.f32.vlgmr.msra.gmra.mrb[0].mxu1 %v613_v13 }
 0x10a   : > { %v300_v42 = vpop.f32.mrb[0].mxu0  ;;  %v374_v43 = vpop.f32.mrb[0].mxu1 }
 0x10b   : > { %v301_v44 = vadd.f32 %v444_v41, %v300_v42  ;;  %v375_v45 = vadd.f32 %v444_v41, %v374_v43  ;;  %v302_v46 = vpop.f32.mrb[1].mxu0  ;;  %v376_v47 = vpop.f32.mrb[1].mxu1 }
 0x10d   : > { %v378_v49 = vmax.f32 %v301_v44, %v375_v45 }
 0x10f   : > { %v380_v50 = vadd.f32 %v379_v48, %v378_v49 }
 0x111   : > { %382 = vst.msk [vmem:[%s195_s28] sm:$0xf] %vm381_vm1, %v380_v50 }
 0x112 PF: > { %s14_s15 = sadd.s32 1, %s539_s15  }
 0x113   : > { %p11_p4 = scmp.ge.s32.totalorder %s14_s15, 4  }
 0x115   :  { %13 = sbr.rel (!%p11_p4) target bundleno = 1 (0x1), region = 66 }

// kernel: forward.15
= control target key start
LH: loop header
LB: loop body
LE: loop exit
PB: predicated region body
PF: predicated region fallthrough
CT: control target
= control target key end

     0   :  { %v373_v0 = vmov 0.0|0.0   ;;  %vm374_vm0 = vmmov 0   ;;  %v375_v4 = vmov 0.0   ;;  %vm42_vm1 = vcmask 523264   ;;  %s522_s1 = inlined_call_operand.vmem [shape: f32[64,128], index: 1, kind: input, shape index: {}]   ;;  %s523_s3 = inlined_call_operand.vmem [shape: f32[128,64], index: 3, kind: input, shape index: {}]   ;;  %s524_s0 = inlined_call_operand.vmem [shape: f32[8,64], index: 0, kind: input, shape index: {}]   ;;  %s525_s2 = inlined_call_operand.vmem [shape: f32[1,128], index: 2, kind: input, shape index: {}]   ;;  %s526_s4 = inlined_call_operand.vmem [shape: f32[1,64], index: 4, kind: input, shape index: {}]   ;;  %s527_s5 = inlined_call_operand.vmem [shape: f32[1,64], index: 5, kind: input, shape index: {}]   ;;  %s528_s6 = inlined_call_operand.vmem [shape: f32[1,64], index: 6, kind: input, shape index: {}]   ;;  %s529_s7 = inlined_call_operand.vmem [shape: f32[8,64], index: 7, kind: output, shape index: {}]  }
   0x1   :  { %332 = vmatprep.subr.bf16.mxu0 %v373_v0  ;;  %v27_v1 = vld [vmem:[%s522_s1] sm:$0xff]  ;;  %v28_v2 = vld [vmem:[%s522_s1 + $0x8] sm:$0xff]  ;;  %v29_v3 = vld [vmem:[%s522_s1 + $0x10] sm:$0xff]  ;;  %294 = vmatprep.mubr.msk.f32.mxu0 %vm374_vm0, %v375_v4 }
   0x2   :  { %v333_v5 = vpack.c.bf16 %v28_v2, %v27_v1  ;;  %v30_v6 = vld [vmem:[%s522_s1 + $0x18] sm:$0xff]  ;;  %344 = vmatprep.subr.bf16.mxu1 %v373_v0  ;;  %329 = vmatprep.mubr.msk.f32.mxu1 %vm374_vm0, %v375_v4  ;;  %v117_v8 = vld [vmem:[%s523_s3] sm:$0xff]  ;;  %v118_v9 = vld [vmem:[%s523_s3 + $0x8] sm:$0xff] }
   0x3   :  { %v336_v7 = vpack.c.bf16 %v30_v6, %v29_v3  ;;  %v119_v10 = vld [vmem:[%s523_s3 + $0x10] sm:$0xff]  ;;  %v31_v11 = vld [vmem:[%s522_s1 + $0x20] sm:$0xff]  ;;  %v32_v12 = vld [vmem:[%s522_s1 + $0x28] sm:$0xff]  ;;  %v345_v13 = vpack.c.bf16 %v118_v9, %v117_v8 }
   0x4   :  { %334 = vmatpush3.bf16.msra.mxu0 %v333_v5  ;;  %v120_v14 = vld [vmem:[%s523_s3 + $0x18] sm:$0xff]  ;;  %v339_v16 = vpack.c.bf16 %v32_v12, %v31_v11  ;;  %v121_v17 = vld [vmem:[%s523_s3 + $0x20] sm:$0xff]  ;;  %v122_v18 = vld [vmem:[%s523_s3 + $0x28] sm:$0xff] }
   0x5   :  { %335 = vmatprep.subr.bf16.mxu0 %v373_v0  ;;  %346 = vmatpush3.bf16.msra.mxu1 %v345_v13  ;;  %v348_v15 = vpack.c.bf16 %v120_v14, %v119_v10  ;;  %v33_v19 = vld [vmem:[%s522_s1 + $0x30] sm:$0xff]  ;;  %v34_v20 = vld [vmem:[%s522_s1 + $0x38] sm:$0xff]  ;;  %v351_v21 = vpack.c.bf16 %v122_v18, %v121_v17  ;;  %v26_v26 = vld [vmem:[%s524_s0] sm:$0xff] }
   0x6   :  { %347 = vmatprep.subr.bf16.mxu1 %v373_v0  ;;  %v342_v22 = vpack.c.bf16 %v34_v20, %v33_v19  ;;  %v123_v23 = vld [vmem:[%s523_s3 + $0x30] sm:$0xff]  ;;  %v124_v24 = vld [vmem:[%s523_s3 + $0x38] sm:$0xff]  ;;  %v125_v27 = vld [vmem:[%s523_s3 + $0x40] sm:$0xff] }
   0x7   :  { %v354_v25 = vpack.c.bf16 %v124_v24, %v123_v23  ;;  %v126_v28 = vld [vmem:[%s523_s3 + $0x48] sm:$0xff]  ;;  %v127_v30 = vld [vmem:[%s523_s3 + $0x50] sm:$0xff]  ;;  %v128_v31 = vld [vmem:[%s523_s3 + $0x58] sm:$0xff] }
   0x8   :  { %337 = vmatpush3.bf16.msra.mxu0 %v336_v7  ;;  %v357_v29 = vpack.c.bf16 %v126_v28, %v125_v27  ;;  %v360_v32 = vpack.c.bf16 %v128_v31, %v127_v30  ;;  %v129_v33 = vld [vmem:[%s523_s3 + $0x60] sm:$0xff]  ;;  %v130_v34 = vld [vmem:[%s523_s3 + $0x68] sm:$0xff]  ;;  %v131_v36 = vld [vmem:[%s523_s3 + $0x70] sm:$0xff] }
   0x9   :  { %338 = vmatprep.subr.bf16.mxu0 %v373_v0  ;;  %349 = vmatpush3.bf16.msra.mxu1 %v348_v15  ;;  %v363_v35 = vpack.c.bf16 %v130_v34, %v129_v33  ;;  %v132_v37 = vld [vmem:[%s523_s3 + $0x78] sm:$0xff]  ;;  %v247_v39 = vld [vmem:[%s525_s2] ss:$0 sm:$0xff] }
   0xa   :  { %350 = vmatprep.subr.bf16.mxu1 %v373_v0  ;;  %v366_v38 = vpack.c.bf16 %v132_v37, %v131_v36  ;;  %v249_v45 = vld [vmem:[%s526_s4] ss:$0 sm:$0xff] }
   0xb   :  { %v250_v59 = vld [vmem:[%s527_s5] ss:$0 sm:$0xff] }
   0xc   :  { %340 = vmatpush3.bf16.msra.mxu0 %v339_v16  ;;  %v251_v61 = vld [vmem:[%s528_s6] ss:$0 sm:$0xff] }
   0xd   :  { %341 = vmatprep.subr.bf16.mxu0 %v373_v0  ;;  %352 = vmatpush3.bf16.msra.mxu1 %v351_v21 }
   0xe   :  { %353 = vmatprep.subr.bf16.mxu1 %v373_v0 }
  0x10   :  { %343 = vmatpush3.bf16.msra.mxu0 %v342_v22 }
  0x11   :  { %355 = vmatpush3.bf16.msra.mxu1 %v354_v25 }
  0x12   :  { %356 = vmatprep.subr.bf16.mxu1 %v373_v0 }
  0x13   :  { %295 = vmatmul.mubr.msk.f32.vlgmr.msra.gmra.mrb[0].mxu0 %vm42_vm1, %v26_v26 }
  0x15   :  { %358 = vmatpush3.bf16.msra.mxu1 %v357_v29 }
  0x16   :  { %359 = vmatprep.subr.bf16.mxu1 %v373_v0 }
  0x19   :  { %361 = vmatpush3.bf16.msra.mxu1 %v360_v32 }
  0x1a   :  { %362 = vmatprep.subr.bf16.mxu1 %v373_v0 }
  0x1d   :  { %364 = vmatpush3.bf16.msra.mxu1 %v363_v35 }
  0x1e   :  { %365 = vmatprep.subr.bf16.mxu1 %v373_v0 }
  0x21   :  { %367 = vmatpush3.bf16.msra.mxu1 %v366_v38 }
  0xe6   :  { %v112_v40 = vpop.f32.mrb[0].mxu0 }
  0xe7   :  { %v113_v41 = vadd.f32 %v247_v39, %v112_v40  ;;  %v296_v42 = vpop.f32.mrb[1].mxu0 }
  0xe9   :  { %v116_v43 = vmax.f32 %v113_v41, 0.0 }
  0xeb   :  { %330 = vmatmul.mubr.f32.vlgmr.msra.gmra.mrb[0].mxu1 %v116_v43 }
 0x1be   :  { %v199_v44 = vpop.f32.mrb[0].mxu1 }
 0x1bf   :  { %v203_v46 = vadd.f32 %v199_v44, %v26_v26  ;;  %v331_v47 = vpop.f32.mrb[1].mxu1 }
 0x1c1   :  { %v211_v48 = vadd.f32 %v249_v45, %v203_v46 }
 0x1c3   :  { %v214_v49 = vsel %vm42_vm1, %v211_v48, 0.0 }
 0x1c4   :  { %215 = vadd.xlane.f32.xlu0 %v214_v49 }
 0x251   :  { %v216_v50 = vpop.xlane.xlu0 %215 }
 0x252   :  { %v218_v51 = vmul.f32 0.015625, %v216_v50 }
 0x254   :  { %v219_v52 = vsub.f32 %v211_v48, %v218_v51 }
 0x256   :  { %v220_v53 = vmul.f32 %v219_v52, %v219_v52 }
 0x258   :  { %v221_v54 = vsel %vm42_vm1, %v220_v53, 0.0 }
 0x259   :  { %222 = vadd.xlane.f32.xlu0 %v221_v54 }
 0x2e6   :  { %v223_v55 = vpop.xlane.xlu0 %222 }
 0x2e7   :  { %v224_v56 = vmul.f32 0.015625, %v223_v55 }
 0x2e9   :  { %v225_v57 = vadd.f32 1e-05, %v224_v56 }
 0x2eb   :  { %371 = vrsqrt.f32 %v225_v57 }
 0x2f5   :  { %v372_v58 = vpop.eup %371 }
 0x2f6   :  { %v227_v60 = vmul.f32 %v372_v58, %v219_v52 }
 0x2f8   :  { %v234_v62 = vmul.f32 %v250_v59, %v227_v60 }
 0x2fa   :  { %v241_v63 = vadd.f32 %v251_v61, %v234_v62 }
 0x2fc   :  { %242 = vst.msk [vmem:[%s529_s7] sm:$0xff] %vm42_vm1, %v241_v63 }

// kernel: forward.19
= control target key start
LH: loop header
LB: loop body
LE: loop exit
PB: predicated region body
PF: predicated region fallthrough
CT: control target
= control target key end

     0   :  { %s3362_s21 = smov 0   ;;  %s3924_s0 = inlined_call_operand.vmem [shape: f32[2,8,64], index: 0, kind: input, shape index: {}, may-alias: {0,1}]   ;;  %s3925_s1 = inlined_call_operand.vmem [shape: f32[2,8,64], index: 1, kind: input, shape index: {}, may-alias: {0,1}]   ;;  %s3926_s2 = inlined_call_operand.vmem [shape: f32[4,64,16], index: 2, kind: input, shape index: {}]   ;;  %s3927_s3 = inlined_call_operand.vmem [shape: f32[4,1,16], index: 3, kind: input, shape index: {}]   ;;  %s3928_s4 = inlined_call_operand.vmem [shape: f32[4,64,16], index: 4, kind: input, shape index: {}]   ;;  %s3929_s5 = inlined_call_operand.vmem [shape: f32[4,1,16], index: 5, kind: input, shape index: {}]   ;;  %s3930_s6 = inlined_call_operand.vmem [shape: f32[4,64,16], index: 6, kind: input, shape index: {}]   ;;  %s3931_s7 = inlined_call_operand.vmem [shape: f32[4,1,16], index: 7, kind: input, shape index: {}]   ;;  %s3932_s8 = inlined_call_operand.vmem [shape: f32[4,16,64], index: 8, kind: input, shape index: {}]   ;;  %s3933_s9 = inlined_call_operand.vmem [shape: f32[1,64], index: 9, kind: input, shape index: {}]   ;;  %s3934_s10 = inlined_call_operand.vmem [shape: f32[1,64], index: 10, kind: input, shape index: {}]   ;;  %s3935_s11 = inlined_call_operand.vmem [shape: f32[1,64], index: 11, kind: input, shape index: {}]   ;;  %s3936_s12 = inlined_call_operand.vmem [shape: f32[2,8,64], index: 12, kind: output, shape index: {}]  }
   0x1 LB: > { %s2529_s22 = sadd.s32 4294967295, %s3292_s21   ;;  %p2533_p0 = scmp.ge.s32.totalorder %s3292_s21, 1  ;;  %s3292_s21 = sphi %s3362_s21, %s22_s21  }
   0x2   : > { %p370_p1 = scmp.lt.s32.totalorder %s3292_s21, 3 }
   0x4   : > { %p371_p2 = pnand %p2533_p0, %p370_p1 }
   0x5   : > { %v518_v0 = vld [vmem:[%s3928_s4] sm:$0xff] (!%p371_p2)  ;;  %v519_v1 = vld [vmem:[%s3928_s4 + $0x8] sm:$0xff] (!%p371_p2)  ;;  %v3294_v3 = vmov (!%p371_p2), 0.0|0.0   ;;  %v520_v6 = vld [vmem:[%s3928_s4 + $0x10] sm:$0xff] (!%p371_p2)  ;;  %p3392_p3 = scmp.lt.s32.totalorder (!%p371_p2), %s2529_s22, 1  ;;  %vm3295_vm0 = vmmov (!%p371_p2), 0  }
   0x6   : > { %374 = sbr.rel (%p371_p2) target bundleno = 4208 (0x1070), region = 68  ;;  %v428_v2 = vld [vmem:[%s3926_s2] sm:$0xff] (!%p371_p2)  ;;  %3113 = vmatprep.subr.bf16.mxu1 (!%p371_p2), %v3294_v3  ;;  %3101 = vmatprep.subr.bf16.mxu0 (!%p371_p2), %v3294_v3  ;;  %v3114_v4 = vpack.c.bf16 (!%p371_p2), %v519_v1, %v518_v0  ;;  %v429_v5 = vld [vmem:[%s3926_s2 + $0x8] sm:$0xff] (!%p371_p2)  ;;  %v521_v7 = vld [vmem:[%s3928_s4 + $0x18] sm:$0xff] (!%p371_p2)  ;;  %v3296_v11 = vmov (!%p371_p2), 0.0   ;;  %vm443_vm1 = vcmask (!%p371_p2), 523264  }
   0x7   : > { %v3102_v8 = vpack.c.bf16 (!%p371_p2), %v429_v5, %v428_v2  ;;  %v430_v9 = vld [vmem:[%s3926_s2 + $0x10] sm:$0xff] (!%p371_p2)  ;;  %v431_v10 = vld [vmem:[%s3926_s2 + $0x18] sm:$0xff] (!%p371_p2)  ;;  %2840 = vmatprep.mubr.msk.f32.mxu1 (!%p371_p2), %vm3295_vm0, %v3296_v11  ;;  %2821 = vmatprep.mubr.msk.f32.mxu0 (!%p371_p2), %vm3295_vm0, %v3296_v11  ;;  %v3117_v12 = vpack.c.bf16 (!%p371_p2), %v521_v7, %v520_v6  ;;  %v522_v14 = vld [vmem:[%s3928_s4 + $0x20] sm:$0xff] (!%p371_p2)  ;;  %vm691_vm2 = vcmask (!%p371_p2), 130048   ;;  %vm768_vm3 = vcmask (!%p371_p2), 64512  }
   0x8   : > { %3115 = vmatpush3.bf16.msra.mxu1 (!%p371_p2), %v3114_v4  ;;  %v3105_v13 = vpack.c.bf16 (!%p371_p2), %v431_v10, %v430_v9  ;;  %v523_v15 = vld [vmem:[%s3928_s4 + $0x28] sm:$0xff] (!%p371_p2)  ;;  %v432_v16 = vld [vmem:[%s3926_s2 + $0x20] sm:$0xff] (!%p371_p2)  ;;  %v524_v20 = vld [vmem:[%s3928_s4 + $0x30] sm:$0xff] (!%p371_p2) }
   0x9   : > { %3103 = vmatpush3.bf16.msra.mxu0 (!%p371_p2), %v3102_v8  ;;  %3116 = vmatprep.subr.bf16.mxu1 (!%p371_p2), %v3294_v3  ;;  %v433_v17 = vld [vmem:[%s3926_s2 + $0x28] sm:$0xff] (!%p371_p2)  ;;  %v3120_v18 = vpack.c.bf16 (!%p371_p2), %v523_v15, %v522_v14  ;;  %v525_v21 = vld [vmem:[%s3928_s4 + $0x38] sm:$0xff] (!%p371_p2)  ;;  %v434_v22 = vld [vmem:[%s3926_s2 + $0x30] sm:$0xff] (!%p371_p2) }
   0xa   : > { %3104 = vmatprep.subr.bf16.mxu0 (!%p371_p2), %v3294_v3  ;;  %v3108_v19 = vpack.c.bf16 (!%p371_p2), %v433_v17, %v432_v16  ;;  %v435_v23 = vld [vmem:[%s3926_s2 + $0x38] sm:$0xff] (!%p371_p2)  ;;  %v3123_v24 = vpack.c.bf16 (!%p371_p2), %v525_v21, %v524_v20  ;;  %v2539_v28 = vld [vmem:[%s3929_s5] ss:$0 sm:$0xff] (!%p371_p2)  ;;  %v607_v38 = vld [vmem:[%s3930_s6 + $0x8] sm:$0xff] (!%p371_p2) }
   0xb   : > { %v3111_v25 = vpack.c.bf16 (!%p371_p2), %v435_v23, %v434_v22  ;;  %v2537_v29 = vld [vmem:[%s3927_s3] ss:$0 sm:$0xff] (!%p371_p2)  ;;  %v608_v39 = vld [vmem:[%s3930_s6 + $0x10] sm:$0xff] (!%p371_p2)  ;;  %v609_v41 = vld [vmem:[%s3930_s6 + $0x18] sm:$0xff] (!%p371_p2) }
   0xc   : > { %3118 = vmatpush3.bf16.msra.mxu1 (!%p371_p2), %v3117_v12  ;;  %v606_v37 = vld [vmem:[%s3930_s6] sm:$0xff] (!%p371_p2)  ;;  %v3129_v42 = vpack.c.bf16 (!%p371_p2), %v609_v41, %v608_v39  ;;  %v611_v44 = vld [vmem:[%s3930_s6 + $0x28] sm:$0xff] (!%p371_p2)  ;;  %v612_v46 = vld [vmem:[%s3930_s6 + $0x30] sm:$0xff] (!%p371_p2) }
   0xd   : > { %s3939_s22 = smov (!%p3392_p3, %s2529_s22), 1  ;;  %3106 = vmatpush3.bf16.msra.mxu0 %v3105_v13  ;;  %3119 = vmatprep.subr.bf16.mxu1 %v3294_v3  ;;  %v3126_v40 = vpack.c.bf16 %v607_v38, %v606_v37  ;;  %v610_v43 = vld [vmem:[%s3930_s6 + $0x20] sm:$0xff]  ;;  %v613_v47 = vld [vmem:[%s3930_s6 + $0x38] sm:$0xff]  ;;  %v2558_v61 = vld [vmem:[%s3928_s4 + $0x48] sm:$0xff] }
   0xe   : > { %3107 = vmatprep.subr.bf16.mxu0 %v3294_v3  ;;  %s3438_s24 = sshll.u32 %s3939_s22, 3  ;;  %v3132_v45 = vpack.c.bf16 %v611_v44, %v610_v43  ;;  %v3135_v48 = vpack.c.bf16 %v613_v47, %v612_v46  ;;  %v2541_v58 = vld [vmem:[%s3931_s7] ss:$0 sm:$0xff]  ;;  %v2559_v0 = vld [vmem:[%s3928_s4 + $0x50] sm:$0xff]  ;;  %v2560_v1 = vld [vmem:[%s3928_s4 + $0x58] sm:$0xff] }
   0xf   : > { %s421_s27 = scalar_lea.vmem %s3925_s1, %s3438_s24  ;;  %s417_s30 = scalar_lea.vmem %s3924_s0, %s3438_s24  ;;  %v2557_v60 = vld [vmem:[%s3928_s4 + $0x40] sm:$0xff]  ;;  %v3153_v2 = vpack.c.bf16 %v2560_v1, %v2559_v0  ;;  %v2562_v5 = vld [vmem:[%s3928_s4 + $0x68] sm:$0xff]  ;;  %v2563_v7 = vld [vmem:[%s3928_s4 + $0x70] sm:$0xff] }
  0x10   : > { %3121 = vmatpush3.bf16.msra.mxu1 %v3120_v18  ;;  %v3450_v26 = vld [vmem:[%s421_s27] sm:$0xff]  ;;  %v3150_v63 = vpack.c.bf16 %v2558_v61, %v2557_v60  ;;  %v2564_v8 = vld [vmem:[%s3928_s4 + $0x78] sm:$0xff]  ;;  %v2547_v13 = vld [vmem:[%s3926_s2 + $0x48] sm:$0xff]  ;;  %s425_s22 = scalar_lea.vmem %s3936_s12, %s3438_s24 }
  0x11   : > { %3109 = vmatpush3.bf16.msra.mxu0 %v3108_v19  ;;  %3122 = vmatprep.subr.bf16.mxu1 %v3294_v3  ;;  %v3452_v27 = vld [vmem:[%s417_s30] sm:$0xff]  ;;  %v3159_v9 = vpack.c.bf16 %v2564_v8, %v2563_v7  ;;  %v2548_v17 = vld [vmem:[%s3926_s2 + $0x50] sm:$0xff]  ;;  %v2549_v18 = vld [vmem:[%s3926_s2 + $0x58] sm:$0xff] }
  0x12   : > { %3110 = vmatprep.subr.bf16.mxu0 %v3294_v3  ;;  %v2561_v4 = vld [vmem:[%s3928_s4 + $0x60] sm:$0xff]  ;;  %v3141_v19 = vpack.c.bf16 %v2549_v18, %v2548_v17  ;;  %v2551_v21 = vld [vmem:[%s3926_s2 + $0x68] sm:$0xff]  ;;  %v2552_v23 = vld [vmem:[%s3926_s2 + $0x70] sm:$0xff] }
  0x13   : > { %v3156_v6 = vpack.c.bf16 %v2562_v5, %v2561_v4  ;;  %v2546_v12 = vld [vmem:[%s3926_s2 + $0x40] sm:$0xff]  ;;  %v2574_v37 = vld [vmem:[%s3930_s6 + $0x70] sm:$0xff]  ;;  %v2575_v38 = vld [vmem:[%s3930_s6 + $0x78] sm:$0xff] }
  0x14   : > { %3124 = vmatpush3.bf16.msra.mxu1 %v3123_v24  ;;  %v3138_v15 = vpack.c.bf16 %v2547_v13, %v2546_v12  ;;  %v2550_v20 = vld [vmem:[%s3926_s2 + $0x60] sm:$0xff]  ;;  %v2553_v24 = vld [vmem:[%s3926_s2 + $0x78] sm:$0xff]  ;;  %v3171_v39 = vpack.c.bf16 %v2575_v38, %v2574_v37  ;;  %v854_v41 = vld [vmem:[%s3932_s8 + $0x8] sm:$0xff] }
  0x15   : > { %3112 = vmatpush3.bf16.msra.mxu0 %v3111_v25  ;;  %2862 = vmatprep.subr.mxu1 %v3296_v11  ;;  %v3144_v22 = vpack.c.bf16 %v2551_v21, %v2550_v20  ;;  %v3147_v25 = vpack.c.bf16 %v2553_v24, %v2552_v23  ;;  %v2566_v43 = vld [vmem:[%s3929_s5 + $0x1] ss:$0 sm:$0xff]  ;;  %v2603_v21 = vld [vmem:[%s3928_s4 + $0xb0] sm:$0xff]  ;;  %v2593_v38 = vld [vmem:[%s3926_s2 + $0xb8] sm:$0xff] }
  0x16   : > { %3125 = vmatprep.subr.bf16.mxu0 %v3294_v3  ;;  %v2597_v5 = vld [vmem:[%s3928_s4 + $0x80] sm:$0xff]  ;;  %v2592_v37 = vld [vmem:[%s3926_s2 + $0xb0] sm:$0xff] }
  0x17   : > { %2841 = vmatmul.mubr.msk.f32.vlgmr.msra.gmra.mrb[0].mxu1 %vm443_vm1, %v3450_v26  ;;  %v2601_v18 = vld [vmem:[%s3928_s4 + $0xa0] sm:$0xff] }
  0x18   : > { %2822 = vmatmul.mubr.msk.f32.vlgmr.msra.gmra.mrb[0].mxu0 %vm443_vm1, %v3452_v27  ;;  %2864 = vmatprep.mubr.msk.f32.mxu1 %vm3295_vm0, %v3296_v11  ;;  %v2586_v24 = vld [vmem:[%s3926_s2 + $0x80] sm:$0xff] }
  0x19   : > { %2859 = vmatprep.mubr.msk.f32.mxu0 %vm3295_vm0, %v3296_v11  ;;  %3127 = vmatpush3.bf16.msra.mxu0 %v3126_v40  ;;  %v853_v40 = vld [vmem:[%s3932_s8] sm:$0xff] }
  0x1a   : > { %3128 = vmatprep.subr.bf16.mxu0 %v3294_v3 }
  0x1d   : > { %3130 = vmatpush3.bf16.msra.mxu0 %v3129_v42  ;;  %v3177_v42 = vpack.c.bf16 %v854_v41, %v853_v40  ;;  %v2606_v40 = vld [vmem:[%s3929_s5 + $0x2] ss:$0 sm:$0xff] }
  0x1e   : > { %3131 = vmatprep.subr.bf16.mxu0 %v3294_v3 }
  0x21   : > { %3133 = vmatpush3.bf16.msra.mxu0 %v3132_v45 }
  0x22   : > { %3134 = vmatprep.subr.bf16.mxu0 %v3294_v3 }
  0x25   : > { %3136 = vmatpush3.bf16.msra.mxu0 %v3135_v48 }
  0x26   : > { %3149 = vmatprep.subr.bf16.mxu0 %v3294_v3 }
  0x28   : > { %2860 = vmatmul.mubr.msk.f32.vlgmr.msra.gmra.mrb[2].mxu0 %vm443_vm1, %v3450_v26 }
  0x29   : > { %2907 = vmatprep.mubr.msk.f32.mxu0 %vm3295_vm0, %v3296_v11  ;;  %3151 = vmatpush3.bf16.msra.mxu0 %v3150_v63 }
  0x2a   : > { %3152 = vmatprep.subr.bf16.mxu0 %v3294_v3 }
  0x2d   : > { %3154 = vmatpush3.bf16.msra.mxu0 %v3153_v2 }
  0x2e   : > { %3155 = vmatprep.subr.bf16.mxu0 %v3294_v3 }
  0x31   : > { %3157 = vmatpush3.bf16.msra.mxu0 %v3156_v6  ;;  %v2598_v6 = vld [vmem:[%s3928_s4 + $0x88] sm:$0xff] }
  0x32   : > { %3158 = vmatprep.subr.bf16.mxu0 %v3294_v3  ;;  %v3192_v7 = vpack.c.bf16 %v2598_v6, %v2597_v5 }
  0x35   : > { %3160 = vmatpush3.bf16.msra.mxu0 %v3159_v9  ;;  %v2582_v9 = vld [vmem:[%s3932_s8 + $0x10] sm:$0xff] }
  0x36   : > { %2929 = vmatprep.subr.mxu0 %v3296_v11 }
  0x38   : > { %2908 = vmatmul.mubr.msk.f32.vlgmr.msra.gmra.mrb[4].mxu0 %vm443_vm1, %v3450_v26 }
  0x39   : > { %2931 = vmatprep.mubr.msk.f32.mxu0 %vm3295_vm0, %v3296_v11 }
  0xea   : > { %v602_v30 = vpop.f32.mrb[0].mxu1 }
  0xeb   : > { %v603_v31 = vadd.f32 %v2539_v28, %v602_v30  ;;  %v513_v32 = vpop.f32.mrb[0].mxu0  ;;  %v2842_v33 = vpop.f32.mrb[1].mxu1  ;;  %v2568_v28 = vld [vmem:[%s3930_s6 + $0x40] sm:$0xff] }
  0xec   : > { %v514_v34 = vadd.f32 %v2537_v29, %v513_v32  ;;  %v2823_v35 = vpop.f32.mrb[1].mxu0  ;;  %v2569_v29 = vld [vmem:[%s3930_s6 + $0x48] sm:$0xff]  ;;  %v2571_v32 = vld [vmem:[%s3930_s6 + $0x58] sm:$0xff] }
  0xed   : > { %2863 = vmatpush3.xpose.msk.msra.mxu1 %vm691_vm2, %v603_v31  ;;  %v3162_v30 = vpack.c.bf16 %v2569_v29, %v2568_v28  ;;  %v2570_v31 = vld [vmem:[%s3930_s6 + $0x50] sm:$0xff]  ;;  %v2573_v35 = vld [vmem:[%s3930_s6 + $0x68] sm:$0xff] }
  0xee   : > { %v517_v36 = vmul.f32 0.25, %v514_v34  ;;  %2867 = vmatprep.subr.mxu1 %v3296_v11  ;;  %v3165_v33 = vpack.c.bf16 %v2571_v32, %v2570_v31  ;;  %v2572_v34 = vld [vmem:[%s3930_s6 + $0x60] sm:$0xff]  ;;  %v2588_v29 = vld [vmem:[%s3926_s2 + $0x90] sm:$0xff] }
  0xf0   : > { %2865 = vmatmul.mubr.msk.f32.vlgmr.msra.gmra.mrb[2].mxu1 %vm691_vm2, %v517_v36  ;;  %v3168_v36 = vpack.c.bf16 %v2573_v35, %v2572_v34  ;;  %v2590_v34 = vld [vmem:[%s3926_s2 + $0xa0] sm:$0xff]  ;;  %v2591_v35 = vld [vmem:[%s3926_s2 + $0xa8] sm:$0xff] }
  0xf1   : > { %2869 = vmatprep.mubr.msk.f32.mxu1 %vm3295_vm0, %v3296_v11 }
  0xfb   : > { %v687_v57 = vpop.f32.mrb[2].mxu0 }
  0xfc   : > { %v2861_v59 = vpop.f32.mrb[3].mxu0  ;;  %v688_v62 = vadd.f32 %v2541_v58, %v687_v57 }
  0xfe   : > { %2868 = vmatpush3.msra.mxu1 %v688_v62 }
  0xff   : > { %3137 = vmatprep.subr.bf16.mxu1 %v3294_v3 }
 0x10b   : > { %v1026_v44 = vpop.f32.mrb[4].mxu0 }
 0x10c   : > { %v1027_v45 = vadd.f32 %v2566_v43, %v1026_v44  ;;  %v2909_v46 = vpop.f32.mrb[5].mxu0 }
 0x10e   : > { %2930 = vmatpush3.xpose.msk.msra.mxu0 %vm691_vm2, %v1027_v45 }
 0x10f   : > { %2934 = vmatprep.subr.mxu0 %v3296_v11 }
 0x1c3   : > { %v764_v49 = vpop.f32.mrb[2].mxu1 }
 0x1c4   : > { %v2866_v50 = vpop.f32.mrb[3].mxu1  ;;  %v769_v51 = vsel %vm768_vm3, %v764_v49, -inf }
 0x1c5   : > { %770 = vmax.xlane.f32.xlu0 %v769_v51 }
 0x252   : > { %v771_v52 = vpop.xlane.xlu0 %770 }
 0x253   : > { %v772_v53 = vsub.f32 %v764_v49, %v771_v52  ;;  %v2555_v49 = vld [vmem:[%s3927_s3 + $0x1] ss:$0 sm:$0xff] }
 0x255   : > { %v773_v54 = vmul.f32 1.442695, %v772_v53 }
 0x257   : > { %3268 = vpow2.f32 %v773_v54  ;;  %v2577_v54 = vld [vmem:[%s3931_s7 + $0x1] ss:$0 sm:$0xff] }
 0x261   : > { %v3269_v55 = vpop.eup %3268 }
 0x262   : > { %v775_v56 = vsel %vm768_vm3, %v3269_v55, 0.0 }
 0x263   : > { %776 = vadd.xlane.f32.xlu0 %v775_v56 }
 0x2f0   : > { %v777_v10 = vpop.xlane.xlu0 %776 }
 0x2f1   : > { %3270 = vrcp.f32 %v777_v10  ;;  %v2583_v10 = vld [vmem:[%s3932_s8 + $0x18] sm:$0xff] }
 0x2f2   : > { %v3174_v13 = vpack.c.bf16 %v2583_v10, %v2582_v9  ;;  %v2617_v10 = vld [vmem:[%s3931_s7 + $0x2] ss:$0 sm:$0xff] }
 0x2fb   : > { %v3271_v14 = vpop.eup %3270 }
 0x2fc   : > { %v779_v16 = vmul.f32 %v3271_v14, %v3269_v55 }
 0x2fe   : > { %2870 = vmatmul.mubr.msk.f32.vlgmr.msra.gmra.mrb[4].mxu1 %vm768_vm3, %v779_v16  ;;  %v2600_v16 = vld [vmem:[%s3928_s4 + $0x98] sm:$0xff] }
 0x2ff   : > { %3139 = vmatpush3.bf16.msra.mxu1 %v3138_v15  ;;  %2888 = vmatprep.mubr.msk.f32.mxu1 %vm3295_vm0, %v3296_v11  ;;  %v2599_v15 = vld [vmem:[%s3928_s4 + $0x90] sm:$0xff] }
 0x300   : > { %3140 = vmatprep.subr.bf16.mxu1 %v3294_v3  ;;  %v3195_v17 = vpack.c.bf16 %v2600_v16, %v2599_v15  ;;  %v2637_v15 = vld [vmem:[%s3928_s4 + $0xc8] sm:$0xff] }
 0x303   : > { %3142 = vmatpush3.bf16.msra.mxu1 %v3141_v19  ;;  %v2602_v19 = vld [vmem:[%s3928_s4 + $0xa8] sm:$0xff] }
 0x304   : > { %3143 = vmatprep.subr.bf16.mxu1 %v3294_v3  ;;  %v3198_v20 = vpack.c.bf16 %v2602_v19, %v2601_v18  ;;  %v2622_v18 = vld [vmem:[%s3932_s8 + $0x20] sm:$0xff]  ;;  %v2623_v19 = vld [vmem:[%s3932_s8 + $0x28] sm:$0xff] }
 0x307   : > { %3145 = vmatpush3.bf16.msra.mxu1 %v3144_v22  ;;  %v2604_v22 = vld [vmem:[%s3928_s4 + $0xb8] sm:$0xff] }
 0x308   : > { %3146 = vmatprep.subr.bf16.mxu1 %v3294_v3  ;;  %v3201_v23 = vpack.c.bf16 %v2604_v22, %v2603_v21  ;;  %v3216_v21 = vpack.c.bf16 %v2623_v19, %v2622_v18  ;;  %v2656_v19 = vld [vmem:[%s3931_s7 + $0x3] ss:$0 sm:$0xff] }
 0x30b   : > { %3148 = vmatpush3.bf16.msra.mxu1 %v3147_v25  ;;  %v2587_v25 = vld [vmem:[%s3926_s2 + $0x88] sm:$0xff] }
 0x30c   : > { %3161 = vmatprep.subr.bf16.mxu1 %v3294_v3  ;;  %v3180_v28 = vpack.c.bf16 %v2587_v25, %v2586_v24  ;;  %v2639_v24 = vld [vmem:[%s3928_s4 + $0xd8] sm:$0xff] }
 0x30e   : > { %2889 = vmatmul.mubr.msk.f32.vlgmr.msra.gmra.mrb[6].mxu1 %vm443_vm1, %v3452_v27 }
 0x30f   : > { %3163 = vmatpush3.bf16.msra.mxu1 %v3162_v30  ;;  %2926 = vmatprep.mubr.msk.f32.mxu1 %vm3295_vm0, %v3296_v11  ;;  %v2589_v30 = vld [vmem:[%s3926_s2 + $0x98] sm:$0xff] }
 0x310   : > { %3164 = vmatprep.subr.bf16.mxu1 %v3294_v3 }
 0x313   : > { %3166 = vmatpush3.bf16.msra.mxu1 %v3165_v33  ;;  %v3183_v33 = vpack.c.bf16 %v2589_v30, %v2588_v29  ;;  %v2641_v29 = vld [vmem:[%s3928_s4 + $0xe8] sm:$0xff] }
 0x314   : > { %3167 = vmatprep.subr.bf16.mxu1 %v3294_v3 }
 0x317   : > { %3169 = vmatpush3.bf16.msra.mxu1 %v3168_v36  ;;  %v3186_v36 = vpack.c.bf16 %v2591_v35, %v2590_v34  ;;  %v2625_v34 = vld [vmem:[%s3926_s2 + $0xc0] sm:$0xff]  ;;  %v2626_v35 = vld [vmem:[%s3926_s2 + $0xc8] sm:$0xff] }
 0x318   : > { %3170 = vmatprep.subr.bf16.mxu1 %v3294_v3 }
 0x31b   : > { %3172 = vmatpush3.bf16.msra.mxu1 %v3171_v39  ;;  %v3189_v39 = vpack.c.bf16 %v2593_v38, %v2592_v37  ;;  %v2627_v37 = vld [vmem:[%s3926_s2 + $0xd0] sm:$0xff]  ;;  %v2628_v38 = vld [vmem:[%s3926_s2 + $0xd8] sm:$0xff] }
 0x31c   : > { %3176 = vmatprep.subr.bf16.mxu1 %v3294_v3 }
 0x31e   : > { %2927 = vmatmul.mubr.msk.f32.vlgmr.msra.gmra.mrb[8].mxu1 %vm443_vm1, %v3450_v26 }
 0x31f   : > { %3178 = vmatpush3.bf16.msra.mxu1 %v3177_v42  ;;  %2950 = vmatprep.mubr.msk.f32.mxu1 %vm3295_vm0, %v3296_v11 }
 0x320   : > { %3191 = vmatprep.subr.bf16.mxu1 %v3294_v3 }
 0x3d1   : > { %v849_v47 = vpop.f32.mrb[4].mxu1 }
 0x3d2   : > { %v2871_v48 = vpop.f32.mrb[5].mxu1  ;;  %2951 = vmatmul.mubr.msk.f32.vlgmr.msra.gmra.mrb[10].mxu1 %vm691_vm2, %v849_v47  ;;  %v2595_v47 = vld [vmem:[%s3927_s3 + $0x2] ss:$0 sm:$0xff] }
 0x3d3   : > { %2988 = vmatprep.mubr.msk.f32.mxu1 %vm3295_vm0, %v3296_v11  ;;  %3193 = vmatpush3.bf16.msra.mxu1 %v3192_v7 }
 0x3d4   : > { %3194 = vmatprep.subr.bf16.mxu1 %v3294_v3 }
 0x3d7   : > { %3196 = vmatpush3.bf16.msra.mxu1 %v3195_v17 }
 0x3d8   : > { %3197 = vmatprep.subr.bf16.mxu1 %v3294_v3 }
 0x3db   : > { %3199 = vmatpush3.bf16.msra.mxu1 %v3198_v20 }
 0x3dc   : > { %3200 = vmatprep.subr.bf16.mxu1 %v3294_v3 }
 0x3df   : > { %3202 = vmatpush3.bf16.msra.mxu1 %v3201_v23  ;;  %v2638_v23 = vld [vmem:[%s3928_s4 + $0xd0] sm:$0xff] }
 0x3e0   : > { %3010 = vmatprep.subr.mxu1 %v3296_v11  ;;  %v3234_v25 = vpack.c.bf16 %v2639_v24, %v2638_v23  ;;  %v2662_v23 = vld [vmem:[%s3932_s8 + $0x38] sm:$0xff] }
 0x3e1   : > { %v938_v50 = vpop.f32.mrb[6].mxu1 }
 0x3e2   : > { %v939_v51 = vadd.f32 %v2555_v49, %v938_v50  ;;  %v2890_v52 = vpop.f32.mrb[7].mxu1  ;;  %2989 = vmatmul.mubr.msk.f32.vlgmr.msra.gmra.mrb[12].mxu1 %vm443_vm1, %v3450_v26 }
 0x3e3   : > { %3012 = vmatprep.mubr.msk.f32.mxu1 %vm3295_vm0, %v3296_v11  ;;  %v2608_v52 = vld [vmem:[%s3930_s6 + $0x80] sm:$0xff] }
 0x3e4   : > { %v942_v53 = vmul.f32 0.25, %v939_v51 }
 0x3e6   : > { %2932 = vmatmul.mubr.msk.f32.vlgmr.msra.gmra.mrb[6].mxu0 %vm691_vm2, %v942_v53  ;;  %v2609_v53 = vld [vmem:[%s3930_s6 + $0x88] sm:$0xff] }
 0x3e7   : > { %2936 = vmatprep.mubr.msk.f32.mxu0 %vm3295_vm0, %v3296_v11 }
 0x3f1   : > { %v1113_v55 = vpop.f32.mrb[8].mxu1 }
 0x3f2   : > { %v1114_v56 = vadd.f32 %v2577_v54, %v1113_v55  ;;  %v2928_v57 = vpop.f32.mrb[9].mxu1  ;;  %v2610_v54 = vld [vmem:[%s3930_s6 + $0x90] sm:$0xff]  ;;  %v3204_v55 = vpack.c.bf16 %v2609_v53, %v2608_v52 }
 0x3f4   : > { %2935 = vmatpush3.msra.mxu0 %v1114_v56  ;;  %v2611_v56 = vld [vmem:[%s3930_s6 + $0x98] sm:$0xff] }
 0x3f5   : > { %3173 = vmatprep.subr.bf16.mxu0 %v3294_v3  ;;  %v3207_v57 = vpack.c.bf16 %v2611_v56, %v2610_v54  ;;  %v2634_v56 = vld [vmem:[%s3927_s3 + $0x3] ss:$0 sm:$0xff] }
 0x4a5   : > { %v3637_v58 = vpop.f32.mrb[10].mxu1 }
 0x4a6   : > { %v2952_v59 = vpop.f32.mrb[11].mxu1 }
 0x4a7   : > { %v2613_v59 = vld [vmem:[%s3930_s6 + $0xa8] sm:$0xff] }
 0x4b5   : > { %v1597_v41 = vpop.f32.mrb[12].mxu1 }
 0x4b6   : > { %v1598_v42 = vadd.f32 %v2606_v40, %v1597_v41  ;;  %v2990_v43 = vpop.f32.mrb[13].mxu1  ;;  %v3222_v41 = vpack.c.bf16 %v2628_v38, %v2627_v37 }
 0x4b7   : > { %v2630_v43 = vld [vmem:[%s3926_s2 + $0xe8] sm:$0xff] }
 0x4b8   : > { %3011 = vmatpush3.xpose.msk.msra.mxu1 %vm691_vm2, %v1598_v42  ;;  %v2629_v42 = vld [vmem:[%s3926_s2 + $0xe0] sm:$0xff] }
 0x4b9   : > { %v1189_v60 = vpop.f32.mrb[6].mxu0  ;;  %3015 = vmatprep.subr.mxu1 %v3296_v11 }
 0x4ba   : > { %v2933_v61 = vpop.f32.mrb[7].mxu0  ;;  %v1193_v62 = vsel %vm768_vm3, %v1189_v60, -inf }
 0x4bb   : > { %1194 = vmax.xlane.f32.xlu1 %v1193_v62  ;;  %v2614_v61 = vld [vmem:[%s3930_s6 + $0xb0] sm:$0xff]  ;;  %v2615_v62 = vld [vmem:[%s3930_s6 + $0xb8] sm:$0xff] }
 0x548   : > { %v1195_v63 = vpop.xlane.xlu1 %1194 }
 0x549   : > { %v1196_v0 = vsub.f32 %v1189_v60, %v1195_v63  ;;  %v3213_v63 = vpack.c.bf16 %v2615_v62, %v2614_v61  ;;  %v2647_v61 = vld [vmem:[%s3930_s6 + $0xc0] sm:$0xff]  ;;  %v2649_v62 = vld [vmem:[%s3930_s6 + $0xd0] sm:$0xff] }
 0x54b   : > { %v1197_v1 = vmul.f32 1.442695, %v1196_v0 }
 0x54d   : > { %3272 = vpow2.f32 %v1197_v1 }
 0x557   : > { %v3273_v2 = vpop.eup %3272 }
 0x558   : > { %v1199_v4 = vsel %vm768_vm3, %v3273_v2, 0.0 }
 0x559   : > { %1200 = vadd.xlane.f32.xlu1 %v1199_v4 }
 0x5e6   : > { %v1201_v8 = vpop.xlane.xlu1 %1200 }
 0x5e7   : > { %3274 = vrcp.f32 %v1201_v8 }
 0x5f1   : > { %v3275_v12 = vpop.eup %3274 }
 0x5f2   : > { %v1203_v14 = vmul.f32 %v3275_v12, %v3273_v2 }
 0x5f4   : > { %2937 = vmatmul.mubr.msk.f32.vlgmr.msra.gmra.mrb[8].mxu0 %vm768_vm3, %v1203_v14  ;;  %v2636_v14 = vld [vmem:[%s3928_s4 + $0xc0] sm:$0xff] }
 0x5f5   : > { %3175 = vmatpush3.bf16.msra.mxu0 %v3174_v13  ;;  %2943 = vmatprep.mubr.msk.f32.mxu0 %vm3295_vm0, %v3296_v11  ;;  %v3231_v16 = vpack.c.bf16 %v2637_v15, %v2636_v14 }
 0x5f6   : > { %3179 = vmatprep.subr.bf16.mxu0 %v3294_v3 }
 0x6c7   : > { %v1273_v31 = vpop.f32.mrb[8].mxu0 }
 0x6c8   : > { %v2938_v32 = vpop.f32.mrb[9].mxu0  ;;  %2944 = vmatmul.mubr.msk.f32.vlgmr.msra.gmra.mrb[10].mxu0 %vm691_vm2, %v1273_v31  ;;  %v2642_v31 = vld [vmem:[%s3928_s4 + $0xf0] sm:$0xff] }
 0x6c9   : > { %3181 = vmatpush3.bf16.msra.mxu0 %v3180_v28  ;;  %2969 = vmatprep.mubr.msk.f32.mxu0 %vm3295_vm0, %v3296_v11  ;;  %v2640_v28 = vld [vmem:[%s3928_s4 + $0xe0] sm:$0xff]  ;;  %v2643_v32 = vld [vmem:[%s3928_s4 + $0xf8] sm:$0xff] }
 0x6ca   : > { %3182 = vmatprep.subr.bf16.mxu0 %v3294_v3  ;;  %v3237_v30 = vpack.c.bf16 %v2641_v29, %v2640_v28 }
 0x6cd   : > { %3184 = vmatpush3.bf16.msra.mxu0 %v3183_v33  ;;  %v3240_v33 = vpack.c.bf16 %v2643_v32, %v2642_v31  ;;  %v2664_v31 = vld [vmem:[%s3933_s9] ss:$0 sm:$0xff] }
 0x6ce   : > { %3185 = vmatprep.subr.bf16.mxu0 %v3294_v3 }
 0x6d1   : > { %3187 = vmatpush3.bf16.msra.mxu0 %v3186_v36  ;;  %v3219_v36 = vpack.c.bf16 %v2626_v35, %v2625_v34 }
 0x6d2   : > { %3188 = vmatprep.subr.bf16.mxu0 %v3294_v3 }
 0x6d5   : > { %3190 = vmatpush3.bf16.msra.mxu0 %v3189_v39 }
 0x6d6   : > { %3203 = vmatprep.subr.bf16.mxu0 %v3294_v3 }
 0x6d8   : > { %2970 = vmatmul.mubr.msk.f32.vlgmr.msra.gmra.mrb[12].mxu0 %vm443_vm1, %v3452_v27 }
 0x6d9   : > { %3007 = vmatprep.mubr.msk.f32.mxu0 %vm3295_vm0, %v3296_v11  ;;  %3205 = vmatpush3.bf16.msra.mxu0 %v3204_v55 }
 0x6da   : > { %3206 = vmatprep.subr.bf16.mxu0 %v3294_v3 }
 0x6dd   : > { %3208 = vmatpush3.bf16.msra.mxu0 %v3207_v57 }
 0x6de   : > { %3209 = vmatprep.subr.bf16.mxu0 %v3294_v3 }
 0x79b   : > { %v1349_v44 = vpop.f32.mrb[10].mxu0 }
 0x79c   : > { %v3724_v45 = vadd.f32 %v3637_v58, %v1349_v44  ;;  %v2945_v46 = vpop.f32.mrb[11].mxu0  ;;  %v2612_v58 = vld [vmem:[%s3930_s6 + $0xa0] sm:$0xff]  ;;  %v3225_v44 = vpack.c.bf16 %v2630_v43, %v2629_v42 }
 0x79d   : > { %v3210_v60 = vpack.c.bf16 %v2613_v59, %v2612_v58  ;;  %v2631_v46 = vld [vmem:[%s3926_s2 + $0xf0] sm:$0xff] }
 0x79f   : > { %3211 = vmatpush3.bf16.msra.mxu0 %v3210_v60 }
 0x7a0   : > { %3212 = vmatprep.subr.bf16.mxu0 %v3294_v3 }
 0x7a3   : > { %3214 = vmatpush3.bf16.msra.mxu0 %v3213_v63 }
 0x7a4   : > { %3230 = vmatprep.subr.bf16.mxu0 %v3294_v3 }
 0x7a6   : > { %3008 = vmatmul.mubr.msk.f32.vlgmr.msra.gmra.mrb[14].mxu0 %vm443_vm1, %v3450_v26 }
 0x7a7   : > { %3062 = vmatprep.mubr.msk.f32.mxu0 %vm3295_vm0, %v3296_v11  ;;  %3232 = vmatpush3.bf16.msra.mxu0 %v3231_v16 }
 0x7a8   : > { %3233 = vmatprep.subr.bf16.mxu0 %v3294_v3 }
 0x7ab   : > { %v1509_v48 = vpop.f32.mrb[12].mxu0  ;;  %3235 = vmatpush3.bf16.msra.mxu0 %v3234_v25 }
 0x7ac   : > { %v1510_v49 = vadd.f32 %v2595_v47, %v1509_v48  ;;  %v2971_v50 = vpop.f32.mrb[13].mxu0  ;;  %3236 = vmatprep.subr.bf16.mxu0 %v3294_v3  ;;  %v2632_v47 = vld [vmem:[%s3926_s2 + $0xf8] sm:$0xff] }
 0x7ad   : > { %v3228_v48 = vpack.c.bf16 %v2632_v47, %v2631_v46  ;;  %v2666_v47 = vld [vmem:[%s3935_s11] ss:$0 sm:$0xff] }
 0x7ae   : > { %v1513_v51 = vmul.f32 0.25, %v1510_v49  ;;  %v2645_v49 = vld [vmem:[%s3929_s5 + $0x3] ss:$0 sm:$0xff] }
 0x7af   : > { %3238 = vmatpush3.bf16.msra.mxu0 %v3237_v30 }
 0x7b0   : > { %3013 = vmatmul.mubr.msk.f32.vlgmr.msra.gmra.mrb[14].mxu1 %vm691_vm2, %v1513_v51  ;;  %3239 = vmatprep.subr.bf16.mxu0 %v3294_v3 }
 0x7b1   : > { %3017 = vmatprep.mubr.msk.f32.mxu1 %vm3295_vm0, %v3296_v11 }
 0x7b3   : > { %3241 = vmatpush3.bf16.msra.mxu0 %v3240_v33 }
 0x7b4   : > { %3084 = vmatprep.subr.mxu0 %v3296_v11 }
 0x7b6   : > { %3063 = vmatmul.mubr.msk.f32.vlgmr.msra.gmra.mrb[16].mxu0 %vm443_vm1, %v3450_v26 }
 0x7b7   : > { %3086 = vmatprep.mubr.msk.f32.mxu0 %vm3295_vm0, %v3296_v11 }
 0x879   : > { %v1684_v9 = vpop.f32.mrb[14].mxu0 }
 0x87a   : > { %v3009_v12 = vpop.f32.mrb[15].mxu0  ;;  %v1685_v13 = vadd.f32 %v2617_v10, %v1684_v9 }
 0x87c   : > { %3016 = vmatpush3.msra.mxu1 %v1685_v13 }
 0x87d   : > { %3215 = vmatprep.subr.bf16.mxu1 %v3294_v3 }
 0x883   : > { %v1760_v0 = vpop.f32.mrb[14].mxu1 }
 0x884   : > { %v3014_v1 = vpop.f32.mrb[15].mxu1  ;;  %v1764_v2 = vsel %vm768_vm3, %v1760_v0, -inf }
 0x885   : > { %1765 = vmax.xlane.f32.xlu0 %v1764_v2  ;;  %v2651_v2 = vld [vmem:[%s3930_s6 + $0xe0] sm:$0xff] }
 0x889   : > { %v2096_v50 = vpop.f32.mrb[16].mxu0 }
 0x88a   : > { %v2097_v51 = vadd.f32 %v2645_v49, %v2096_v50  ;;  %v3064_v52 = vpop.f32.mrb[17].mxu0 }
 0x88c   : > { %3085 = vmatpush3.xpose.msk.msra.mxu0 %vm691_vm2, %v2097_v51 }
 0x88d   : > { %3089 = vmatprep.subr.mxu0 %v3296_v11 }
 0x912   : > { %v1766_v4 = vpop.xlane.xlu0 %1765 }
 0x913   : > { %v1767_v5 = vsub.f32 %v1760_v0, %v1766_v4  ;;  %v2650_v0 = vld [vmem:[%s3930_s6 + $0xd8] sm:$0xff]  ;;  %v2652_v4 = vld [vmem:[%s3930_s6 + $0xe8] sm:$0xff] }
 0x914   : > { %v3246_v1 = vpack.c.bf16 %v2650_v0, %v2649_v62 }
 0x915   : > { %v1768_v6 = vmul.f32 1.442695, %v1767_v5  ;;  %v3249_v5 = vpack.c.bf16 %v2652_v4, %v2651_v2 }
 0x917   : > { %3276 = vpow2.f32 %v1768_v6  ;;  %v2653_v6 = vld [vmem:[%s3930_s6 + $0xf0] sm:$0xff] }
 0x921   : > { %v3277_v7 = vpop.eup %3276 }
 0x922   : > { %v1770_v8 = vsel %vm768_vm3, %v3277_v7, 0.0 }
 0x923   : > { %1771 = vadd.xlane.f32.xlu1 %v1770_v8 }
 0x9b0   : > { %v1772_v17 = vpop.xlane.xlu1 %1771 }
 0x9b1   : > { %3278 = vrcp.f32 %v1772_v17 }
 0x9bb   : > { %v3279_v20 = vpop.eup %3278 }
 0x9bc   : > { %v1774_v22 = vmul.f32 %v3279_v20, %v3277_v7  ;;  %v2654_v7 = vld [vmem:[%s3930_s6 + $0xf8] sm:$0xff] }
 0x9bd   : > { %v3252_v8 = vpack.c.bf16 %v2654_v7, %v2653_v6 }
 0x9be   : > { %3018 = vmatmul.mubr.msk.f32.vlgmr.msra.gmra.mrb[16].mxu1 %vm768_vm3, %v1774_v22  ;;  %v2661_v22 = vld [vmem:[%s3932_s8 + $0x30] sm:$0xff] }
 0x9bf   : > { %3217 = vmatpush3.bf16.msra.mxu1 %v3216_v21  ;;  %3024 = vmatprep.mubr.msk.f32.mxu1 %vm3295_vm0, %v3296_v11  ;;  %v3255_v25 = vpack.c.bf16 %v2662_v23, %v2661_v22 }
 0x9c0   : > { %3218 = vmatprep.subr.bf16.mxu1 %v3294_v3 }
 0xa91   : > { %v1844_v39 = vpop.f32.mrb[16].mxu1 }
 0xa92   : > { %v3019_v40 = vpop.f32.mrb[17].mxu1  ;;  %3025 = vmatmul.mubr.msk.f32.vlgmr.msra.gmra.mrb[18].mxu1 %vm691_vm2, %v1844_v39 }
 0xa93   : > { %3220 = vmatpush3.bf16.msra.mxu1 %v3219_v36  ;;  %3043 = vmatprep.mubr.msk.f32.mxu1 %vm3295_vm0, %v3296_v11 }
 0xa94   : > { %3221 = vmatprep.subr.bf16.mxu1 %v3294_v3 }
 0xa97   : > { %3223 = vmatpush3.bf16.msra.mxu1 %v3222_v41 }
 0xa98   : > { %3224 = vmatprep.subr.bf16.mxu1 %v3294_v3 }
 0xa9b   : > { %3226 = vmatpush3.bf16.msra.mxu1 %v3225_v44 }
 0xa9c   : > { %3227 = vmatprep.subr.bf16.mxu1 %v3294_v3 }
 0xa9f   : > { %3229 = vmatpush3.bf16.msra.mxu1 %v3228_v48 }
 0xaa0   : > { %3242 = vmatprep.subr.bf16.mxu1 %v3294_v3 }
 0xaa2   : > { %3044 = vmatmul.mubr.msk.f32.vlgmr.msra.gmra.mrb[20].mxu1 %vm443_vm1, %v3452_v27 }
 0xaa3   : > { %3081 = vmatprep.mubr.msk.f32.mxu1 %vm3295_vm0, %v3296_v11 }
 0xb65   : > { %v1920_v53 = vpop.f32.mrb[18].mxu1 }
 0xb66   : > { %v1924_v54 = vadd.f32 %v1920_v53, %v3724_v45  ;;  %v3026_v55 = vpop.f32.mrb[19].mxu1  ;;  %v2648_v45 = vld [vmem:[%s3930_s6 + $0xc8] sm:$0xff] }
 0xb67   : > { %v3243_v63 = vpack.c.bf16 %v2648_v45, %v2647_v61 }
 0xb69   : > { %3244 = vmatpush3.bf16.msra.mxu1 %v3243_v63 }
 0xb6a   : > { %3245 = vmatprep.subr.bf16.mxu1 %v3294_v3 }
 0xb6d   : > { %3247 = vmatpush3.bf16.msra.mxu1 %v3246_v1 }
 0xb6e   : > { %3248 = vmatprep.subr.bf16.mxu1 %v3294_v3 }
 0xb71   : > { %3250 = vmatpush3.bf16.msra.mxu1 %v3249_v5 }
 0xb72   : > { %3251 = vmatprep.subr.bf16.mxu1 %v3294_v3 }
 0xb75   : > { %v2008_v57 = vpop.f32.mrb[20].mxu1  ;;  %3253 = vmatpush3.bf16.msra.mxu1 %v3252_v8 }
 0xb76   : > { %v2009_v58 = vadd.f32 %v2634_v56, %v2008_v57  ;;  %v3045_v59 = vpop.f32.mrb[21].mxu1 }
 0xb78   : > { %v2012_v60 = vmul.f32 0.25, %v2009_v58  ;;  %3082 = vmatmul.mubr.msk.f32.vlgmr.msra.gmra.mrb[22].mxu1 %vm443_vm1, %v3450_v26 }
 0xb7a   : > { %3087 = vmatmul.mubr.msk.f32.vlgmr.msra.gmra.mrb[18].mxu0 %vm691_vm2, %v2012_v60 }
 0xb7b   : > { %3091 = vmatprep.mubr.msk.f32.mxu0 %vm3295_vm0, %v3296_v11 }
 0xc4b   : > { %v2183_v18 = vpop.f32.mrb[22].mxu1 }
 0xc4c   : > { %v3083_v20 = vpop.f32.mrb[23].mxu1  ;;  %v2184_v26 = vadd.f32 %v2656_v19, %v2183_v18 }
 0xc4d   : > { %v2259_v9 = vpop.f32.mrb[18].mxu0 }
 0xc4e   : > { %v3088_v10 = vpop.f32.mrb[19].mxu0  ;;  %v2263_v12 = vsel %vm768_vm3, %v2259_v9, -inf  ;;  %3090 = vmatpush3.msra.mxu0 %v2184_v26 }
 0xc4f   : > { %2264 = vmax.xlane.f32.xlu0 %v2263_v12  ;;  %3254 = vmatprep.subr.bf16.mxu0 %v3294_v3 }
 0xcdc   : > { %v2265_v13 = vpop.xlane.xlu0 %2264 }
 0xcdd   : > { %v2266_v14 = vsub.f32 %v2259_v9, %v2265_v13 }
 0xcdf   : > { %v2267_v15 = vmul.f32 1.442695, %v2266_v14 }
 0xce1   : > { %3280 = vpow2.f32 %v2267_v15 }
 0xceb   : > { %v3281_v16 = vpop.eup %3280 }
 0xcec   : > { %v2269_v17 = vsel %vm768_vm3, %v3281_v16, 0.0 }
 0xced   : > { %2270 = vadd.xlane.f32.xlu1 %v2269_v17 }
 0xd7a   : > { %v2271_v21 = vpop.xlane.xlu1 %2270 }
 0xd7b   : > { %3282 = vrcp.f32 %v2271_v21 }
 0xd85   : > { %v3283_v24 = vpop.eup %3282 }
 0xd86   : > { %v2273_v28 = vmul.f32 %v3283_v24, %v3281_v16 }
 0xd88   : > { %3092 = vmatmul.mubr.msk.f32.vlgmr.msra.gmra.mrb[20].mxu0 %vm768_vm3, %v2273_v28 }
 0xd89   : > { %3256 = vmatpush3.bf16.msra.mxu0 %v3255_v25  ;;  %3098 = vmatprep.mubr.msk.f32.mxu0 %vm3295_vm0, %v3296_v11 }
 0xe5b   : > { %v2343_v3 = vpop.f32.mrb[20].mxu0 }
 0xe5c   : > { %v3093_v29 = vpop.f32.mrb[21].mxu0  ;;  %3099 = vmatmul.mubr.msk.f32.vlgmr.msra.gmra.mrb[22].mxu0 %vm691_vm2, %v2343_v3 }
 0xf2f   : > { %v2419_v30 = vpop.f32.mrb[22].mxu0 }
 0xf30   : > { %v2423_v32 = vadd.f32 %v2419_v30, %v1924_v54  ;;  %v3100_v33 = vpop.f32.mrb[23].mxu0 }
 0xf32   : > { %v2431_v34 = vadd.f32 %v2664_v31, %v2423_v32 }
 0xf34   : > { %v2432_v35 = vadd.f32 %v2431_v34, %v3452_v27  ;;  %v2665_v27 = vld [vmem:[%s3934_s10] ss:$0 sm:$0xff] }
 0xf36   : > { %v2435_v36 = vsel %vm443_vm1, %v2432_v35, 0.0 }
 0xf37   : > { %2436 = vadd.xlane.f32.xlu0 %v2435_v36 }
 0xfc4   : > { %v2437_v37 = vpop.xlane.xlu0 %2436 }
 0xfc5   : > { %v2439_v11 = vmul.f32 0.015625, %v2437_v37 }
 0xfc7   : > { %v2440_v38 = vsub.f32 %v2432_v35, %v2439_v11 }
 0xfc9   : > { %v2441_v39 = vmul.f32 %v2440_v38, %v2440_v38 }
 0xfcb   : > { %v2442_v40 = vsel %vm443_vm1, %v2441_v39, 0.0 }
 0xfcc   : > { %2443 = vadd.xlane.f32.xlu1 %v2442_v40 }
0x1059   : > { %v2444_v41 = vpop.xlane.xlu1 %2443 }
0x105a   : > { %v2445_v42 = vmul.f32 0.015625, %v2444_v41 }
0x105c   : > { %v2446_v43 = vadd.f32 1e-05, %v2445_v42 }
0x105e   : > { %3284 = vrsqrt.f32 %v2446_v43 }
0x1068   : > { %v3285_v44 = vpop.eup %3284 }
0x1069   : > { %v2448_v46 = vmul.f32 %v3285_v44, %v2440_v38 }
0x106b   : > { %v2455_v48 = vmul.f32 %v2665_v27, %v2448_v46 }
0x106d   : > { %v2462_v49 = vadd.f32 %v2666_v47, %v2455_v48 }
0x106f   : > { %2463 = vst.msk [vmem:[%s425_s22] sm:$0xff] %vm443_vm1, %v2462_v49 }
0x1070 PF: > { %s22_s21 = sadd.s32 1, %s3292_s21  }
0x1071   : > { %p19_p4 = scmp.ge.s32.totalorder %s22_s21, 4  }
0x1073   :  { %21 = sbr.rel (!%p19_p4) target bundleno = 1 (0x1), region = 122 }

// kernel: forward.14
= control target key start
LH: loop header
LB: loop body
LE: loop exit
PB: predicated region body
PF: predicated region fallthrough
CT: control target
= control target key end

     0   :  { %s3381_s21 = smov 0   ;;  %s3947_s0 = inlined_call_operand.vmem [shape: f32[2,4,64], index: 0, kind: input, shape index: {}, may-alias: {0,1}]   ;;  %s3948_s1 = inlined_call_operand.vmem [shape: f32[2,4,64], index: 1, kind: input, shape index: {}, may-alias: {0,1}]   ;;  %s3949_s2 = inlined_call_operand.vmem [shape: f32[4,64,16], index: 2, kind: input, shape index: {}]   ;;  %s3950_s3 = inlined_call_operand.vmem [shape: f32[4,1,16], index: 3, kind: input, shape index: {}]   ;;  %s3951_s4 = inlined_call_operand.vmem [shape: f32[4,64,16], index: 4, kind: input, shape index: {}]   ;;  %s3952_s5 = inlined_call_operand.vmem [shape: f32[4,1,16], index: 5, kind: input, shape index: {}]   ;;  %s3953_s6 = inlined_call_operand.vmem [shape: f32[4,64,16], index: 6, kind: input, shape index: {}]   ;;  %s3954_s7 = inlined_call_operand.vmem [shape: f32[4,1,16], index: 7, kind: input, shape index: {}]   ;;  %s3955_s8 = inlined_call_operand.vmem [shape: f32[4,16,64], index: 8, kind: input, shape index: {}]   ;;  %s3956_s9 = inlined_call_operand.vmem [shape: f32[1,64], index: 9, kind: input, shape index: {}]   ;;  %s3957_s10 = inlined_call_operand.vmem [shape: f32[1,64], index: 10, kind: input, shape index: {}]   ;;  %s3958_s11 = inlined_call_operand.vmem [shape: f32[1,64], index: 11, kind: input, shape index: {}]   ;;  %s3959_s12 = inlined_call_operand.vmem [shape: f32[2,4,64], index: 12, kind: output, shape index: {}]  }
   0x1 LB: > { %s2544_s22 = sadd.s32 4294967295, %s3311_s21   ;;  %p2548_p0 = scmp.ge.s32.totalorder %s3311_s21, 1  ;;  %s3311_s21 = sphi %s3381_s21, %s22_s21  }
   0x2   : > { %p370_p1 = scmp.lt.s32.totalorder %s3311_s21, 3 }
   0x4   : > { %p371_p2 = pnand %p2548_p0, %p370_p1 }
   0x5   : > { %v518_v0 = vld [vmem:[%s3951_s4] sm:$0xff] (!%p371_p2)  ;;  %v519_v1 = vld [vmem:[%s3951_s4 + $0x8] sm:$0xff] (!%p371_p2)  ;;  %v3313_v3 = vmov (!%p371_p2), 0.0|0.0   ;;  %v520_v6 = vld [vmem:[%s3951_s4 + $0x10] sm:$0xff] (!%p371_p2)  ;;  %p3411_p3 = scmp.lt.s32.totalorder (!%p371_p2), %s2544_s22, 1  ;;  %vm3314_vm0 = vmmov (!%p371_p2), 0  }
   0x6   : > { %374 = sbr.rel (%p371_p2) target bundleno = 4208 (0x1070), region = 68  ;;  %v428_v2 = vld [vmem:[%s3949_s2] sm:$0xff] (!%p371_p2)  ;;  %3132 = vmatprep.subr.bf16.mxu1 (!%p371_p2), %v3313_v3  ;;  %3120 = vmatprep.subr.bf16.mxu0 (!%p371_p2), %v3313_v3  ;;  %v3133_v4 = vpack.c.bf16 (!%p371_p2), %v519_v1, %v518_v0  ;;  %v429_v5 = vld [vmem:[%s3949_s2 + $0x8] sm:$0xff] (!%p371_p2)  ;;  %v521_v7 = vld [vmem:[%s3951_s4 + $0x18] sm:$0xff] (!%p371_p2)  ;;  %v3315_v11 = vmov (!%p371_p2), 0.0   ;;  %vm443_vm1 = vcmask (!%p371_p2), 523264  }
   0x7   : > { %v3121_v8 = vpack.c.bf16 (!%p371_p2), %v429_v5, %v428_v2  ;;  %v430_v9 = vld [vmem:[%s3949_s2 + $0x10] sm:$0xff] (!%p371_p2)  ;;  %v431_v10 = vld [vmem:[%s3949_s2 + $0x18] sm:$0xff] (!%p371_p2)  ;;  %2859 = vmatprep.mubr.msk.f32.mxu1 (!%p371_p2), %vm3314_vm0, %v3315_v11  ;;  %2840 = vmatprep.mubr.msk.f32.mxu0 (!%p371_p2), %vm3314_vm0, %v3315_v11  ;;  %v3136_v12 = vpack.c.bf16 (!%p371_p2), %v521_v7, %v520_v6  ;;  %v522_v14 = vld [vmem:[%s3951_s4 + $0x20] sm:$0xff] (!%p371_p2)  ;;  %vm691_vm2 = vcmask (!%p371_p2), 130048   ;;  %vm768_vm3 = vcmask (!%p371_p2), 27648  }
   0x8   : > { %3134 = vmatpush3.bf16.msra.mxu1 (!%p371_p2), %v3133_v4  ;;  %v3124_v13 = vpack.c.bf16 (!%p371_p2), %v431_v10, %v430_v9  ;;  %v523_v15 = vld [vmem:[%s3951_s4 + $0x28] sm:$0xff] (!%p371_p2)  ;;  %v432_v16 = vld [vmem:[%s3949_s2 + $0x20] sm:$0xff] (!%p371_p2)  ;;  %v524_v20 = vld [vmem:[%s3951_s4 + $0x30] sm:$0xff] (!%p371_p2)  ;;  %vm784_vm4 = vcmask (!%p371_p2), 1043456   ;;  %vm780_vm5 = vcmask (!%p371_p2), 31744   ;;  %vm2449_vm6 = vcmask (!%p371_p2), 519168  }
   0x9   : > { %3122 = vmatpush3.bf16.msra.mxu0 (!%p371_p2), %v3121_v8  ;;  %3135 = vmatprep.subr.bf16.mxu1 (!%p371_p2), %v3313_v3  ;;  %v433_v17 = vld [vmem:[%s3949_s2 + $0x28] sm:$0xff] (!%p371_p2)  ;;  %v3139_v18 = vpack.c.bf16 (!%p371_p2), %v523_v15, %v522_v14  ;;  %v525_v21 = vld [vmem:[%s3951_s4 + $0x38] sm:$0xff] (!%p371_p2)  ;;  %v434_v22 = vld [vmem:[%s3949_s2 + $0x30] sm:$0xff] (!%p371_p2) }
   0xa   : > { %3123 = vmatprep.subr.bf16.mxu0 (!%p371_p2), %v3313_v3  ;;  %v3127_v19 = vpack.c.bf16 (!%p371_p2), %v433_v17, %v432_v16  ;;  %v435_v23 = vld [vmem:[%s3949_s2 + $0x38] sm:$0xff] (!%p371_p2)  ;;  %v3142_v24 = vpack.c.bf16 (!%p371_p2), %v525_v21, %v524_v20  ;;  %v2554_v28 = vld [vmem:[%s3952_s5] ss:$0 sm:$0xff] (!%p371_p2)  ;;  %v607_v38 = vld [vmem:[%s3953_s6 + $0x8] sm:$0xff] (!%p371_p2) }
   0xb   : > { %v3130_v25 = vpack.c.bf16 (!%p371_p2), %v435_v23, %v434_v22  ;;  %v2552_v29 = vld [vmem:[%s3950_s3] ss:$0 sm:$0xff] (!%p371_p2)  ;;  %v608_v39 = vld [vmem:[%s3953_s6 + $0x10] sm:$0xff] (!%p371_p2)  ;;  %v609_v41 = vld [vmem:[%s3953_s6 + $0x18] sm:$0xff] (!%p371_p2) }
   0xc   : > { %3137 = vmatpush3.bf16.msra.mxu1 (!%p371_p2), %v3136_v12  ;;  %v606_v37 = vld [vmem:[%s3953_s6] sm:$0xff] (!%p371_p2)  ;;  %v3148_v42 = vpack.c.bf16 (!%p371_p2), %v609_v41, %v608_v39  ;;  %v611_v44 = vld [vmem:[%s3953_s6 + $0x28] sm:$0xff] (!%p371_p2)  ;;  %v612_v46 = vld [vmem:[%s3953_s6 + $0x30] sm:$0xff] (!%p371_p2) }
   0xd   : > { %s3962_s22 = smov (!%p3411_p3, %s2544_s22), 1  ;;  %3125 = vmatpush3.bf16.msra.mxu0 %v3124_v13  ;;  %3138 = vmatprep.subr.bf16.mxu1 %v3313_v3  ;;  %v3145_v40 = vpack.c.bf16 %v607_v38, %v606_v37  ;;  %v610_v43 = vld [vmem:[%s3953_s6 + $0x20] sm:$0xff]  ;;  %v613_v47 = vld [vmem:[%s3953_s6 + $0x38] sm:$0xff]  ;;  %v2574_v61 = vld [vmem:[%s3951_s4 + $0x48] sm:$0xff] }
   0xe   : > { %3126 = vmatprep.subr.bf16.mxu0 %v3313_v3  ;;  %s3457_s24 = sshll.u32 %s3962_s22, 2  ;;  %v3151_v45 = vpack.c.bf16 %v611_v44, %v610_v43  ;;  %v3154_v48 = vpack.c.bf16 %v613_v47, %v612_v46  ;;  %v2556_v58 = vld [vmem:[%s3954_s7] ss:$0 sm:$0xff]  ;;  %v2575_v0 = vld [vmem:[%s3951_s4 + $0x50] sm:$0xff]  ;;  %v2576_v1 = vld [vmem:[%s3951_s4 + $0x58] sm:$0xff] }
   0xf   : > { %s421_s27 = scalar_lea.vmem %s3948_s1, %s3457_s24  ;;  %s417_s30 = scalar_lea.vmem %s3947_s0, %s3457_s24  ;;  %v2573_v60 = vld [vmem:[%s3951_s4 + $0x40] sm:$0xff]  ;;  %v3172_v2 = vpack.c.bf16 %v2576_v1, %v2575_v0  ;;  %v2578_v5 = vld [vmem:[%s3951_s4 + $0x68] sm:$0xff]  ;;  %v2579_v7 = vld [vmem:[%s3951_s4 + $0x70] sm:$0xff] }
  0x10   : > { %3140 = vmatpush3.bf16.msra.mxu1 %v3139_v18  ;;  %v3469_v26 = vld [vmem:[%s421_s27] sm:$0xf]  ;;  %v3169_v63 = vpack.c.bf16 %v2574_v61, %v2573_v60  ;;  %v2580_v8 = vld [vmem:[%s3951_s4 + $0x78] sm:$0xff]  ;;  %v2563_v13 = vld [vmem:[%s3949_s2 + $0x48] sm:$0xff]  ;;  %s425_s22 = scalar_lea.vmem %s3959_s12, %s3457_s24 }
  0x11   : > { %3128 = vmatpush3.bf16.msra.mxu0 %v3127_v19  ;;  %3141 = vmatprep.subr.bf16.mxu1 %v3313_v3  ;;  %v3471_v27 = vld [vmem:[%s417_s30] sm:$0xf]  ;;  %v3178_v9 = vpack.c.bf16 %v2580_v8, %v2579_v7  ;;  %v2564_v17 = vld [vmem:[%s3949_s2 + $0x50] sm:$0xff]  ;;  %v2565_v18 = vld [vmem:[%s3949_s2 + $0x58] sm:$0xff] }
  0x12   : > { %3129 = vmatprep.subr.bf16.mxu0 %v3313_v3  ;;  %v2577_v4 = vld [vmem:[%s3951_s4 + $0x60] sm:$0xff]  ;;  %v3160_v19 = vpack.c.bf16 %v2565_v18, %v2564_v17  ;;  %v2567_v21 = vld [vmem:[%s3949_s2 + $0x68] sm:$0xff]  ;;  %v2568_v23 = vld [vmem:[%s3949_s2 + $0x70] sm:$0xff] }
  0x13   : > { %v3175_v6 = vpack.c.bf16 %v2578_v5, %v2577_v4  ;;  %v2562_v12 = vld [vmem:[%s3949_s2 + $0x40] sm:$0xff]  ;;  %v2590_v37 = vld [vmem:[%s3953_s6 + $0x70] sm:$0xff]  ;;  %v2591_v38 = vld [vmem:[%s3953_s6 + $0x78] sm:$0xff] }
  0x14   : > { %3143 = vmatpush3.bf16.msra.mxu1 %v3142_v24  ;;  %v3157_v15 = vpack.c.bf16 %v2563_v13, %v2562_v12  ;;  %v2566_v20 = vld [vmem:[%s3949_s2 + $0x60] sm:$0xff]  ;;  %v2569_v24 = vld [vmem:[%s3949_s2 + $0x78] sm:$0xff]  ;;  %v3190_v39 = vpack.c.bf16 %v2591_v38, %v2590_v37  ;;  %v859_v41 = vld [vmem:[%s3955_s8 + $0x8] sm:$0xff] }
  0x15   : > { %3131 = vmatpush3.bf16.msra.mxu0 %v3130_v25  ;;  %2881 = vmatprep.subr.mxu1 %v3315_v11  ;;  %v3163_v22 = vpack.c.bf16 %v2567_v21, %v2566_v20  ;;  %v3166_v25 = vpack.c.bf16 %v2569_v24, %v2568_v23  ;;  %v2582_v43 = vld [vmem:[%s3952_s5 + $0x1] ss:$0 sm:$0xff]  ;;  %v2620_v21 = vld [vmem:[%s3951_s4 + $0xb0] sm:$0xff]  ;;  %v2610_v38 = vld [vmem:[%s3949_s2 + $0xb8] sm:$0xff] }
  0x16   : > { %3144 = vmatprep.subr.bf16.mxu0 %v3313_v3  ;;  %v2614_v5 = vld [vmem:[%s3951_s4 + $0x80] sm:$0xff]  ;;  %v2609_v37 = vld [vmem:[%s3949_s2 + $0xb0] sm:$0xff] }
  0x17   : > { %2860 = vmatmul.mubr.msk.f32.vlgmr.msra.gmra.mrb[0].mxu1 %vm443_vm1, %v3469_v26  ;;  %v2618_v18 = vld [vmem:[%s3951_s4 + $0xa0] sm:$0xff] }
  0x18   : > { %2841 = vmatmul.mubr.msk.f32.vlgmr.msra.gmra.mrb[0].mxu0 %vm443_vm1, %v3471_v27  ;;  %2883 = vmatprep.mubr.msk.f32.mxu1 %vm3314_vm0, %v3315_v11  ;;  %v2603_v24 = vld [vmem:[%s3949_s2 + $0x80] sm:$0xff] }
  0x19   : > { %2878 = vmatprep.mubr.msk.f32.mxu0 %vm3314_vm0, %v3315_v11  ;;  %3146 = vmatpush3.bf16.msra.mxu0 %v3145_v40  ;;  %v858_v40 = vld [vmem:[%s3955_s8] sm:$0xff] }
  0x1a   : > { %3147 = vmatprep.subr.bf16.mxu0 %v3313_v3 }
  0x1d   : > { %3149 = vmatpush3.bf16.msra.mxu0 %v3148_v42  ;;  %v3196_v42 = vpack.c.bf16 %v859_v41, %v858_v40  ;;  %v2623_v40 = vld [vmem:[%s3952_s5 + $0x2] ss:$0 sm:$0xff] }
  0x1e   : > { %3150 = vmatprep.subr.bf16.mxu0 %v3313_v3 }
  0x21   : > { %3152 = vmatpush3.bf16.msra.mxu0 %v3151_v45 }
  0x22   : > { %3153 = vmatprep.subr.bf16.mxu0 %v3313_v3 }
  0x25   : > { %3155 = vmatpush3.bf16.msra.mxu0 %v3154_v48 }
  0x26   : > { %3168 = vmatprep.subr.bf16.mxu0 %v3313_v3 }
  0x28   : > { %2879 = vmatmul.mubr.msk.f32.vlgmr.msra.gmra.mrb[2].mxu0 %vm443_vm1, %v3469_v26 }
  0x29   : > { %2926 = vmatprep.mubr.msk.f32.mxu0 %vm3314_vm0, %v3315_v11  ;;  %3170 = vmatpush3.bf16.msra.mxu0 %v3169_v63 }
  0x2a   : > { %3171 = vmatprep.subr.bf16.mxu0 %v3313_v3 }
  0x2d   : > { %3173 = vmatpush3.bf16.msra.mxu0 %v3172_v2 }
  0x2e   : > { %3174 = vmatprep.subr.bf16.mxu0 %v3313_v3 }
  0x31   : > { %3176 = vmatpush3.bf16.msra.mxu0 %v3175_v6  ;;  %v2615_v6 = vld [vmem:[%s3951_s4 + $0x88] sm:$0xff] }
  0x32   : > { %3177 = vmatprep.subr.bf16.mxu0 %v3313_v3  ;;  %v3211_v7 = vpack.c.bf16 %v2615_v6, %v2614_v5 }
  0x35   : > { %3179 = vmatpush3.bf16.msra.mxu0 %v3178_v9  ;;  %v2599_v9 = vld [vmem:[%s3955_s8 + $0x10] sm:$0xff] }
  0x36   : > { %2948 = vmatprep.subr.mxu0 %v3315_v11 }
  0x38   : > { %2927 = vmatmul.mubr.msk.f32.vlgmr.msra.gmra.mrb[4].mxu0 %vm443_vm1, %v3469_v26 }
  0x39   : > { %2950 = vmatprep.mubr.msk.f32.mxu0 %vm3314_vm0, %v3315_v11 }
  0xea   : > { %v602_v30 = vpop.f32.mrb[0].mxu1 }
  0xeb   : > { %v603_v31 = vadd.f32 %v2554_v28, %v602_v30  ;;  %v513_v32 = vpop.f32.mrb[0].mxu0  ;;  %v2861_v33 = vpop.f32.mrb[1].mxu1  ;;  %v2584_v28 = vld [vmem:[%s3953_s6 + $0x40] sm:$0xff] }
  0xec   : > { %v514_v34 = vadd.f32 %v2552_v29, %v513_v32  ;;  %v2842_v35 = vpop.f32.mrb[1].mxu0  ;;  %v2585_v29 = vld [vmem:[%s3953_s6 + $0x48] sm:$0xff]  ;;  %v2587_v32 = vld [vmem:[%s3953_s6 + $0x58] sm:$0xff] }
  0xed   : > { %2882 = vmatpush3.xpose.msk.msra.mxu1 %vm691_vm2, %v603_v31  ;;  %v3181_v30 = vpack.c.bf16 %v2585_v29, %v2584_v28  ;;  %v2586_v31 = vld [vmem:[%s3953_s6 + $0x50] sm:$0xff]  ;;  %v2589_v35 = vld [vmem:[%s3953_s6 + $0x68] sm:$0xff] }
  0xee   : > { %v517_v36 = vmul.f32 0.25, %v514_v34  ;;  %2886 = vmatprep.subr.mxu1 %v3315_v11  ;;  %v3184_v33 = vpack.c.bf16 %v2587_v32, %v2586_v31  ;;  %v2588_v34 = vld [vmem:[%s3953_s6 + $0x60] sm:$0xff]  ;;  %v2605_v29 = vld [vmem:[%s3949_s2 + $0x90] sm:$0xff] }
  0xf0   : > { %2884 = vmatmul.mubr.msk.f32.vlgmr.msra.gmra.mrb[2].mxu1 %vm691_vm2, %v517_v36  ;;  %v3187_v36 = vpack.c.bf16 %v2589_v35, %v2588_v34  ;;  %v2607_v34 = vld [vmem:[%s3949_s2 + $0xa0] sm:$0xff]  ;;  %v2608_v35 = vld [vmem:[%s3949_s2 + $0xa8] sm:$0xff] }
  0xf1   : > { %2888 = vmatprep.mubr.msk.f32.mxu1 %vm3314_vm0, %v3315_v11 }
  0xfb   : > { %v687_v57 = vpop.f32.mrb[2].mxu0 }
  0xfc   : > { %v2880_v59 = vpop.f32.mrb[3].mxu0  ;;  %v688_v62 = vadd.f32 %v2556_v58, %v687_v57 }
  0xfe   : > { %2887 = vmatpush3.msk.msra.mxu1 %vm784_vm4, %v688_v62 }
  0xff   : > { %3156 = vmatprep.subr.bf16.mxu1 %v3313_v3 }
 0x10b   : > { %v1031_v44 = vpop.f32.mrb[4].mxu0 }
 0x10c   : > { %v1032_v45 = vadd.f32 %v2582_v43, %v1031_v44  ;;  %v2928_v46 = vpop.f32.mrb[5].mxu0 }
 0x10e   : > { %2949 = vmatpush3.xpose.msk.msra.mxu0 %vm691_vm2, %v1032_v45 }
 0x10f   : > { %2953 = vmatprep.subr.mxu0 %v3315_v11 }
 0x1c3   : > { %v764_v49 = vpop.f32.mrb[2].mxu1 }
 0x1c4   : > { %v2885_v50 = vpop.f32.mrb[3].mxu1  ;;  %v769_v51 = vsel %vm768_vm3, %v764_v49, -inf }
 0x1c5   : > { %770 = vmax.xlane.f32.xlu0 %v769_v51 }
 0x252   : > { %v771_v52 = vpop.xlane.xlu0 %770 }
 0x253   : > { %v772_v53 = vsub.f32 %v764_v49, %v771_v52  ;;  %v2571_v49 = vld [vmem:[%s3950_s3 + $0x1] ss:$0 sm:$0xff] }
 0x255   : > { %v773_v54 = vmul.f32 1.442695, %v772_v53 }
 0x257   : > { %3287 = vpow2.f32 %v773_v54  ;;  %v2593_v54 = vld [vmem:[%s3954_s7 + $0x1] ss:$0 sm:$0xff] }
 0x261   : > { %v3288_v55 = vpop.eup %3287 }
 0x262   : > { %v775_v56 = vsel %vm768_vm3, %v3288_v55, 0.0 }
 0x263   : > { %776 = vadd.xlane.f32.xlu0 %v775_v56 }
 0x2f0   : > { %v777_v10 = vpop.xlane.xlu0 %776 }
 0x2f1   : > { %3289 = vrcp.f32 %v777_v10  ;;  %v2600_v10 = vld [vmem:[%s3955_s8 + $0x18] sm:$0xff] }
 0x2f2   : > { %v3193_v13 = vpack.c.bf16 %v2600_v10, %v2599_v9  ;;  %v2634_v10 = vld [vmem:[%s3954_s7 + $0x2] ss:$0 sm:$0xff] }
 0x2fb   : > { %v3290_v14 = vpop.eup %3289 }
 0x2fc   : > { %v779_v16 = vmul.f32 %v3290_v14, %v3288_v55 }
 0x2fe   : > { %2889 = vmatmul.mubr.msk.f32.vlgmr.msra.gmra.mrb[4].mxu1 %vm780_vm5, %v779_v16  ;;  %v2617_v16 = vld [vmem:[%s3951_s4 + $0x98] sm:$0xff] }
 0x2ff   : > { %3158 = vmatpush3.bf16.msra.mxu1 %v3157_v15  ;;  %2907 = vmatprep.mubr.msk.f32.mxu1 %vm3314_vm0, %v3315_v11  ;;  %v2616_v15 = vld [vmem:[%s3951_s4 + $0x90] sm:$0xff] }
 0x300   : > { %3159 = vmatprep.subr.bf16.mxu1 %v3313_v3  ;;  %v3214_v17 = vpack.c.bf16 %v2617_v16, %v2616_v15  ;;  %v2655_v15 = vld [vmem:[%s3951_s4 + $0xc8] sm:$0xff] }
 0x303   : > { %3161 = vmatpush3.bf16.msra.mxu1 %v3160_v19  ;;  %v2619_v19 = vld [vmem:[%s3951_s4 + $0xa8] sm:$0xff] }
 0x304   : > { %3162 = vmatprep.subr.bf16.mxu1 %v3313_v3  ;;  %v3217_v20 = vpack.c.bf16 %v2619_v19, %v2618_v18  ;;  %v2640_v18 = vld [vmem:[%s3955_s8 + $0x20] sm:$0xff]  ;;  %v2641_v19 = vld [vmem:[%s3955_s8 + $0x28] sm:$0xff] }
 0x307   : > { %3164 = vmatpush3.bf16.msra.mxu1 %v3163_v22  ;;  %v2621_v22 = vld [vmem:[%s3951_s4 + $0xb8] sm:$0xff] }
 0x308   : > { %3165 = vmatprep.subr.bf16.mxu1 %v3313_v3  ;;  %v3220_v23 = vpack.c.bf16 %v2621_v22, %v2620_v21  ;;  %v3235_v21 = vpack.c.bf16 %v2641_v19, %v2640_v18  ;;  %v2674_v19 = vld [vmem:[%s3954_s7 + $0x3] ss:$0 sm:$0xff] }
 0x30b   : > { %3167 = vmatpush3.bf16.msra.mxu1 %v3166_v25  ;;  %v2604_v25 = vld [vmem:[%s3949_s2 + $0x88] sm:$0xff] }
 0x30c   : > { %3180 = vmatprep.subr.bf16.mxu1 %v3313_v3  ;;  %v3199_v28 = vpack.c.bf16 %v2604_v25, %v2603_v24  ;;  %v2657_v24 = vld [vmem:[%s3951_s4 + $0xd8] sm:$0xff] }
 0x30e   : > { %2908 = vmatmul.mubr.msk.f32.vlgmr.msra.gmra.mrb[6].mxu1 %vm443_vm1, %v3471_v27 }
 0x30f   : > { %3182 = vmatpush3.bf16.msra.mxu1 %v3181_v30  ;;  %2945 = vmatprep.mubr.msk.f32.mxu1 %vm3314_vm0, %v3315_v11  ;;  %v2606_v30 = vld [vmem:[%s3949_s2 + $0x98] sm:$0xff] }
 0x310   : > { %3183 = vmatprep.subr.bf16.mxu1 %v3313_v3 }
 0x313   : > { %3185 = vmatpush3.bf16.msra.mxu1 %v3184_v33  ;;  %v3202_v33 = vpack.c.bf16 %v2606_v30, %v2605_v29  ;;  %v2659_v29 = vld [vmem:[%s3951_s4 + $0xe8] sm:$0xff] }
 0x314   : > { %3186 = vmatprep.subr.bf16.mxu1 %v3313_v3 }
 0x317   : > { %3188 = vmatpush3.bf16.msra.mxu1 %v3187_v36  ;;  %v3205_v36 = vpack.c.bf16 %v2608_v35, %v2607_v34  ;;  %v2643_v34 = vld [vmem:[%s3949_s2 + $0xc0] sm:$0xff]  ;;  %v2644_v35 = vld [vmem:[%s3949_s2 + $0xc8] sm:$0xff] }
 0x318   : > { %3189 = vmatprep.subr.bf16.mxu1 %v3313_v3 }
 0x31b   : > { %3191 = vmatpush3.bf16.msra.mxu1 %v3190_v39  ;;  %v3208_v39 = vpack.c.bf16 %v2610_v38, %v2609_v37  ;;  %v2645_v37 = vld [vmem:[%s3949_s2 + $0xd0] sm:$0xff]  ;;  %v2646_v38 = vld [vmem:[%s3949_s2 + $0xd8] sm:$0xff] }
 0x31c   : > { %3195 = vmatprep.subr.bf16.mxu1 %v3313_v3 }
 0x31e   : > { %2946 = vmatmul.mubr.msk.f32.vlgmr.msra.gmra.mrb[8].mxu1 %vm443_vm1, %v3469_v26 }
 0x31f   : > { %3197 = vmatpush3.bf16.msra.mxu1 %v3196_v42  ;;  %2969 = vmatprep.mubr.msk.f32.mxu1 %vm3314_vm0, %v3315_v11 }
 0x320   : > { %3210 = vmatprep.subr.bf16.mxu1 %v3313_v3 }
 0x3d1   : > { %v854_v47 = vpop.f32.mrb[4].mxu1 }
 0x3d2   : > { %v2890_v48 = vpop.f32.mrb[5].mxu1  ;;  %2970 = vmatmul.mubr.msk.f32.vlgmr.msra.gmra.mrb[10].mxu1 %vm691_vm2, %v854_v47  ;;  %v2612_v47 = vld [vmem:[%s3950_s3 + $0x2] ss:$0 sm:$0xff] }
 0x3d3   : > { %3007 = vmatprep.mubr.msk.f32.mxu1 %vm3314_vm0, %v3315_v11  ;;  %3212 = vmatpush3.bf16.msra.mxu1 %v3211_v7 }
 0x3d4   : > { %3213 = vmatprep.subr.bf16.mxu1 %v3313_v3 }
 0x3d7   : > { %3215 = vmatpush3.bf16.msra.mxu1 %v3214_v17 }
 0x3d8   : > { %3216 = vmatprep.subr.bf16.mxu1 %v3313_v3 }
 0x3db   : > { %3218 = vmatpush3.bf16.msra.mxu1 %v3217_v20 }
 0x3dc   : > { %3219 = vmatprep.subr.bf16.mxu1 %v3313_v3 }
 0x3df   : > { %3221 = vmatpush3.bf16.msra.mxu1 %v3220_v23  ;;  %v2656_v23 = vld [vmem:[%s3951_s4 + $0xd0] sm:$0xff] }
 0x3e0   : > { %3029 = vmatprep.subr.mxu1 %v3315_v11  ;;  %v3253_v25 = vpack.c.bf16 %v2657_v24, %v2656_v23  ;;  %v2681_v23 = vld [vmem:[%s3955_s8 + $0x38] sm:$0xff] }
 0x3e1   : > { %v943_v50 = vpop.f32.mrb[6].mxu1 }
 0x3e2   : > { %v944_v51 = vadd.f32 %v2571_v49, %v943_v50  ;;  %v2909_v52 = vpop.f32.mrb[7].mxu1  ;;  %3008 = vmatmul.mubr.msk.f32.vlgmr.msra.gmra.mrb[12].mxu1 %vm443_vm1, %v3469_v26 }
 0x3e3   : > { %3031 = vmatprep.mubr.msk.f32.mxu1 %vm3314_vm0, %v3315_v11  ;;  %v2625_v52 = vld [vmem:[%s3953_s6 + $0x80] sm:$0xff] }
 0x3e4   : > { %v947_v53 = vmul.f32 0.25, %v944_v51 }
 0x3e6   : > { %2951 = vmatmul.mubr.msk.f32.vlgmr.msra.gmra.mrb[6].mxu0 %vm691_vm2, %v947_v53  ;;  %v2626_v53 = vld [vmem:[%s3953_s6 + $0x88] sm:$0xff] }
 0x3e7   : > { %2955 = vmatprep.mubr.msk.f32.mxu0 %vm3314_vm0, %v3315_v11 }
 0x3f1   : > { %v1118_v55 = vpop.f32.mrb[8].mxu1 }
 0x3f2   : > { %v1119_v56 = vadd.f32 %v2593_v54, %v1118_v55  ;;  %v2947_v57 = vpop.f32.mrb[9].mxu1  ;;  %v2627_v54 = vld [vmem:[%s3953_s6 + $0x90] sm:$0xff]  ;;  %v3223_v55 = vpack.c.bf16 %v2626_v53, %v2625_v52 }
 0x3f4   : > { %2954 = vmatpush3.msk.msra.mxu0 %vm784_vm4, %v1119_v56  ;;  %v2628_v56 = vld [vmem:[%s3953_s6 + $0x98] sm:$0xff] }
 0x3f5   : > { %3192 = vmatprep.subr.bf16.mxu0 %v3313_v3  ;;  %v3226_v57 = vpack.c.bf16 %v2628_v56, %v2627_v54  ;;  %v2652_v56 = vld [vmem:[%s3950_s3 + $0x3] ss:$0 sm:$0xff] }
 0x4a5   : > { %v3658_v58 = vpop.f32.mrb[10].mxu1 }
 0x4a6   : > { %v2971_v59 = vpop.f32.mrb[11].mxu1 }
 0x4a7   : > { %v2630_v59 = vld [vmem:[%s3953_s6 + $0xa8] sm:$0xff] }
 0x4b5   : > { %v1605_v41 = vpop.f32.mrb[12].mxu1 }
 0x4b6   : > { %v1606_v42 = vadd.f32 %v2623_v40, %v1605_v41  ;;  %v3009_v43 = vpop.f32.mrb[13].mxu1  ;;  %v3241_v41 = vpack.c.bf16 %v2646_v38, %v2645_v37 }
 0x4b7   : > { %v2648_v43 = vld [vmem:[%s3949_s2 + $0xe8] sm:$0xff] }
 0x4b8   : > { %3030 = vmatpush3.xpose.msk.msra.mxu1 %vm691_vm2, %v1606_v42  ;;  %v2647_v42 = vld [vmem:[%s3949_s2 + $0xe0] sm:$0xff] }
 0x4b9   : > { %v1194_v60 = vpop.f32.mrb[6].mxu0  ;;  %3034 = vmatprep.subr.mxu1 %v3315_v11 }
 0x4ba   : > { %v2952_v61 = vpop.f32.mrb[7].mxu0  ;;  %v1198_v62 = vsel %vm768_vm3, %v1194_v60, -inf }
 0x4bb   : > { %1199 = vmax.xlane.f32.xlu1 %v1198_v62  ;;  %v2631_v61 = vld [vmem:[%s3953_s6 + $0xb0] sm:$0xff]  ;;  %v2632_v62 = vld [vmem:[%s3953_s6 + $0xb8] sm:$0xff] }
 0x548   : > { %v1200_v63 = vpop.xlane.xlu1 %1199 }
 0x549   : > { %v1201_v0 = vsub.f32 %v1194_v60, %v1200_v63  ;;  %v3232_v63 = vpack.c.bf16 %v2632_v62, %v2631_v61  ;;  %v2665_v61 = vld [vmem:[%s3953_s6 + $0xc0] sm:$0xff]  ;;  %v2667_v62 = vld [vmem:[%s3953_s6 + $0xd0] sm:$0xff] }
 0x54b   : > { %v1202_v1 = vmul.f32 1.442695, %v1201_v0 }
 0x54d   : > { %3291 = vpow2.f32 %v1202_v1 }
 0x557   : > { %v3292_v2 = vpop.eup %3291 }
 0x558   : > { %v1204_v4 = vsel %vm768_vm3, %v3292_v2, 0.0 }
 0x559   : > { %1205 = vadd.xlane.f32.xlu1 %v1204_v4 }
 0x5e6   : > { %v1206_v8 = vpop.xlane.xlu1 %1205 }
 0x5e7   : > { %3293 = vrcp.f32 %v1206_v8 }
 0x5f1   : > { %v3294_v12 = vpop.eup %3293 }
 0x5f2   : > { %v1208_v14 = vmul.f32 %v3294_v12, %v3292_v2 }
 0x5f4   : > { %2956 = vmatmul.mubr.msk.f32.vlgmr.msra.gmra.mrb[8].mxu0 %vm780_vm5, %v1208_v14  ;;  %v2654_v14 = vld [vmem:[%s3951_s4 + $0xc0] sm:$0xff] }
 0x5f5   : > { %3194 = vmatpush3.bf16.msra.mxu0 %v3193_v13  ;;  %2962 = vmatprep.mubr.msk.f32.mxu0 %vm3314_vm0, %v3315_v11  ;;  %v3250_v16 = vpack.c.bf16 %v2655_v15, %v2654_v14 }
 0x5f6   : > { %3198 = vmatprep.subr.bf16.mxu0 %v3313_v3 }
 0x6c7   : > { %v1281_v31 = vpop.f32.mrb[8].mxu0 }
 0x6c8   : > { %v2957_v32 = vpop.f32.mrb[9].mxu0  ;;  %2963 = vmatmul.mubr.msk.f32.vlgmr.msra.gmra.mrb[10].mxu0 %vm691_vm2, %v1281_v31  ;;  %v2660_v31 = vld [vmem:[%s3951_s4 + $0xf0] sm:$0xff] }
 0x6c9   : > { %3200 = vmatpush3.bf16.msra.mxu0 %v3199_v28  ;;  %2988 = vmatprep.mubr.msk.f32.mxu0 %vm3314_vm0, %v3315_v11  ;;  %v2658_v28 = vld [vmem:[%s3951_s4 + $0xe0] sm:$0xff]  ;;  %v2661_v32 = vld [vmem:[%s3951_s4 + $0xf8] sm:$0xff] }
 0x6ca   : > { %3201 = vmatprep.subr.bf16.mxu0 %v3313_v3  ;;  %v3256_v30 = vpack.c.bf16 %v2659_v29, %v2658_v28 }
 0x6cd   : > { %3203 = vmatpush3.bf16.msra.mxu0 %v3202_v33  ;;  %v3259_v33 = vpack.c.bf16 %v2661_v32, %v2660_v31  ;;  %v2683_v31 = vld [vmem:[%s3956_s9] ss:$0 sm:$0xff] }
 0x6ce   : > { %3204 = vmatprep.subr.bf16.mxu0 %v3313_v3 }
 0x6d1   : > { %3206 = vmatpush3.bf16.msra.mxu0 %v3205_v36  ;;  %v3238_v36 = vpack.c.bf16 %v2644_v35, %v2643_v34 }
 0x6d2   : > { %3207 = vmatprep.subr.bf16.mxu0 %v3313_v3 }
 0x6d5   : > { %3209 = vmatpush3.bf16.msra.mxu0 %v3208_v39 }
 0x6d6   : > { %3222 = vmatprep.subr.bf16.mxu0 %v3313_v3 }
 0x6d8   : > { %2989 = vmatmul.mubr.msk.f32.vlgmr.msra.gmra.mrb[12].mxu0 %vm443_vm1, %v3471_v27 }
 0x6d9   : > { %3026 = vmatprep.mubr.msk.f32.mxu0 %vm3314_vm0, %v3315_v11  ;;  %3224 = vmatpush3.bf16.msra.mxu0 %v3223_v55 }
 0x6da   : > { %3225 = vmatprep.subr.bf16.mxu0 %v3313_v3 }
 0x6dd   : > { %3227 = vmatpush3.bf16.msra.mxu0 %v3226_v57 }
 0x6de   : > { %3228 = vmatprep.subr.bf16.mxu0 %v3313_v3 }
 0x79b   : > { %v1357_v44 = vpop.f32.mrb[10].mxu0 }
 0x79c   : > { %v3745_v45 = vadd.f32 %v3658_v58, %v1357_v44  ;;  %v2964_v46 = vpop.f32.mrb[11].mxu0  ;;  %v2629_v58 = vld [vmem:[%s3953_s6 + $0xa0] sm:$0xff]  ;;  %v3244_v44 = vpack.c.bf16 %v2648_v43, %v2647_v42 }
 0x79d   : > { %v3229_v60 = vpack.c.bf16 %v2630_v59, %v2629_v58  ;;  %v2649_v46 = vld [vmem:[%s3949_s2 + $0xf0] sm:$0xff] }
 0x79f   : > { %3230 = vmatpush3.bf16.msra.mxu0 %v3229_v60 }
 0x7a0   : > { %3231 = vmatprep.subr.bf16.mxu0 %v3313_v3 }
 0x7a3   : > { %3233 = vmatpush3.bf16.msra.mxu0 %v3232_v63 }
 0x7a4   : > { %3249 = vmatprep.subr.bf16.mxu0 %v3313_v3 }
 0x7a6   : > { %3027 = vmatmul.mubr.msk.f32.vlgmr.msra.gmra.mrb[14].mxu0 %vm443_vm1, %v3469_v26 }
 0x7a7   : > { %3081 = vmatprep.mubr.msk.f32.mxu0 %vm3314_vm0, %v3315_v11  ;;  %3251 = vmatpush3.bf16.msra.mxu0 %v3250_v16 }
 0x7a8   : > { %3252 = vmatprep.subr.bf16.mxu0 %v3313_v3 }
 0x7ab   : > { %v1517_v48 = vpop.f32.mrb[12].mxu0  ;;  %3254 = vmatpush3.bf16.msra.mxu0 %v3253_v25 }
 0x7ac   : > { %v1518_v49 = vadd.f32 %v2612_v47, %v1517_v48  ;;  %v2990_v50 = vpop.f32.mrb[13].mxu0  ;;  %3255 = vmatprep.subr.bf16.mxu0 %v3313_v3  ;;  %v2650_v47 = vld [vmem:[%s3949_s2 + $0xf8] sm:$0xff] }
 0x7ad   : > { %v3247_v48 = vpack.c.bf16 %v2650_v47, %v2649_v46  ;;  %v2685_v47 = vld [vmem:[%s3958_s11] ss:$0 sm:$0xff] }
 0x7ae   : > { %v1521_v51 = vmul.f32 0.25, %v1518_v49  ;;  %v2663_v49 = vld [vmem:[%s3952_s5 + $0x3] ss:$0 sm:$0xff] }
 0x7af   : > { %3257 = vmatpush3.bf16.msra.mxu0 %v3256_v30 }
 0x7b0   : > { %3032 = vmatmul.mubr.msk.f32.vlgmr.msra.gmra.mrb[14].mxu1 %vm691_vm2, %v1521_v51  ;;  %3258 = vmatprep.subr.bf16.mxu0 %v3313_v3 }
 0x7b1   : > { %3036 = vmatprep.mubr.msk.f32.mxu1 %vm3314_vm0, %v3315_v11 }
 0x7b3   : > { %3260 = vmatpush3.bf16.msra.mxu0 %v3259_v33 }
 0x7b4   : > { %3103 = vmatprep.subr.mxu0 %v3315_v11 }
 0x7b6   : > { %3082 = vmatmul.mubr.msk.f32.vlgmr.msra.gmra.mrb[16].mxu0 %vm443_vm1, %v3469_v26 }
 0x7b7   : > { %3105 = vmatprep.mubr.msk.f32.mxu0 %vm3314_vm0, %v3315_v11 }
 0x879   : > { %v1692_v9 = vpop.f32.mrb[14].mxu0 }
 0x87a   : > { %v3028_v12 = vpop.f32.mrb[15].mxu0  ;;  %v1693_v13 = vadd.f32 %v2634_v10, %v1692_v9 }
 0x87c   : > { %3035 = vmatpush3.msk.msra.mxu1 %vm784_vm4, %v1693_v13 }
 0x87d   : > { %3234 = vmatprep.subr.bf16.mxu1 %v3313_v3 }
 0x883   : > { %v1768_v0 = vpop.f32.mrb[14].mxu1 }
 0x884   : > { %v3033_v1 = vpop.f32.mrb[15].mxu1  ;;  %v1772_v2 = vsel %vm768_vm3, %v1768_v0, -inf }
 0x885   : > { %1773 = vmax.xlane.f32.xlu0 %v1772_v2  ;;  %v2669_v2 = vld [vmem:[%s3953_s6 + $0xe0] sm:$0xff] }
 0x889   : > { %v2107_v50 = vpop.f32.mrb[16].mxu0 }
 0x88a   : > { %v2108_v51 = vadd.f32 %v2663_v49, %v2107_v50  ;;  %v3083_v52 = vpop.f32.mrb[17].mxu0 }
 0x88c   : > { %3104 = vmatpush3.xpose.msk.msra.mxu0 %vm691_vm2, %v2108_v51 }
 0x88d   : > { %3108 = vmatprep.subr.mxu0 %v3315_v11 }
 0x912   : > { %v1774_v4 = vpop.xlane.xlu0 %1773 }
 0x913   : > { %v1775_v5 = vsub.f32 %v1768_v0, %v1774_v4  ;;  %v2668_v0 = vld [vmem:[%s3953_s6 + $0xd8] sm:$0xff]  ;;  %v2670_v4 = vld [vmem:[%s3953_s6 + $0xe8] sm:$0xff] }
 0x914   : > { %v3265_v1 = vpack.c.bf16 %v2668_v0, %v2667_v62 }
 0x915   : > { %v1776_v6 = vmul.f32 1.442695, %v1775_v5  ;;  %v3268_v5 = vpack.c.bf16 %v2670_v4, %v2669_v2 }
 0x917   : > { %3295 = vpow2.f32 %v1776_v6  ;;  %v2671_v6 = vld [vmem:[%s3953_s6 + $0xf0] sm:$0xff] }
 0x921   : > { %v3296_v7 = vpop.eup %3295 }
 0x922   : > { %v1778_v8 = vsel %vm768_vm3, %v3296_v7, 0.0 }
 0x923   : > { %1779 = vadd.xlane.f32.xlu1 %v1778_v8 }
 0x9b0   : > { %v1780_v17 = vpop.xlane.xlu1 %1779 }
 0x9b1   : > { %3297 = vrcp.f32 %v1780_v17 }
 0x9bb   : > { %v3298_v20 = vpop.eup %3297 }
 0x9bc   : > { %v1782_v22 = vmul.f32 %v3298_v20, %v3296_v7  ;;  %v2672_v7 = vld [vmem:[%s3953_s6 + $0xf8] sm:$0xff] }
 0x9bd   : > { %v3271_v8 = vpack.c.bf16 %v2672_v7, %v2671_v6 }
 0x9be   : > { %3037 = vmatmul.mubr.msk.f32.vlgmr.msra.gmra.mrb[16].mxu1 %vm780_vm5, %v1782_v22  ;;  %v2680_v22 = vld [vmem:[%s3955_s8 + $0x30] sm:$0xff] }
 0x9bf   : > { %3236 = vmatpush3.bf16.msra.mxu1 %v3235_v21  ;;  %3043 = vmatprep.mubr.msk.f32.mxu1 %vm3314_vm0, %v3315_v11  ;;  %v3274_v25 = vpack.c.bf16 %v2681_v23, %v2680_v22 }
 0x9c0   : > { %3237 = vmatprep.subr.bf16.mxu1 %v3313_v3 }
 0xa91   : > { %v1855_v39 = vpop.f32.mrb[16].mxu1 }
 0xa92   : > { %v3038_v40 = vpop.f32.mrb[17].mxu1  ;;  %3044 = vmatmul.mubr.msk.f32.vlgmr.msra.gmra.mrb[18].mxu1 %vm691_vm2, %v1855_v39 }
 0xa93   : > { %3239 = vmatpush3.bf16.msra.mxu1 %v3238_v36  ;;  %3062 = vmatprep.mubr.msk.f32.mxu1 %vm3314_vm0, %v3315_v11 }
 0xa94   : > { %3240 = vmatprep.subr.bf16.mxu1 %v3313_v3 }
 0xa97   : > { %3242 = vmatpush3.bf16.msra.mxu1 %v3241_v41 }
 0xa98   : > { %3243 = vmatprep.subr.bf16.mxu1 %v3313_v3 }
 0xa9b   : > { %3245 = vmatpush3.bf16.msra.mxu1 %v3244_v44 }
 0xa9c   : > { %3246 = vmatprep.subr.bf16.mxu1 %v3313_v3 }
 0xa9f   : > { %3248 = vmatpush3.bf16.msra.mxu1 %v3247_v48 }
 0xaa0   : > { %3261 = vmatprep.subr.bf16.mxu1 %v3313_v3 }
 0xaa2   : > { %3063 = vmatmul.mubr.msk.f32.vlgmr.msra.gmra.mrb[20].mxu1 %vm443_vm1, %v3471_v27 }
 0xaa3   : > { %3100 = vmatprep.mubr.msk.f32.mxu1 %vm3314_vm0, %v3315_v11 }
 0xb65   : > { %v1931_v53 = vpop.f32.mrb[18].mxu1 }
 0xb66   : > { %v1935_v54 = vadd.f32 %v1931_v53, %v3745_v45  ;;  %v3045_v55 = vpop.f32.mrb[19].mxu1  ;;  %v2666_v45 = vld [vmem:[%s3953_s6 + $0xc8] sm:$0xff] }
 0xb67   : > { %v3262_v63 = vpack.c.bf16 %v2666_v45, %v2665_v61 }
 0xb69   : > { %3263 = vmatpush3.bf16.msra.mxu1 %v3262_v63 }
 0xb6a   : > { %3264 = vmatprep.subr.bf16.mxu1 %v3313_v3 }
 0xb6d   : > { %3266 = vmatpush3.bf16.msra.mxu1 %v3265_v1 }
 0xb6e   : > { %3267 = vmatprep.subr.bf16.mxu1 %v3313_v3 }
 0xb71   : > { %3269 = vmatpush3.bf16.msra.mxu1 %v3268_v5 }
 0xb72   : > { %3270 = vmatprep.subr.bf16.mxu1 %v3313_v3 }
 0xb75   : > { %v2019_v57 = vpop.f32.mrb[20].mxu1  ;;  %3272 = vmatpush3.bf16.msra.mxu1 %v3271_v8 }
 0xb76   : > { %v2020_v58 = vadd.f32 %v2652_v56, %v2019_v57  ;;  %v3064_v59 = vpop.f32.mrb[21].mxu1 }
 0xb78   : > { %v2023_v60 = vmul.f32 0.25, %v2020_v58  ;;  %3101 = vmatmul.mubr.msk.f32.vlgmr.msra.gmra.mrb[22].mxu1 %vm443_vm1, %v3469_v26 }
 0xb7a   : > { %3106 = vmatmul.mubr.msk.f32.vlgmr.msra.gmra.mrb[18].mxu0 %vm691_vm2, %v2023_v60 }
 0xb7b   : > { %3110 = vmatprep.mubr.msk.f32.mxu0 %vm3314_vm0, %v3315_v11 }
 0xc4b   : > { %v2194_v18 = vpop.f32.mrb[22].mxu1 }
 0xc4c   : > { %v3102_v20 = vpop.f32.mrb[23].mxu1  ;;  %v2195_v26 = vadd.f32 %v2674_v19, %v2194_v18 }
 0xc4d   : > { %v2270_v9 = vpop.f32.mrb[18].mxu0 }
 0xc4e   : > { %v3107_v10 = vpop.f32.mrb[19].mxu0  ;;  %v2274_v12 = vsel %vm768_vm3, %v2270_v9, -inf  ;;  %3109 = vmatpush3.msk.msra.mxu0 %vm784_vm4, %v2195_v26 }
 0xc4f   : > { %2275 = vmax.xlane.f32.xlu0 %v2274_v12  ;;  %3273 = vmatprep.subr.bf16.mxu0 %v3313_v3 }
 0xcdc   : > { %v2276_v13 = vpop.xlane.xlu0 %2275 }
 0xcdd   : > { %v2277_v14 = vsub.f32 %v2270_v9, %v2276_v13 }
 0xcdf   : > { %v2278_v15 = vmul.f32 1.442695, %v2277_v14 }
 0xce1   : > { %3299 = vpow2.f32 %v2278_v15 }
 0xceb   : > { %v3300_v16 = vpop.eup %3299 }
 0xcec   : > { %v2280_v17 = vsel %vm768_vm3, %v3300_v16, 0.0 }
 0xced   : > { %2281 = vadd.xlane.f32.xlu1 %v2280_v17 }
 0xd7a   : > { %v2282_v21 = vpop.xlane.xlu1 %2281 }
 0xd7b   : > { %3301 = vrcp.f32 %v2282_v21 }
 0xd85   : > { %v3302_v24 = vpop.eup %3301 }
 0xd86   : > { %v2284_v28 = vmul.f32 %v3302_v24, %v3300_v16 }
 0xd88   : > { %3111 = vmatmul.mubr.msk.f32.vlgmr.msra.gmra.mrb[20].mxu0 %vm780_vm5, %v2284_v28 }
 0xd89   : > { %3275 = vmatpush3.bf16.msra.mxu0 %v3274_v25  ;;  %3117 = vmatprep.mubr.msk.f32.mxu0 %vm3314_vm0, %v3315_v11 }
 0xe5b   : > { %v2357_v3 = vpop.f32.mrb[20].mxu0 }
 0xe5c   : > { %v3112_v29 = vpop.f32.mrb[21].mxu0  ;;  %3118 = vmatmul.mubr.msk.f32.vlgmr.msra.gmra.mrb[22].mxu0 %vm691_vm2, %v2357_v3 }
 0xf2f   : > { %v2433_v30 = vpop.f32.mrb[22].mxu0 }
 0xf30   : > { %v2437_v32 = vadd.f32 %v2433_v30, %v1935_v54  ;;  %v3119_v33 = vpop.f32.mrb[23].mxu0 }
 0xf32   : > { %v2445_v34 = vadd.f32 %v2683_v31, %v2437_v32 }
 0xf34   : > { %v2446_v35 = vadd.f32 %v2445_v34, %v3471_v27  ;;  %v2684_v27 = vld [vmem:[%s3957_s10] ss:$0 sm:$0xff] }
 0xf36   : > { %v2450_v36 = vsel %vm2449_vm6, %v2446_v35, 0.0 }
 0xf37   : > { %2451 = vadd.xlane.f32.xlu0 %v2450_v36 }
 0xfc4   : > { %v2452_v11 = vpop.xlane.xlu0 %2451 }
 0xfc5   : > { %v2454_v37 = vmul.f32 0.015625, %v2452_v11 }
 0xfc7   : > { %v2455_v38 = vsub.f32 %v2446_v35, %v2454_v37 }
 0xfc9   : > { %v2456_v39 = vmul.f32 %v2455_v38, %v2455_v38 }
 0xfcb   : > { %v2457_v40 = vsel %vm2449_vm6, %v2456_v39, 0.0 }
 0xfcc   : > { %2458 = vadd.xlane.f32.xlu1 %v2457_v40 }
0x1059   : > { %v2459_v41 = vpop.xlane.xlu1 %2458 }
0x105a   : > { %v2460_v42 = vmul.f32 0.015625, %v2459_v41 }
0x105c   : > { %v2461_v43 = vadd.f32 1e-05, %v2460_v42 }
0x105e   : > { %3303 = vrsqrt.f32 %v2461_v43 }
0x1068   : > { %v3304_v44 = vpop.eup %3303 }
0x1069   : > { %v2463_v46 = vmul.f32 %v3304_v44, %v2455_v38 }
0x106b   : > { %v2470_v48 = vmul.f32 %v2684_v27, %v2463_v46 }
0x106d   : > { %v2477_v49 = vadd.f32 %v2685_v47, %v2470_v48 }
0x106f   : > { %2478 = vst.msk [vmem:[%s425_s22] sm:$0xf] %vm2449_vm6, %v2477_v49 }
0x1070 PF: > { %s22_s21 = sadd.s32 1, %s3311_s21  }
0x1071   : > { %p19_p4 = scmp.ge.s32.totalorder %s22_s21, 4  }
0x1073   :  { %21 = sbr.rel (!%p19_p4) target bundleno = 1 (0x1), region = 122 }

// kernel: forward.18
= control target key start
LH: loop header
LB: loop body
LE: loop exit
PB: predicated region body
PF: predicated region fallthrough
CT: control target
= control target key end

     0   :  { %vm17_vm0 = vcmask 523264   ;;  %s90_s0 = inlined_call_operand.vmem [shape: f32[8,64], index: 0, kind: input, shape index: {}]   ;;  %s91_s1 = inlined_call_operand.vmem [shape: f32[1,64], index: 1, kind: input, shape index: {}]   ;;  %s92_s2 = inlined_call_operand.vmem [shape: f32[1,64], index: 2, kind: input, shape index: {}]   ;;  %s93_s3 = inlined_call_operand.vmem [shape: f32[8,64], index: 3, kind: output, shape index: {}]  }
   0x1   :  { %v14_v0 = vld [vmem:[%s90_s0] sm:$0xff] }
   0x2   :  { %v18_v1 = vsel %vm17_vm0, %v14_v0, 0.0  ;;  %v51_v11 = vld [vmem:[%s91_s1] ss:$0 sm:$0xff] }
   0x3   :  { %19 = vadd.xlane.f32.xlu0 %v18_v1  ;;  %v52_v13 = vld [vmem:[%s92_s2] ss:$0 sm:$0xff] }
  0x90   :  { %v20_v2 = vpop.xlane.xlu0 %19 }
  0x91   :  { %v22_v3 = vmul.f32 0.015625, %v20_v2 }
  0x93   :  { %v23_v4 = vsub.f32 %v14_v0, %v22_v3 }
  0x95   :  { %v24_v5 = vmul.f32 %v23_v4, %v23_v4 }
  0x97   :  { %v25_v6 = vsel %vm17_vm0, %v24_v5, 0.0 }
  0x98   :  { %26 = vadd.xlane.f32.xlu0 %v25_v6 }
 0x125   :  { %v27_v7 = vpop.xlane.xlu0 %26 }
 0x126   :  { %v28_v8 = vmul.f32 0.015625, %v27_v7 }
 0x128   :  { %v29_v9 = vadd.f32 1e-05, %v28_v8 }
 0x12a   :  { %53 = vrsqrt.f32 %v29_v9 }
 0x134   :  { %v54_v10 = vpop.eup %53 }
 0x135   :  { %v31_v12 = vmul.f32 %v54_v10, %v23_v4 }
 0x137   :  { %v38_v14 = vmul.f32 %v51_v11, %v31_v12 }
 0x139   :  { %v45_v15 = vadd.f32 %v52_v13, %v38_v14 }
 0x13b   :  { %46 = vst.msk [vmem:[%s93_s3] sm:$0xff] %vm17_vm0, %v45_v15 }

// kernel: forward.21
= control target key start
LH: loop header
LB: loop body
LE: loop exit
PB: predicated region body
PF: predicated region fallthrough
CT: control target
= control target key end

     0   :  { %vm43_vm0 = vcmask 523264   ;;  %s568_s1 = inlined_call_operand.vmem [shape: f32[64,128], index: 1, kind: input, shape index: {}]   ;;  %s569_s0 = inlined_call_operand.vmem [shape: f32[16,64], index: 0, kind: input, shape index: {}]   ;;  %s570_s3 = inlined_call_operand.vmem [shape: f32[128,64], index: 3, kind: input, shape index: {}]   ;;  %s571_s2 = inlined_call_operand.vmem [shape: f32[1,128], index: 2, kind: input, shape index: {}]   ;;  %s572_s4 = inlined_call_operand.vmem [shape: f32[1,64], index: 4, kind: input, shape index: {}]   ;;  %s573_s5 = inlined_call_operand.vmem [shape: f32[1,64], index: 5, kind: input, shape index: {}]   ;;  %s574_s6 = inlined_call_operand.vmem [shape: f32[1,64], index: 6, kind: input, shape index: {}]   ;;  %s575_s7 = inlined_call_operand.vmem [shape: f32[16,64], index: 7, kind: output, shape index: {}]  }
   0x1   :  { %v28_v0 = vld [vmem:[%s568_s1] sm:$0xff]  ;;  %v29_v1 = vld [vmem:[%s568_s1 + $0x8] sm:$0xff]  ;;  %v30_v2 = vld [vmem:[%s568_s1 + $0x10] sm:$0xff] }
   0x2   :  { %v368_v3 = vpack.c.bf16 %v29_v1, %v28_v0  ;;  %v31_v4 = vld [vmem:[%s568_s1 + $0x18] sm:$0xff]  ;;  %v32_v6 = vld [vmem:[%s568_s1 + $0x20] sm:$0xff]  ;;  %v33_v7 = vld [vmem:[%s568_s1 + $0x28] sm:$0xff] }
   0x3   :  { %v372_v5 = vpack.c.bf16 %v31_v4, %v30_v2  ;;  %v481_v8 = vld [vmem:[%s569_s0] sm:$0xff]  ;;  %v128_v10 = vld [vmem:[%s570_s3 + $0x8] sm:$0xff]  ;;  %v129_v12 = vld [vmem:[%s570_s3 + $0x10] sm:$0xff]  ;;  %v376_v14 = vpack.c.bf16 %v33_v7, %v32_v6 }
   0x4   :  { %369 = vmatprep.subr.bf16.mxu0 %v368_v3  ;;  %330 = vmatprep.mubr.msk.f32.mxu0 %vm43_vm0, %v481_v8  ;;  %v127_v9 = vld [vmem:[%s570_s3] sm:$0xff]  ;;  %v130_v13 = vld [vmem:[%s570_s3 + $0x18] sm:$0xff]  ;;  %v132_v17 = vld [vmem:[%s570_s3 + $0x28] sm:$0xff] }
   0x5   :  { %371 = vmatpush3.bf16.msra.mxu0 %v368_v3  ;;  %v384_v11 = vpack.c.bf16 %v128_v10, %v127_v9  ;;  %v388_v15 = vpack.c.bf16 %v130_v13, %v129_v12  ;;  %v131_v16 = vld [vmem:[%s570_s3 + $0x20] sm:$0xff]  ;;  %v34_v18 = vld [vmem:[%s568_s1 + $0x30] sm:$0xff]  ;;  %v35_v19 = vld [vmem:[%s568_s1 + $0x38] sm:$0xff] }
   0x6   :  { %373 = vmatprep.subr.bf16.mxu0 %v372_v5  ;;  %v392_v20 = vpack.c.bf16 %v132_v17, %v131_v16  ;;  %v380_v21 = vpack.c.bf16 %v35_v19, %v34_v18  ;;  %v133_v22 = vld [vmem:[%s570_s3 + $0x30] sm:$0xff]  ;;  %v134_v23 = vld [vmem:[%s570_s3 + $0x38] sm:$0xff]  ;;  %v135_v25 = vld [vmem:[%s570_s3 + $0x40] sm:$0xff] }
   0x7   :  { %385 = vmatprep.subr.bf16.mxu1 %v384_v11  ;;  %v396_v24 = vpack.c.bf16 %v134_v23, %v133_v22  ;;  %v136_v26 = vld [vmem:[%s570_s3 + $0x48] sm:$0xff]  ;;  %v137_v29 = vld [vmem:[%s570_s3 + $0x50] sm:$0xff]  ;;  %v138_v30 = vld [vmem:[%s570_s3 + $0x58] sm:$0xff] }
   0x8   :  { %387 = vmatpush3.bf16.msra.mxu1 %v384_v11  ;;  %v27_v27 = vld [vmem:[%s569_s0 + $0x8] sm:$0xff]  ;;  %v400_v28 = vpack.c.bf16 %v136_v26, %v135_v25  ;;  %v404_v31 = vpack.c.bf16 %v138_v30, %v137_v29  ;;  %v139_v32 = vld [vmem:[%s570_s3 + $0x60] sm:$0xff]  ;;  %v141_v35 = vld [vmem:[%s570_s3 + $0x70] sm:$0xff] }
   0x9   :  { %375 = vmatpush3.bf16.msra.mxu0 %v372_v5  ;;  %389 = vmatprep.subr.bf16.mxu1 %v388_v15  ;;  %v140_v33 = vld [vmem:[%s570_s3 + $0x68] sm:$0xff]  ;;  %v142_v36 = vld [vmem:[%s570_s3 + $0x78] sm:$0xff]  ;;  %v280_v38 = vld [vmem:[%s571_s2] ss:$0 sm:$0xff] }
   0xa   :  { %377 = vmatprep.subr.bf16.mxu0 %v376_v14  ;;  %v408_v34 = vpack.c.bf16 %v140_v33, %v139_v32  ;;  %v412_v37 = vpack.c.bf16 %v142_v36, %v141_v35  ;;  %v283_v47 = vld [vmem:[%s572_s4] ss:$0 sm:$0xff] }
   0xb   :  { %v284_v7 = vld [vmem:[%s573_s5] ss:$0 sm:$0xff] }
   0xc   :  { %391 = vmatpush3.bf16.msra.mxu1 %v388_v15  ;;  %v285_v9 = vld [vmem:[%s574_s6] ss:$0 sm:$0xff] }
   0xd   :  { %379 = vmatpush3.bf16.msra.mxu0 %v376_v14  ;;  %393 = vmatprep.subr.bf16.mxu1 %v392_v20 }
   0xe   :  { %381 = vmatprep.subr.bf16.mxu0 %v380_v21 }
  0x10   :  { %395 = vmatpush3.bf16.msra.mxu1 %v392_v20 }
  0x11   :  { %383 = vmatpush3.bf16.msra.mxu0 %v380_v21  ;;  %397 = vmatprep.subr.bf16.mxu1 %v396_v24 }
  0x14   :  { %331 = vmatmul.mubr.msk.f32.vlgmr.msra.gmra.mrb[0].mxu0 %vm43_vm0, %v27_v27  ;;  %399 = vmatpush3.bf16.msra.mxu1 %v396_v24 }
  0x15   :  { %401 = vmatprep.subr.bf16.mxu1 %v400_v28 }
  0x18   :  { %403 = vmatpush3.bf16.msra.mxu1 %v400_v28 }
  0x19   :  { %405 = vmatprep.subr.bf16.mxu1 %v404_v31 }
  0x1c   :  { %407 = vmatpush3.bf16.msra.mxu1 %v404_v31 }
  0x1d   :  { %409 = vmatprep.subr.bf16.mxu1 %v408_v34 }
  0x20   :  { %411 = vmatpush3.bf16.msra.mxu1 %v408_v34 }
  0x21   :  { %413 = vmatprep.subr.bf16.mxu1 %v412_v37 }
  0x24   :  { %415 = vmatpush3.bf16.msra.mxu1 %v412_v37 }
  0xe7   :  { %v332_v39 = vpop.f32.mrb[0].mxu0 }
  0xe8   :  { %v122_v40 = vadd.f32 %v332_v39, %v280_v38  ;;  %v116_v41 = vpop.f32.mrb[1].mxu0 }
  0xe9   :  { %v117_v42 = vadd.f32 %v280_v38, %v116_v41 }
  0xea   :  { %v126_v44 = vmax.f32 %v122_v40, 0.0 }
  0xeb   :  { %v125_v43 = vmax.f32 %v117_v42, 0.0 }
  0xed   :  { %365 = vmatprep.mubr.f32.mxu1 %v125_v43 }
  0xee   :  { %366 = vmatmul.mubr.f32.vlgmr.msra.gmra.mrb[0].mxu1 %v126_v44 }
 0x1c1   :  { %v367_v45 = vpop.f32.mrb[0].mxu1 }
 0x1c2   :  { %v209_v46 = vpop.f32.mrb[1].mxu1  ;;  %v219_v48 = vadd.f32 %v367_v45, %v27_v27 }
 0x1c3   :  { %v218_v49 = vadd.f32 %v209_v46, %v481_v8 }
 0x1c4   :  { %v228_v52 = vadd.f32 %v283_v47, %v219_v48 }
 0x1c5   :  { %v227_v50 = vadd.f32 %v283_v47, %v218_v49 }
 0x1c6   :  { %v234_v53 = vsel %vm43_vm0, %v228_v52, 0.0 }
 0x1c7   :  { %v231_v51 = vsel %vm43_vm0, %v227_v50, 0.0 }
 0x1c8   :  { %232 = vadd.xlane.f32.xlu0 %v231_v51 }
 0x1cc   :  { %235 = vadd.xlane.f32.xlu0 %v234_v53 }
 0x255   :  { %v233_v54 = vpop.xlane.xlu0 %232 }
 0x256   :  { %v238_v55 = vmul.f32 0.015625, %v233_v54 }
 0x258   :  { %v240_v56 = vsub.f32 %v227_v50, %v238_v55 }
 0x259   :  { %v236_v57 = vpop.xlane.xlu0 %235 }
 0x25a   :  { %v239_v58 = vmul.f32 0.015625, %v236_v57  ;;  %v242_v59 = vmul.f32 %v240_v56, %v240_v56 }
 0x25c   :  { %v241_v60 = vsub.f32 %v228_v52, %v239_v58  ;;  %v244_v61 = vsel %vm43_vm0, %v242_v59, 0.0 }
 0x25d   :  { %245 = vadd.xlane.f32.xlu1 %v244_v61 }
 0x25e   :  { %v243_v62 = vmul.f32 %v241_v60, %v241_v60 }
 0x260   :  { %v247_v63 = vsel %vm43_vm0, %v243_v62, 0.0 }
 0x261   :  { %248 = vadd.xlane.f32.xlu1 %v247_v63 }
 0x2ea   :  { %v246_v0 = vpop.xlane.xlu1 %245 }
 0x2eb   :  { %v250_v1 = vmul.f32 0.015625, %v246_v0 }
 0x2ed   :  { %v252_v2 = vadd.f32 1e-05, %v250_v1 }
 0x2ee   :  { %v249_v3 = vpop.xlane.xlu1 %248 }
 0x2ef   :  { %416 = vrsqrt.f32 %v252_v2  ;;  %v251_v4 = vmul.f32 0.015625, %v249_v3 }
 0x2f1   :  { %v253_v5 = vadd.f32 1e-05, %v251_v4 }
 0x2f3   :  { %418 = vrsqrt.f32 %v253_v5 }
 0x2f9   :  { %v417_v6 = vpop.eup %416 }
 0x2fa   :  { %v256_v8 = vmul.f32 %v417_v6, %v240_v56 }
 0x2fc   :  { %v264_v10 = vmul.f32 %v284_v7, %v256_v8 }
 0x2fd   :  { %v419_v11 = vpop.eup %418 }
 0x2fe   :  { %v272_v12 = vadd.f32 %v285_v9, %v264_v10  ;;  %v257_v13 = vmul.f32 %v419_v11, %v241_v60 }
 0x300   :  { %274 = vst.msk [vmem:[%s575_s7] sm:$0xff] %vm43_vm0, %v272_v12  ;;  %v265_v14 = vmul.f32 %v284_v7, %v257_v13 }
 0x302   :  { %v273_v15 = vadd.f32 %v285_v9, %v265_v14 }
 0x304   :  { %275 = vst.msk [vmem:[%s575_s7 + $0x8] sm:$0xff] %vm43_vm0, %v273_v15 }

// kernel: forward.20
= control target key start
LH: loop header
LB: loop body
LE: loop exit
PB: predicated region body
PF: predicated region fallthrough
CT: control target
= control target key end

     0   :  { %s3379_s21 = smov 0   ;;  %s3948_s0 = inlined_call_operand.vmem [shape: f32[2,8,64], index: 0, kind: input, shape index: {}]   ;;  %s3949_s1 = inlined_call_operand.vmem [shape: f32[2,4,64], index: 1, kind: input, shape index: {}]   ;;  %s3950_s2 = inlined_call_operand.vmem [shape: f32[4,64,16], index: 2, kind: input, shape index: {}]   ;;  %s3951_s3 = inlined_call_operand.vmem [shape: f32[4,1,16], index: 3, kind: input, shape index: {}]   ;;  %s3952_s4 = inlined_call_operand.vmem [shape: f32[4,64,16], index: 4, kind: input, shape index: {}]   ;;  %s3953_s5 = inlined_call_operand.vmem [shape: f32[4,1,16], index: 5, kind: input, shape index: {}]   ;;  %s3954_s6 = inlined_call_operand.vmem [shape: f32[4,64,16], index: 6, kind: input, shape index: {}]   ;;  %s3955_s7 = inlined_call_operand.vmem [shape: f32[4,1,16], index: 7, kind: input, shape index: {}]   ;;  %s3956_s8 = inlined_call_operand.vmem [shape: f32[4,16,64], index: 8, kind: input, shape index: {}]   ;;  %s3957_s9 = inlined_call_operand.vmem [shape: f32[1,64], index: 9, kind: input, shape index: {}]   ;;  %s3958_s10 = inlined_call_operand.vmem [shape: f32[1,64], index: 10, kind: input, shape index: {}]   ;;  %s3959_s11 = inlined_call_operand.vmem [shape: f32[1,64], index: 11, kind: input, shape index: {}]   ;;  %s3960_s12 = inlined_call_operand.vmem [shape: f32[2,8,64], index: 12, kind: output, shape index: {}]  }
   0x1 LB: > { %s2542_s22 = sadd.s32 4294967295, %s3309_s21   ;;  %p2546_p0 = scmp.ge.s32.totalorder %s3309_s21, 1  ;;  %s3309_s21 = sphi %s3379_s21, %s22_s21  }
   0x2   : > { %p370_p1 = scmp.lt.s32.totalorder %s3309_s21, 3 }
   0x4   : > { %p371_p2 = pnand %p2546_p0, %p370_p1 }
   0x5   : > { %v518_v0 = vld [vmem:[%s3952_s4] sm:$0xff] (!%p371_p2)  ;;  %v519_v1 = vld [vmem:[%s3952_s4 + $0x8] sm:$0xff] (!%p371_p2)  ;;  %v3311_v3 = vmov (!%p371_p2), 0.0|0.0   ;;  %v520_v6 = vld [vmem:[%s3952_s4 + $0x10] sm:$0xff] (!%p371_p2)  ;;  %p3409_p3 = scmp.lt.s32.totalorder (!%p371_p2), %s2542_s22, 1  ;;  %vm3312_vm0 = vmmov (!%p371_p2), 0  }
   0x6   : > { %374 = sbr.rel (%p371_p2) target bundleno = 4208 (0x1070), region = 68  ;;  %v428_v2 = vld [vmem:[%s3950_s2] sm:$0xff] (!%p371_p2)  ;;  %3130 = vmatprep.subr.bf16.mxu1 (!%p371_p2), %v3311_v3  ;;  %3118 = vmatprep.subr.bf16.mxu0 (!%p371_p2), %v3311_v3  ;;  %v3131_v4 = vpack.c.bf16 (!%p371_p2), %v519_v1, %v518_v0  ;;  %v429_v5 = vld [vmem:[%s3950_s2 + $0x8] sm:$0xff] (!%p371_p2)  ;;  %v521_v7 = vld [vmem:[%s3952_s4 + $0x18] sm:$0xff] (!%p371_p2)  ;;  %v3313_v11 = vmov (!%p371_p2), 0.0   ;;  %vm443_vm1 = vcmask (!%p371_p2), 523264  }
   0x7   : > { %v3119_v8 = vpack.c.bf16 (!%p371_p2), %v429_v5, %v428_v2  ;;  %v430_v9 = vld [vmem:[%s3950_s2 + $0x10] sm:$0xff] (!%p371_p2)  ;;  %v431_v10 = vld [vmem:[%s3950_s2 + $0x18] sm:$0xff] (!%p371_p2)  ;;  %2857 = vmatprep.mubr.msk.f32.mxu1 (!%p371_p2), %vm3312_vm0, %v3313_v11  ;;  %2838 = vmatprep.mubr.msk.f32.mxu0 (!%p371_p2), %vm3312_vm0, %v3313_v11  ;;  %v3134_v12 = vpack.c.bf16 (!%p371_p2), %v521_v7, %v520_v6  ;;  %v522_v14 = vld [vmem:[%s3952_s4 + $0x20] sm:$0xff] (!%p371_p2)  ;;  %vm691_vm2 = vcmask (!%p371_p2), 130048   ;;  %vm768_vm3 = vcmask (!%p371_p2), 31744  }
   0x8   : > { %3132 = vmatpush3.bf16.msra.mxu1 (!%p371_p2), %v3131_v4  ;;  %v3122_v13 = vpack.c.bf16 (!%p371_p2), %v431_v10, %v430_v9  ;;  %v523_v15 = vld [vmem:[%s3952_s4 + $0x28] sm:$0xff] (!%p371_p2)  ;;  %v432_v16 = vld [vmem:[%s3950_s2 + $0x20] sm:$0xff] (!%p371_p2)  ;;  %v524_v20 = vld [vmem:[%s3952_s4 + $0x30] sm:$0xff] (!%p371_p2)  ;;  %vm783_vm4 = vcmask (!%p371_p2), 1043456  }
   0x9   : > { %3120 = vmatpush3.bf16.msra.mxu0 (!%p371_p2), %v3119_v8  ;;  %3133 = vmatprep.subr.bf16.mxu1 (!%p371_p2), %v3311_v3  ;;  %v433_v17 = vld [vmem:[%s3950_s2 + $0x28] sm:$0xff] (!%p371_p2)  ;;  %v3137_v18 = vpack.c.bf16 (!%p371_p2), %v523_v15, %v522_v14  ;;  %v525_v21 = vld [vmem:[%s3952_s4 + $0x38] sm:$0xff] (!%p371_p2)  ;;  %v434_v22 = vld [vmem:[%s3950_s2 + $0x30] sm:$0xff] (!%p371_p2) }
   0xa   : > { %3121 = vmatprep.subr.bf16.mxu0 (!%p371_p2), %v3311_v3  ;;  %v3125_v19 = vpack.c.bf16 (!%p371_p2), %v433_v17, %v432_v16  ;;  %v435_v23 = vld [vmem:[%s3950_s2 + $0x38] sm:$0xff] (!%p371_p2)  ;;  %v3140_v24 = vpack.c.bf16 (!%p371_p2), %v525_v21, %v524_v20  ;;  %v2552_v28 = vld [vmem:[%s3953_s5] ss:$0 sm:$0xff] (!%p371_p2)  ;;  %v607_v38 = vld [vmem:[%s3954_s6 + $0x8] sm:$0xff] (!%p371_p2) }
   0xb   : > { %v3128_v25 = vpack.c.bf16 (!%p371_p2), %v435_v23, %v434_v22  ;;  %v2550_v29 = vld [vmem:[%s3951_s3] ss:$0 sm:$0xff] (!%p371_p2)  ;;  %v608_v39 = vld [vmem:[%s3954_s6 + $0x10] sm:$0xff] (!%p371_p2)  ;;  %v609_v41 = vld [vmem:[%s3954_s6 + $0x18] sm:$0xff] (!%p371_p2) }
   0xc   : > { %3135 = vmatpush3.bf16.msra.mxu1 (!%p371_p2), %v3134_v12  ;;  %v606_v37 = vld [vmem:[%s3954_s6] sm:$0xff] (!%p371_p2)  ;;  %v3146_v42 = vpack.c.bf16 (!%p371_p2), %v609_v41, %v608_v39  ;;  %v611_v44 = vld [vmem:[%s3954_s6 + $0x28] sm:$0xff] (!%p371_p2)  ;;  %v612_v46 = vld [vmem:[%s3954_s6 + $0x30] sm:$0xff] (!%p371_p2) }
   0xd   : > { %s3963_s22 = smov (!%p3409_p3, %s2542_s22), 1  ;;  %3123 = vmatpush3.bf16.msra.mxu0 %v3122_v13  ;;  %3136 = vmatprep.subr.bf16.mxu1 %v3311_v3  ;;  %v3143_v40 = vpack.c.bf16 %v607_v38, %v606_v37  ;;  %v610_v43 = vld [vmem:[%s3954_s6 + $0x20] sm:$0xff]  ;;  %v613_v47 = vld [vmem:[%s3954_s6 + $0x38] sm:$0xff]  ;;  %v2572_v61 = vld [vmem:[%s3952_s4 + $0x48] sm:$0xff] }
   0xe   : > { %3124 = vmatprep.subr.bf16.mxu0 %v3311_v3  ;;  %s2548_s24 = sshll.u32 %s3963_s22, 2  ;;  %s2547_s25 = sshll.u32 %s3963_s22, 3  ;;  %v3149_v45 = vpack.c.bf16 %v611_v44, %v610_v43  ;;  %v3152_v48 = vpack.c.bf16 %v613_v47, %v612_v46  ;;  %v2554_v58 = vld [vmem:[%s3955_s7] ss:$0 sm:$0xff]  ;;  %v2573_v0 = vld [vmem:[%s3952_s4 + $0x50] sm:$0xff]  ;;  %v2574_v1 = vld [vmem:[%s3952_s4 + $0x58] sm:$0xff] }
   0xf   : > { %s421_s28 = scalar_lea.vmem %s3949_s1, %s2548_s24  ;;  %s417_s13 = scalar_lea.vmem %s3948_s0, %s2547_s25  ;;  %v2571_v60 = vld [vmem:[%s3952_s4 + $0x40] sm:$0xff]  ;;  %v3170_v2 = vpack.c.bf16 %v2574_v1, %v2573_v0  ;;  %v2576_v5 = vld [vmem:[%s3952_s4 + $0x68] sm:$0xff]  ;;  %v2577_v7 = vld [vmem:[%s3952_s4 + $0x70] sm:$0xff] }
  0x10   : > { %3138 = vmatpush3.bf16.msra.mxu1 %v3137_v18  ;;  %v3469_v26 = vld [vmem:[%s421_s28] sm:$0xf]  ;;  %v3167_v63 = vpack.c.bf16 %v2572_v61, %v2571_v60  ;;  %v2578_v8 = vld [vmem:[%s3952_s4 + $0x78] sm:$0xff]  ;;  %v2561_v13 = vld [vmem:[%s3950_s2 + $0x48] sm:$0xff]  ;;  %s425_s30 = scalar_lea.vmem %s3960_s12, %s2547_s25 }
  0x11   : > { %3126 = vmatpush3.bf16.msra.mxu0 %v3125_v19  ;;  %3139 = vmatprep.subr.bf16.mxu1 %v3311_v3  ;;  %v3471_v27 = vld [vmem:[%s417_s13] sm:$0xff]  ;;  %v3176_v9 = vpack.c.bf16 %v2578_v8, %v2577_v7  ;;  %v2562_v17 = vld [vmem:[%s3950_s2 + $0x50] sm:$0xff]  ;;  %v2563_v18 = vld [vmem:[%s3950_s2 + $0x58] sm:$0xff] }
  0x12   : > { %3127 = vmatprep.subr.bf16.mxu0 %v3311_v3  ;;  %v2575_v4 = vld [vmem:[%s3952_s4 + $0x60] sm:$0xff]  ;;  %v3158_v19 = vpack.c.bf16 %v2563_v18, %v2562_v17  ;;  %v2565_v21 = vld [vmem:[%s3950_s2 + $0x68] sm:$0xff]  ;;  %v2566_v23 = vld [vmem:[%s3950_s2 + $0x70] sm:$0xff] }
  0x13   : > { %v3173_v6 = vpack.c.bf16 %v2576_v5, %v2575_v4  ;;  %v2560_v12 = vld [vmem:[%s3950_s2 + $0x40] sm:$0xff]  ;;  %v2588_v37 = vld [vmem:[%s3954_s6 + $0x70] sm:$0xff]  ;;  %v2589_v38 = vld [vmem:[%s3954_s6 + $0x78] sm:$0xff] }
  0x14   : > { %3141 = vmatpush3.bf16.msra.mxu1 %v3140_v24  ;;  %v3155_v15 = vpack.c.bf16 %v2561_v13, %v2560_v12  ;;  %v2564_v20 = vld [vmem:[%s3950_s2 + $0x60] sm:$0xff]  ;;  %v2567_v24 = vld [vmem:[%s3950_s2 + $0x78] sm:$0xff]  ;;  %v3188_v39 = vpack.c.bf16 %v2589_v38, %v2588_v37  ;;  %v858_v41 = vld [vmem:[%s3956_s8 + $0x8] sm:$0xff] }
  0x15   : > { %3129 = vmatpush3.bf16.msra.mxu0 %v3128_v25  ;;  %2879 = vmatprep.subr.mxu1 %v3313_v11  ;;  %v3161_v22 = vpack.c.bf16 %v2565_v21, %v2564_v20  ;;  %v3164_v25 = vpack.c.bf16 %v2567_v24, %v2566_v23  ;;  %v2580_v43 = vld [vmem:[%s3953_s5 + $0x1] ss:$0 sm:$0xff]  ;;  %v2618_v21 = vld [vmem:[%s3952_s4 + $0xb0] sm:$0xff]  ;;  %v2608_v38 = vld [vmem:[%s3950_s2 + $0xb8] sm:$0xff] }
  0x16   : > { %3142 = vmatprep.subr.bf16.mxu0 %v3311_v3  ;;  %v2612_v5 = vld [vmem:[%s3952_s4 + $0x80] sm:$0xff]  ;;  %v2607_v37 = vld [vmem:[%s3950_s2 + $0xb0] sm:$0xff] }
  0x17   : > { %2858 = vmatmul.mubr.msk.f32.vlgmr.msra.gmra.mrb[0].mxu1 %vm443_vm1, %v3469_v26  ;;  %v2616_v18 = vld [vmem:[%s3952_s4 + $0xa0] sm:$0xff] }
  0x18   : > { %2839 = vmatmul.mubr.msk.f32.vlgmr.msra.gmra.mrb[0].mxu0 %vm443_vm1, %v3471_v27  ;;  %2881 = vmatprep.mubr.msk.f32.mxu1 %vm3312_vm0, %v3313_v11  ;;  %v2601_v24 = vld [vmem:[%s3950_s2 + $0x80] sm:$0xff] }
  0x19   : > { %2876 = vmatprep.mubr.msk.f32.mxu0 %vm3312_vm0, %v3313_v11  ;;  %3144 = vmatpush3.bf16.msra.mxu0 %v3143_v40  ;;  %v857_v40 = vld [vmem:[%s3956_s8] sm:$0xff] }
  0x1a   : > { %3145 = vmatprep.subr.bf16.mxu0 %v3311_v3 }
  0x1d   : > { %3147 = vmatpush3.bf16.msra.mxu0 %v3146_v42  ;;  %v3194_v42 = vpack.c.bf16 %v858_v41, %v857_v40  ;;  %v2621_v40 = vld [vmem:[%s3953_s5 + $0x2] ss:$0 sm:$0xff] }
  0x1e   : > { %3148 = vmatprep.subr.bf16.mxu0 %v3311_v3 }
  0x21   : > { %3150 = vmatpush3.bf16.msra.mxu0 %v3149_v45 }
  0x22   : > { %3151 = vmatprep.subr.bf16.mxu0 %v3311_v3 }
  0x25   : > { %3153 = vmatpush3.bf16.msra.mxu0 %v3152_v48 }
  0x26   : > { %3166 = vmatprep.subr.bf16.mxu0 %v3311_v3 }
  0x28   : > { %2877 = vmatmul.mubr.msk.f32.vlgmr.msra.gmra.mrb[2].mxu0 %vm443_vm1, %v3469_v26 }
  0x29   : > { %2924 = vmatprep.mubr.msk.f32.mxu0 %vm3312_vm0, %v3313_v11  ;;  %3168 = vmatpush3.bf16.msra.mxu0 %v3167_v63 }
  0x2a   : > { %3169 = vmatprep.subr.bf16.mxu0 %v3311_v3 }
  0x2d   : > { %3171 = vmatpush3.bf16.msra.mxu0 %v3170_v2 }
  0x2e   : > { %3172 = vmatprep.subr.bf16.mxu0 %v3311_v3 }
  0x31   : > { %3174 = vmatpush3.bf16.msra.mxu0 %v3173_v6  ;;  %v2613_v6 = vld [vmem:[%s3952_s4 + $0x88] sm:$0xff] }
  0x32   : > { %3175 = vmatprep.subr.bf16.mxu0 %v3311_v3  ;;  %v3209_v7 = vpack.c.bf16 %v2613_v6, %v2612_v5 }
  0x35   : > { %3177 = vmatpush3.bf16.msra.mxu0 %v3176_v9  ;;  %v2597_v9 = vld [vmem:[%s3956_s8 + $0x10] sm:$0xff] }
  0x36   : > { %2946 = vmatprep.subr.mxu0 %v3313_v11 }
  0x38   : > { %2925 = vmatmul.mubr.msk.f32.vlgmr.msra.gmra.mrb[4].mxu0 %vm443_vm1, %v3469_v26 }
  0x39   : > { %2948 = vmatprep.mubr.msk.f32.mxu0 %vm3312_vm0, %v3313_v11 }
  0xea   : > { %v602_v30 = vpop.f32.mrb[0].mxu1 }
  0xeb   : > { %v603_v31 = vadd.f32 %v2552_v28, %v602_v30  ;;  %v513_v32 = vpop.f32.mrb[0].mxu0  ;;  %v2859_v33 = vpop.f32.mrb[1].mxu1  ;;  %v2582_v28 = vld [vmem:[%s3954_s6 + $0x40] sm:$0xff] }
  0xec   : > { %v514_v34 = vadd.f32 %v2550_v29, %v513_v32  ;;  %v2840_v35 = vpop.f32.mrb[1].mxu0  ;;  %v2583_v29 = vld [vmem:[%s3954_s6 + $0x48] sm:$0xff]  ;;  %v2585_v32 = vld [vmem:[%s3954_s6 + $0x58] sm:$0xff] }
  0xed   : > { %2880 = vmatpush3.xpose.msk.msra.mxu1 %vm691_vm2, %v603_v31  ;;  %v3179_v30 = vpack.c.bf16 %v2583_v29, %v2582_v28  ;;  %v2584_v31 = vld [vmem:[%s3954_s6 + $0x50] sm:$0xff]  ;;  %v2587_v35 = vld [vmem:[%s3954_s6 + $0x68] sm:$0xff] }
  0xee   : > { %v517_v36 = vmul.f32 0.25, %v514_v34  ;;  %2884 = vmatprep.subr.mxu1 %v3313_v11  ;;  %v3182_v33 = vpack.c.bf16 %v2585_v32, %v2584_v31  ;;  %v2586_v34 = vld [vmem:[%s3954_s6 + $0x60] sm:$0xff]  ;;  %v2603_v29 = vld [vmem:[%s3950_s2 + $0x90] sm:$0xff] }
  0xf0   : > { %2882 = vmatmul.mubr.msk.f32.vlgmr.msra.gmra.mrb[2].mxu1 %vm691_vm2, %v517_v36  ;;  %v3185_v36 = vpack.c.bf16 %v2587_v35, %v2586_v34  ;;  %v2605_v34 = vld [vmem:[%s3950_s2 + $0xa0] sm:$0xff]  ;;  %v2606_v35 = vld [vmem:[%s3950_s2 + $0xa8] sm:$0xff] }
  0xf1   : > { %2886 = vmatprep.mubr.msk.f32.mxu1 %vm3312_vm0, %v3313_v11 }
  0xfb   : > { %v687_v57 = vpop.f32.mrb[2].mxu0 }
  0xfc   : > { %v2878_v59 = vpop.f32.mrb[3].mxu0  ;;  %v688_v62 = vadd.f32 %v2554_v58, %v687_v57 }
  0xfe   : > { %2885 = vmatpush3.msk.msra.mxu1 %vm783_vm4, %v688_v62 }
  0xff   : > { %3154 = vmatprep.subr.bf16.mxu1 %v3311_v3 }
 0x10b   : > { %v1030_v44 = vpop.f32.mrb[4].mxu0 }
 0x10c   : > { %v1031_v45 = vadd.f32 %v2580_v43, %v1030_v44  ;;  %v2926_v46 = vpop.f32.mrb[5].mxu0 }
 0x10e   : > { %2947 = vmatpush3.xpose.msk.msra.mxu0 %vm691_vm2, %v1031_v45 }
 0x10f   : > { %2951 = vmatprep.subr.mxu0 %v3313_v11 }
 0x1c3   : > { %v764_v49 = vpop.f32.mrb[2].mxu1 }
 0x1c4   : > { %v2883_v50 = vpop.f32.mrb[3].mxu1  ;;  %v769_v51 = vsel %vm768_vm3, %v764_v49, -inf }
 0x1c5   : > { %770 = vmax.xlane.f32.xlu0 %v769_v51 }
 0x252   : > { %v771_v52 = vpop.xlane.xlu0 %770 }
 0x253   : > { %v772_v53 = vsub.f32 %v764_v49, %v771_v52  ;;  %v2569_v49 = vld [vmem:[%s3951_s3 + $0x1] ss:$0 sm:$0xff] }
 0x255   : > { %v773_v54 = vmul.f32 1.442695, %v772_v53 }
 0x257   : > { %3285 = vpow2.f32 %v773_v54  ;;  %v2591_v54 = vld [vmem:[%s3955_s7 + $0x1] ss:$0 sm:$0xff] }
 0x261   : > { %v3286_v55 = vpop.eup %3285 }
 0x262   : > { %v775_v56 = vsel %vm768_vm3, %v3286_v55, 0.0 }
 0x263   : > { %776 = vadd.xlane.f32.xlu0 %v775_v56 }
 0x2f0   : > { %v777_v10 = vpop.xlane.xlu0 %776 }
 0x2f1   : > { %3287 = vrcp.f32 %v777_v10  ;;  %v2598_v10 = vld [vmem:[%s3956_s8 + $0x18] sm:$0xff] }
 0x2f2   : > { %v3191_v13 = vpack.c.bf16 %v2598_v10, %v2597_v9  ;;  %v2632_v10 = vld [vmem:[%s3955_s7 + $0x2] ss:$0 sm:$0xff] }
 0x2fb   : > { %v3288_v14 = vpop.eup %3287 }
 0x2fc   : > { %v779_v16 = vmul.f32 %v3288_v14, %v3286_v55 }
 0x2fe   : > { %2887 = vmatmul.mubr.msk.f32.vlgmr.msra.gmra.mrb[4].mxu1 %vm768_vm3, %v779_v16  ;;  %v2615_v16 = vld [vmem:[%s3952_s4 + $0x98] sm:$0xff] }
 0x2ff   : > { %3156 = vmatpush3.bf16.msra.mxu1 %v3155_v15  ;;  %2905 = vmatprep.mubr.msk.f32.mxu1 %vm3312_vm0, %v3313_v11  ;;  %v2614_v15 = vld [vmem:[%s3952_s4 + $0x90] sm:$0xff] }
 0x300   : > { %3157 = vmatprep.subr.bf16.mxu1 %v3311_v3  ;;  %v3212_v17 = vpack.c.bf16 %v2615_v16, %v2614_v15  ;;  %v2653_v15 = vld [vmem:[%s3952_s4 + $0xc8] sm:$0xff] }
 0x303   : > { %3159 = vmatpush3.bf16.msra.mxu1 %v3158_v19  ;;  %v2617_v19 = vld [vmem:[%s3952_s4 + $0xa8] sm:$0xff] }
 0x304   : > { %3160 = vmatprep.subr.bf16.mxu1 %v3311_v3  ;;  %v3215_v20 = vpack.c.bf16 %v2617_v19, %v2616_v18  ;;  %v2638_v18 = vld [vmem:[%s3956_s8 + $0x20] sm:$0xff]  ;;  %v2639_v19 = vld [vmem:[%s3956_s8 + $0x28] sm:$0xff] }
 0x307   : > { %3162 = vmatpush3.bf16.msra.mxu1 %v3161_v22  ;;  %v2619_v22 = vld [vmem:[%s3952_s4 + $0xb8] sm:$0xff] }
 0x308   : > { %3163 = vmatprep.subr.bf16.mxu1 %v3311_v3  ;;  %v3218_v23 = vpack.c.bf16 %v2619_v22, %v2618_v21  ;;  %v3233_v21 = vpack.c.bf16 %v2639_v19, %v2638_v18  ;;  %v2672_v19 = vld [vmem:[%s3955_s7 + $0x3] ss:$0 sm:$0xff] }
 0x30b   : > { %3165 = vmatpush3.bf16.msra.mxu1 %v3164_v25  ;;  %v2602_v25 = vld [vmem:[%s3950_s2 + $0x88] sm:$0xff] }
 0x30c   : > { %3178 = vmatprep.subr.bf16.mxu1 %v3311_v3  ;;  %v3197_v28 = vpack.c.bf16 %v2602_v25, %v2601_v24  ;;  %v2655_v24 = vld [vmem:[%s3952_s4 + $0xd8] sm:$0xff] }
 0x30e   : > { %2906 = vmatmul.mubr.msk.f32.vlgmr.msra.gmra.mrb[6].mxu1 %vm443_vm1, %v3471_v27 }
 0x30f   : > { %3180 = vmatpush3.bf16.msra.mxu1 %v3179_v30  ;;  %2943 = vmatprep.mubr.msk.f32.mxu1 %vm3312_vm0, %v3313_v11  ;;  %v2604_v30 = vld [vmem:[%s3950_s2 + $0x98] sm:$0xff] }
 0x310   : > { %3181 = vmatprep.subr.bf16.mxu1 %v3311_v3 }
 0x313   : > { %3183 = vmatpush3.bf16.msra.mxu1 %v3182_v33  ;;  %v3200_v33 = vpack.c.bf16 %v2604_v30, %v2603_v29  ;;  %v2657_v29 = vld [vmem:[%s3952_s4 + $0xe8] sm:$0xff] }
 0x314   : > { %3184 = vmatprep.subr.bf16.mxu1 %v3311_v3 }
 0x317   : > { %3186 = vmatpush3.bf16.msra.mxu1 %v3185_v36  ;;  %v3203_v36 = vpack.c.bf16 %v2606_v35, %v2605_v34  ;;  %v2641_v34 = vld [vmem:[%s3950_s2 + $0xc0] sm:$0xff]  ;;  %v2642_v35 = vld [vmem:[%s3950_s2 + $0xc8] sm:$0xff] }
 0x318   : > { %3187 = vmatprep.subr.bf16.mxu1 %v3311_v3 }
 0x31b   : > { %3189 = vmatpush3.bf16.msra.mxu1 %v3188_v39  ;;  %v3206_v39 = vpack.c.bf16 %v2608_v38, %v2607_v37  ;;  %v2643_v37 = vld [vmem:[%s3950_s2 + $0xd0] sm:$0xff]  ;;  %v2644_v38 = vld [vmem:[%s3950_s2 + $0xd8] sm:$0xff] }
 0x31c   : > { %3193 = vmatprep.subr.bf16.mxu1 %v3311_v3 }
 0x31e   : > { %2944 = vmatmul.mubr.msk.f32.vlgmr.msra.gmra.mrb[8].mxu1 %vm443_vm1, %v3469_v26 }
 0x31f   : > { %3195 = vmatpush3.bf16.msra.mxu1 %v3194_v42  ;;  %2967 = vmatprep.mubr.msk.f32.mxu1 %vm3312_vm0, %v3313_v11 }
 0x320   : > { %3208 = vmatprep.subr.bf16.mxu1 %v3311_v3 }
 0x3d1   : > { %v853_v47 = vpop.f32.mrb[4].mxu1 }
 0x3d2   : > { %v2888_v48 = vpop.f32.mrb[5].mxu1  ;;  %2968 = vmatmul.mubr.msk.f32.vlgmr.msra.gmra.mrb[10].mxu1 %vm691_vm2, %v853_v47  ;;  %v2610_v47 = vld [vmem:[%s3951_s3 + $0x2] ss:$0 sm:$0xff] }
 0x3d3   : > { %3005 = vmatprep.mubr.msk.f32.mxu1 %vm3312_vm0, %v3313_v11  ;;  %3210 = vmatpush3.bf16.msra.mxu1 %v3209_v7 }
 0x3d4   : > { %3211 = vmatprep.subr.bf16.mxu1 %v3311_v3 }
 0x3d7   : > { %3213 = vmatpush3.bf16.msra.mxu1 %v3212_v17 }
 0x3d8   : > { %3214 = vmatprep.subr.bf16.mxu1 %v3311_v3 }
 0x3db   : > { %3216 = vmatpush3.bf16.msra.mxu1 %v3215_v20 }
 0x3dc   : > { %3217 = vmatprep.subr.bf16.mxu1 %v3311_v3 }
 0x3df   : > { %3219 = vmatpush3.bf16.msra.mxu1 %v3218_v23  ;;  %v2654_v23 = vld [vmem:[%s3952_s4 + $0xd0] sm:$0xff] }
 0x3e0   : > { %3027 = vmatprep.subr.mxu1 %v3313_v11  ;;  %v3251_v25 = vpack.c.bf16 %v2655_v24, %v2654_v23  ;;  %v2679_v23 = vld [vmem:[%s3956_s8 + $0x38] sm:$0xff] }
 0x3e1   : > { %v942_v50 = vpop.f32.mrb[6].mxu1 }
 0x3e2   : > { %v943_v51 = vadd.f32 %v2569_v49, %v942_v50  ;;  %v2907_v52 = vpop.f32.mrb[7].mxu1  ;;  %3006 = vmatmul.mubr.msk.f32.vlgmr.msra.gmra.mrb[12].mxu1 %vm443_vm1, %v3469_v26 }
 0x3e3   : > { %3029 = vmatprep.mubr.msk.f32.mxu1 %vm3312_vm0, %v3313_v11  ;;  %v2623_v52 = vld [vmem:[%s3954_s6 + $0x80] sm:$0xff] }
 0x3e4   : > { %v946_v53 = vmul.f32 0.25, %v943_v51 }
 0x3e6   : > { %2949 = vmatmul.mubr.msk.f32.vlgmr.msra.gmra.mrb[6].mxu0 %vm691_vm2, %v946_v53  ;;  %v2624_v53 = vld [vmem:[%s3954_s6 + $0x88] sm:$0xff] }
 0x3e7   : > { %2953 = vmatprep.mubr.msk.f32.mxu0 %vm3312_vm0, %v3313_v11 }
 0x3f1   : > { %v1117_v55 = vpop.f32.mrb[8].mxu1 }
 0x3f2   : > { %v1118_v56 = vadd.f32 %v2591_v54, %v1117_v55  ;;  %v2945_v57 = vpop.f32.mrb[9].mxu1  ;;  %v2625_v54 = vld [vmem:[%s3954_s6 + $0x90] sm:$0xff]  ;;  %v3221_v55 = vpack.c.bf16 %v2624_v53, %v2623_v52 }
 0x3f4   : > { %2952 = vmatpush3.msk.msra.mxu0 %vm783_vm4, %v1118_v56  ;;  %v2626_v56 = vld [vmem:[%s3954_s6 + $0x98] sm:$0xff] }
 0x3f5   : > { %3190 = vmatprep.subr.bf16.mxu0 %v3311_v3  ;;  %v3224_v57 = vpack.c.bf16 %v2626_v56, %v2625_v54  ;;  %v2650_v56 = vld [vmem:[%s3951_s3 + $0x3] ss:$0 sm:$0xff] }
 0x4a5   : > { %v3658_v58 = vpop.f32.mrb[10].mxu1 }
 0x4a6   : > { %v2969_v59 = vpop.f32.mrb[11].mxu1 }
 0x4a7   : > { %v2628_v59 = vld [vmem:[%s3954_s6 + $0xa8] sm:$0xff] }
 0x4b5   : > { %v1604_v41 = vpop.f32.mrb[12].mxu1 }
 0x4b6   : > { %v1605_v42 = vadd.f32 %v2621_v40, %v1604_v41  ;;  %v3007_v43 = vpop.f32.mrb[13].mxu1  ;;  %v3239_v41 = vpack.c.bf16 %v2644_v38, %v2643_v37 }
 0x4b7   : > { %v2646_v43 = vld [vmem:[%s3950_s2 + $0xe8] sm:$0xff] }
 0x4b8   : > { %3028 = vmatpush3.xpose.msk.msra.mxu1 %vm691_vm2, %v1605_v42  ;;  %v2645_v42 = vld [vmem:[%s3950_s2 + $0xe0] sm:$0xff] }
 0x4b9   : > { %v1193_v60 = vpop.f32.mrb[6].mxu0  ;;  %3032 = vmatprep.subr.mxu1 %v3313_v11 }
 0x4ba   : > { %v2950_v61 = vpop.f32.mrb[7].mxu0  ;;  %v1197_v62 = vsel %vm768_vm3, %v1193_v60, -inf }
 0x4bb   : > { %1198 = vmax.xlane.f32.xlu1 %v1197_v62  ;;  %v2629_v61 = vld [vmem:[%s3954_s6 + $0xb0] sm:$0xff]  ;;  %v2630_v62 = vld [vmem:[%s3954_s6 + $0xb8] sm:$0xff] }
 0x548   : > { %v1199_v63 = vpop.xlane.xlu1 %1198 }
 0x549   : > { %v1200_v0 = vsub.f32 %v1193_v60, %v1199_v63  ;;  %v3230_v63 = vpack.c.bf16 %v2630_v62, %v2629_v61  ;;  %v2663_v61 = vld [vmem:[%s3954_s6 + $0xc0] sm:$0xff]  ;;  %v2665_v62 = vld [vmem:[%s3954_s6 + $0xd0] sm:$0xff] }
 0x54b   : > { %v1201_v1 = vmul.f32 1.442695, %v1200_v0 }
 0x54d   : > { %3289 = vpow2.f32 %v1201_v1 }
 0x557   : > { %v3290_v2 = vpop.eup %3289 }
 0x558   : > { %v1203_v4 = vsel %vm768_vm3, %v3290_v2, 0.0 }
 0x559   : > { %1204 = vadd.xlane.f32.xlu1 %v1203_v4 }
 0x5e6   : > { %v1205_v8 = vpop.xlane.xlu1 %1204 }
 0x5e7   : > { %3291 = vrcp.f32 %v1205_v8 }
 0x5f1   : > { %v3292_v12 = vpop.eup %3291 }
 0x5f2   : > { %v1207_v14 = vmul.f32 %v3292_v12, %v3290_v2 }
 0x5f4   : > { %2954 = vmatmul.mubr.msk.f32.vlgmr.msra.gmra.mrb[8].mxu0 %vm768_vm3, %v1207_v14  ;;  %v2652_v14 = vld [vmem:[%s3952_s4 + $0xc0] sm:$0xff] }
 0x5f5   : > { %3192 = vmatpush3.bf16.msra.mxu0 %v3191_v13  ;;  %2960 = vmatprep.mubr.msk.f32.mxu0 %vm3312_vm0, %v3313_v11  ;;  %v3248_v16 = vpack.c.bf16 %v2653_v15, %v2652_v14 }
 0x5f6   : > { %3196 = vmatprep.subr.bf16.mxu0 %v3311_v3 }
 0x6c7   : > { %v1280_v31 = vpop.f32.mrb[8].mxu0 }
 0x6c8   : > { %v2955_v32 = vpop.f32.mrb[9].mxu0  ;;  %2961 = vmatmul.mubr.msk.f32.vlgmr.msra.gmra.mrb[10].mxu0 %vm691_vm2, %v1280_v31  ;;  %v2658_v31 = vld [vmem:[%s3952_s4 + $0xf0] sm:$0xff] }
 0x6c9   : > { %3198 = vmatpush3.bf16.msra.mxu0 %v3197_v28  ;;  %2986 = vmatprep.mubr.msk.f32.mxu0 %vm3312_vm0, %v3313_v11  ;;  %v2656_v28 = vld [vmem:[%s3952_s4 + $0xe0] sm:$0xff]  ;;  %v2659_v32 = vld [vmem:[%s3952_s4 + $0xf8] sm:$0xff] }
 0x6ca   : > { %3199 = vmatprep.subr.bf16.mxu0 %v3311_v3  ;;  %v3254_v30 = vpack.c.bf16 %v2657_v29, %v2656_v28 }
 0x6cd   : > { %3201 = vmatpush3.bf16.msra.mxu0 %v3200_v33  ;;  %v3257_v33 = vpack.c.bf16 %v2659_v32, %v2658_v31  ;;  %v2681_v31 = vld [vmem:[%s3957_s9] ss:$0 sm:$0xff] }
 0x6ce   : > { %3202 = vmatprep.subr.bf16.mxu0 %v3311_v3 }
 0x6d1   : > { %3204 = vmatpush3.bf16.msra.mxu0 %v3203_v36  ;;  %v3236_v36 = vpack.c.bf16 %v2642_v35, %v2641_v34 }
 0x6d2   : > { %3205 = vmatprep.subr.bf16.mxu0 %v3311_v3 }
 0x6d5   : > { %3207 = vmatpush3.bf16.msra.mxu0 %v3206_v39 }
 0x6d6   : > { %3220 = vmatprep.subr.bf16.mxu0 %v3311_v3 }
 0x6d8   : > { %2987 = vmatmul.mubr.msk.f32.vlgmr.msra.gmra.mrb[12].mxu0 %vm443_vm1, %v3471_v27 }
 0x6d9   : > { %3024 = vmatprep.mubr.msk.f32.mxu0 %vm3312_vm0, %v3313_v11  ;;  %3222 = vmatpush3.bf16.msra.mxu0 %v3221_v55 }
 0x6da   : > { %3223 = vmatprep.subr.bf16.mxu0 %v3311_v3 }
 0x6dd   : > { %3225 = vmatpush3.bf16.msra.mxu0 %v3224_v57 }
 0x6de   : > { %3226 = vmatprep.subr.bf16.mxu0 %v3311_v3 }
 0x79b   : > { %v1356_v44 = vpop.f32.mrb[10].mxu0 }
 0x79c   : > { %v3745_v45 = vadd.f32 %v3658_v58, %v1356_v44  ;;  %v2962_v46 = vpop.f32.mrb[11].mxu0  ;;  %v2627_v58 = vld [vmem:[%s3954_s6 + $0xa0] sm:$0xff]  ;;  %v3242_v44 = vpack.c.bf16 %v2646_v43, %v2645_v42 }
 0x79d   : > { %v3227_v60 = vpack.c.bf16 %v2628_v59, %v2627_v58  ;;  %v2647_v46 = vld [vmem:[%s3950_s2 + $0xf0] sm:$0xff] }
 0x79f   : > { %3228 = vmatpush3.bf16.msra.mxu0 %v3227_v60 }
 0x7a0   : > { %3229 = vmatprep.subr.bf16.mxu0 %v3311_v3 }
 0x7a3   : > { %3231 = vmatpush3.bf16.msra.mxu0 %v3230_v63 }
 0x7a4   : > { %3247 = vmatprep.subr.bf16.mxu0 %v3311_v3 }
 0x7a6   : > { %3025 = vmatmul.mubr.msk.f32.vlgmr.msra.gmra.mrb[14].mxu0 %vm443_vm1, %v3469_v26 }
 0x7a7   : > { %3079 = vmatprep.mubr.msk.f32.mxu0 %vm3312_vm0, %v3313_v11  ;;  %3249 = vmatpush3.bf16.msra.mxu0 %v3248_v16 }
 0x7a8   : > { %3250 = vmatprep.subr.bf16.mxu0 %v3311_v3 }
 0x7ab   : > { %v1516_v48 = vpop.f32.mrb[12].mxu0  ;;  %3252 = vmatpush3.bf16.msra.mxu0 %v3251_v25 }
 0x7ac   : > { %v1517_v49 = vadd.f32 %v2610_v47, %v1516_v48  ;;  %v2988_v50 = vpop.f32.mrb[13].mxu0  ;;  %3253 = vmatprep.subr.bf16.mxu0 %v3311_v3  ;;  %v2648_v47 = vld [vmem:[%s3950_s2 + $0xf8] sm:$0xff] }
 0x7ad   : > { %v3245_v48 = vpack.c.bf16 %v2648_v47, %v2647_v46  ;;  %v2683_v47 = vld [vmem:[%s3959_s11] ss:$0 sm:$0xff] }
 0x7ae   : > { %v1520_v51 = vmul.f32 0.25, %v1517_v49  ;;  %v2661_v49 = vld [vmem:[%s3953_s5 + $0x3] ss:$0 sm:$0xff] }
 0x7af   : > { %3255 = vmatpush3.bf16.msra.mxu0 %v3254_v30 }
 0x7b0   : > { %3030 = vmatmul.mubr.msk.f32.vlgmr.msra.gmra.mrb[14].mxu1 %vm691_vm2, %v1520_v51  ;;  %3256 = vmatprep.subr.bf16.mxu0 %v3311_v3 }
 0x7b1   : > { %3034 = vmatprep.mubr.msk.f32.mxu1 %vm3312_vm0, %v3313_v11 }
 0x7b3   : > { %3258 = vmatpush3.bf16.msra.mxu0 %v3257_v33 }
 0x7b4   : > { %3101 = vmatprep.subr.mxu0 %v3313_v11 }
 0x7b6   : > { %3080 = vmatmul.mubr.msk.f32.vlgmr.msra.gmra.mrb[16].mxu0 %vm443_vm1, %v3469_v26 }
 0x7b7   : > { %3103 = vmatprep.mubr.msk.f32.mxu0 %vm3312_vm0, %v3313_v11 }
 0x879   : > { %v1691_v9 = vpop.f32.mrb[14].mxu0 }
 0x87a   : > { %v3026_v12 = vpop.f32.mrb[15].mxu0  ;;  %v1692_v13 = vadd.f32 %v2632_v10, %v1691_v9 }
 0x87c   : > { %3033 = vmatpush3.msk.msra.mxu1 %vm783_vm4, %v1692_v13 }
 0x87d   : > { %3232 = vmatprep.subr.bf16.mxu1 %v3311_v3 }
 0x883   : > { %v1767_v0 = vpop.f32.mrb[14].mxu1 }
 0x884   : > { %v3031_v1 = vpop.f32.mrb[15].mxu1  ;;  %v1771_v2 = vsel %vm768_vm3, %v1767_v0, -inf }
 0x885   : > { %1772 = vmax.xlane.f32.xlu0 %v1771_v2  ;;  %v2667_v2 = vld [vmem:[%s3954_s6 + $0xe0] sm:$0xff] }
 0x889   : > { %v2106_v50 = vpop.f32.mrb[16].mxu0 }
 0x88a   : > { %v2107_v51 = vadd.f32 %v2661_v49, %v2106_v50  ;;  %v3081_v52 = vpop.f32.mrb[17].mxu0 }
 0x88c   : > { %3102 = vmatpush3.xpose.msk.msra.mxu0 %vm691_vm2, %v2107_v51 }
 0x88d   : > { %3106 = vmatprep.subr.mxu0 %v3313_v11 }
 0x912   : > { %v1773_v4 = vpop.xlane.xlu0 %1772 }
 0x913   : > { %v1774_v5 = vsub.f32 %v1767_v0, %v1773_v4  ;;  %v2666_v0 = vld [vmem:[%s3954_s6 + $0xd8] sm:$0xff]  ;;  %v2668_v4 = vld [vmem:[%s3954_s6 + $0xe8] sm:$0xff] }
 0x914   : > { %v3263_v1 = vpack.c.bf16 %v2666_v0, %v2665_v62 }
 0x915   : > { %v1775_v6 = vmul.f32 1.442695, %v1774_v5  ;;  %v3266_v5 = vpack.c.bf16 %v2668_v4, %v2667_v2 }
 0x917   : > { %3293 = vpow2.f32 %v1775_v6  ;;  %v2669_v6 = vld [vmem:[%s3954_s6 + $0xf0] sm:$0xff] }
 0x921   : > { %v3294_v7 = vpop.eup %3293 }
 0x922   : > { %v1777_v8 = vsel %vm768_vm3, %v3294_v7, 0.0 }
 0x923   : > { %1778 = vadd.xlane.f32.xlu1 %v1777_v8 }
 0x9b0   : > { %v1779_v17 = vpop.xlane.xlu1 %1778 }
 0x9b1   : > { %3295 = vrcp.f32 %v1779_v17 }
 0x9bb   : > { %v3296_v20 = vpop.eup %3295 }
 0x9bc   : > { %v1781_v22 = vmul.f32 %v3296_v20, %v3294_v7  ;;  %v2670_v7 = vld [vmem:[%s3954_s6 + $0xf8] sm:$0xff] }
 0x9bd   : > { %v3269_v8 = vpack.c.bf16 %v2670_v7, %v2669_v6 }
 0x9be   : > { %3035 = vmatmul.mubr.msk.f32.vlgmr.msra.gmra.mrb[16].mxu1 %vm768_vm3, %v1781_v22  ;;  %v2678_v22 = vld [vmem:[%s3956_s8 + $0x30] sm:$0xff] }
 0x9bf   : > { %3234 = vmatpush3.bf16.msra.mxu1 %v3233_v21  ;;  %3041 = vmatprep.mubr.msk.f32.mxu1 %vm3312_vm0, %v3313_v11  ;;  %v3272_v25 = vpack.c.bf16 %v2679_v23, %v2678_v22 }
 0x9c0   : > { %3235 = vmatprep.subr.bf16.mxu1 %v3311_v3 }
 0xa91   : > { %v1854_v39 = vpop.f32.mrb[16].mxu1 }
 0xa92   : > { %v3036_v40 = vpop.f32.mrb[17].mxu1  ;;  %3042 = vmatmul.mubr.msk.f32.vlgmr.msra.gmra.mrb[18].mxu1 %vm691_vm2, %v1854_v39 }
 0xa93   : > { %3237 = vmatpush3.bf16.msra.mxu1 %v3236_v36  ;;  %3060 = vmatprep.mubr.msk.f32.mxu1 %vm3312_vm0, %v3313_v11 }
 0xa94   : > { %3238 = vmatprep.subr.bf16.mxu1 %v3311_v3 }
 0xa97   : > { %3240 = vmatpush3.bf16.msra.mxu1 %v3239_v41 }
 0xa98   : > { %3241 = vmatprep.subr.bf16.mxu1 %v3311_v3 }
 0xa9b   : > { %3243 = vmatpush3.bf16.msra.mxu1 %v3242_v44 }
 0xa9c   : > { %3244 = vmatprep.subr.bf16.mxu1 %v3311_v3 }
 0xa9f   : > { %3246 = vmatpush3.bf16.msra.mxu1 %v3245_v48 }
 0xaa0   : > { %3259 = vmatprep.subr.bf16.mxu1 %v3311_v3 }
 0xaa2   : > { %3061 = vmatmul.mubr.msk.f32.vlgmr.msra.gmra.mrb[20].mxu1 %vm443_vm1, %v3471_v27 }
 0xaa3   : > { %3098 = vmatprep.mubr.msk.f32.mxu1 %vm3312_vm0, %v3313_v11 }
 0xb65   : > { %v1930_v53 = vpop.f32.mrb[18].mxu1 }
 0xb66   : > { %v1934_v54 = vadd.f32 %v1930_v53, %v3745_v45  ;;  %v3043_v55 = vpop.f32.mrb[19].mxu1  ;;  %v2664_v45 = vld [vmem:[%s3954_s6 + $0xc8] sm:$0xff] }
 0xb67   : > { %v3260_v63 = vpack.c.bf16 %v2664_v45, %v2663_v61 }
 0xb69   : > { %3261 = vmatpush3.bf16.msra.mxu1 %v3260_v63 }
 0xb6a   : > { %3262 = vmatprep.subr.bf16.mxu1 %v3311_v3 }
 0xb6d   : > { %3264 = vmatpush3.bf16.msra.mxu1 %v3263_v1 }
 0xb6e   : > { %3265 = vmatprep.subr.bf16.mxu1 %v3311_v3 }
 0xb71   : > { %3267 = vmatpush3.bf16.msra.mxu1 %v3266_v5 }
 0xb72   : > { %3268 = vmatprep.subr.bf16.mxu1 %v3311_v3 }
 0xb75   : > { %v2018_v57 = vpop.f32.mrb[20].mxu1  ;;  %3270 = vmatpush3.bf16.msra.mxu1 %v3269_v8 }
 0xb76   : > { %v2019_v58 = vadd.f32 %v2650_v56, %v2018_v57  ;;  %v3062_v59 = vpop.f32.mrb[21].mxu1 }
 0xb78   : > { %v2022_v60 = vmul.f32 0.25, %v2019_v58  ;;  %3099 = vmatmul.mubr.msk.f32.vlgmr.msra.gmra.mrb[22].mxu1 %vm443_vm1, %v3469_v26 }
 0xb7a   : > { %3104 = vmatmul.mubr.msk.f32.vlgmr.msra.gmra.mrb[18].mxu0 %vm691_vm2, %v2022_v60 }
 0xb7b   : > { %3108 = vmatprep.mubr.msk.f32.mxu0 %vm3312_vm0, %v3313_v11 }
 0xc4b   : > { %v2193_v18 = vpop.f32.mrb[22].mxu1 }
 0xc4c   : > { %v3100_v20 = vpop.f32.mrb[23].mxu1  ;;  %v2194_v26 = vadd.f32 %v2672_v19, %v2193_v18 }
 0xc4d   : > { %v2269_v9 = vpop.f32.mrb[18].mxu0 }
 0xc4e   : > { %v3105_v10 = vpop.f32.mrb[19].mxu0  ;;  %v2273_v12 = vsel %vm768_vm3, %v2269_v9, -inf  ;;  %3107 = vmatpush3.msk.msra.mxu0 %vm783_vm4, %v2194_v26 }
 0xc4f   : > { %2274 = vmax.xlane.f32.xlu0 %v2273_v12  ;;  %3271 = vmatprep.subr.bf16.mxu0 %v3311_v3 }
 0xcdc   : > { %v2275_v13 = vpop.xlane.xlu0 %2274 }
 0xcdd   : > { %v2276_v14 = vsub.f32 %v2269_v9, %v2275_v13 }
 0xcdf   : > { %v2277_v15 = vmul.f32 1.442695, %v2276_v14 }
 0xce1   : > { %3297 = vpow2.f32 %v2277_v15 }
 0xceb   : > { %v3298_v16 = vpop.eup %3297 }
 0xcec   : > { %v2279_v17 = vsel %vm768_vm3, %v3298_v16, 0.0 }
 0xced   : > { %2280 = vadd.xlane.f32.xlu1 %v2279_v17 }
 0xd7a   : > { %v2281_v21 = vpop.xlane.xlu1 %2280 }
 0xd7b   : > { %3299 = vrcp.f32 %v2281_v21 }
 0xd85   : > { %v3300_v24 = vpop.eup %3299 }
 0xd86   : > { %v2283_v28 = vmul.f32 %v3300_v24, %v3298_v16 }
 0xd88   : > { %3109 = vmatmul.mubr.msk.f32.vlgmr.msra.gmra.mrb[20].mxu0 %vm768_vm3, %v2283_v28 }
 0xd89   : > { %3273 = vmatpush3.bf16.msra.mxu0 %v3272_v25  ;;  %3115 = vmatprep.mubr.msk.f32.mxu0 %vm3312_vm0, %v3313_v11 }
 0xe5b   : > { %v2356_v3 = vpop.f32.mrb[20].mxu0 }
 0xe5c   : > { %v3110_v29 = vpop.f32.mrb[21].mxu0  ;;  %3116 = vmatmul.mubr.msk.f32.vlgmr.msra.gmra.mrb[22].mxu0 %vm691_vm2, %v2356_v3 }
 0xf2f   : > { %v2432_v30 = vpop.f32.mrb[22].mxu0 }
 0xf30   : > { %v2436_v32 = vadd.f32 %v2432_v30, %v1934_v54  ;;  %v3117_v33 = vpop.f32.mrb[23].mxu0 }
 0xf32   : > { %v2444_v34 = vadd.f32 %v2681_v31, %v2436_v32 }
 0xf34   : > { %v2445_v35 = vadd.f32 %v2444_v34, %v3471_v27  ;;  %v2682_v27 = vld [vmem:[%s3958_s10] ss:$0 sm:$0xff] }
 0xf36   : > { %v2448_v36 = vsel %vm443_vm1, %v2445_v35, 0.0 }
 0xf37   : > { %2449 = vadd.xlane.f32.xlu0 %v2448_v36 }
 0xfc4   : > { %v2450_v37 = vpop.xlane.xlu0 %2449 }
 0xfc5   : > { %v2452_v11 = vmul.f32 0.015625, %v2450_v37 }
 0xfc7   : > { %v2453_v38 = vsub.f32 %v2445_v35, %v2452_v11 }
 0xfc9   : > { %v2454_v39 = vmul.f32 %v2453_v38, %v2453_v38 }
 0xfcb   : > { %v2455_v40 = vsel %vm443_vm1, %v2454_v39, 0.0 }
 0xfcc   : > { %2456 = vadd.xlane.f32.xlu1 %v2455_v40 }
0x1059   : > { %v2457_v41 = vpop.xlane.xlu1 %2456 }
0x105a   : > { %v2458_v42 = vmul.f32 0.015625, %v2457_v41 }
0x105c   : > { %v2459_v43 = vadd.f32 1e-05, %v2458_v42 }
0x105e   : > { %3301 = vrsqrt.f32 %v2459_v43 }
0x1068   : > { %v3302_v44 = vpop.eup %3301 }
0x1069   : > { %v2461_v46 = vmul.f32 %v3302_v44, %v2453_v38 }
0x106b   : > { %v2468_v48 = vmul.f32 %v2682_v27, %v2461_v46 }
0x106d   : > { %v2475_v49 = vadd.f32 %v2683_v47, %v2468_v48 }
0x106f   : > { %2476 = vst.msk [vmem:[%s425_s30] sm:$0xff] %vm443_vm1, %v2475_v49 }
0x1070 PF: > { %s22_s21 = sadd.s32 1, %s3309_s21  }
0x1071   : > { %p19_p4 = scmp.ge.s32.totalorder %s22_s21, 4  }
0x1073   :  { %21 = sbr.rel (!%p19_p4) target bundleno = 1 (0x1), region = 122 }

// kernel: forward.25
= control target key start
LH: loop header
LB: loop body
LE: loop exit
PB: predicated region body
PF: predicated region fallthrough
CT: control target
= control target key end

     0   :  { %vm25_vm0 = vcmask 523264   ;;  %s316_s0 = inlined_call_operand.vmem [shape: f32[2,8,64], index: 0, kind: input, shape index: {}]   ;;  %s317_s1 = inlined_call_operand.vmem [shape: f32[1,1,64], index: 1, kind: input, shape index: {}]   ;;  %s318_s2 = inlined_call_operand.vmem [shape: f32[1,1,64], index: 2, kind: input, shape index: {}]   ;;  %s319_s3 = inlined_call_operand.vmem [shape: f32[1,8,64], index: 3, kind: input, shape index: {}]   ;;  %s320_s4 = inlined_call_operand.vmem [shape: f32[1,8], index: 4, kind: input, shape index: {}]   ;;  %s321_s5 = inlined_call_operand.hbm [shape: f32[2,8], index: 5, kind: output, shape index: {}]  }
   0x1   :  { %v21_v0 = vld [vmem:[%s316_s0] sm:$0xff]  ;;  %v22_v1 = vld [vmem:[%s316_s0 + $0x8] sm:$0xff] }
   0x2   :  { %10 = vsyncpa [#allocation3], 0  ;;  %v26_v2 = vsel %vm25_vm0, %v21_v0, 0.0  ;;  %v29_v3 = vsel %vm25_vm0, %v22_v1, 0.0  ;;  %v201_v21 = vld [vmem:[%s317_s1] ss:$0 sm:$0xff]  ;;  %v98_v42 = vlaneseq }
   0x3   :  { %27 = vadd.xlane.f32.xlu0 %v26_v2  ;;  %v202_v23 = vld [vmem:[%s318_s2] ss:$0 sm:$0xff]  ;;  %v242_v36 = vmov 0   ;;  %vm108_vm1 = vcmask 1041409   ;;  %vm111_vm2 = vcmask 58368  }
   0x4   :  { %v69_v26 = vld [vmem:[%s319_s3] sm:$0xff]  ;;  %206 = vset.pattern.permute.xlu1 %v242_v36  ;;  %207 = vset.pattern.permute.xlu0 %v242_v36  ;;  %v99_v43 = vand.u32 127, %v98_v42  ;;  %v101_v44 = vshrl.u32 %v98_v42, 7  ;;  %s243_s3 = smov [#allocation2]  }
   0x5   :  { %v203_v35 = vld [vmem:[%s320_s4] ss:$0 sm:$0xff]  ;;  %s193_s4 = sshll.u32 %s243_s3, 4  ;;  %s194_s4 = int_to_ptr.vmem [resolvable:$true] %s193_s4 }
   0x6   :  { %v102_v46 = vsub.s32 %v99_v43, %v101_v44  ;;  %v118_v52 = vsub.s32 0, %v101_v44  ;;  %v122_v53 = vsub.s32 1, %v101_v44  ;;  %s218_s27 = scalar_lea.vmem %s194_s4, 32  ;;  %p223_p1 = scmp.lt.s32.totalorder %s194_s4, %s194_s4 }
   0x7   :  { %30 = vadd.xlane.f32.xlu0 %v29_v3  ;;  %p219_p0 = scmp.ne.s32.totalorder %s194_s4, %s218_s27  ;;  %p224_p2 = scmp.lt.s32.totalorder %s218_s27, %s218_s27 }
   0x9   :  { %p225_p3 = por %p224_p2, %p223_p1 }
   0xb   :  { %p226_p4 = pnand %p225_p3, %p219_p0 }
  0x90   :  { %v28_v4 = vpop.xlane.xlu0 %27 }
  0x91   :  { %v33_v5 = vmul.f32 0.015625, %v28_v4 }
  0x93   :  { %v35_v6 = vsub.f32 %v21_v0, %v33_v5 }
  0x94   :  { %v31_v7 = vpop.xlane.xlu0 %30 }
  0x95   :  { %v34_v8 = vmul.f32 0.015625, %v31_v7  ;;  %v37_v9 = vmul.f32 %v35_v6, %v35_v6 }
  0x97   :  { %v36_v10 = vsub.f32 %v22_v1, %v34_v8  ;;  %v39_v11 = vsel %vm25_vm0, %v37_v9, 0.0 }
  0x98   :  { %40 = vadd.xlane.f32.xlu1 %v39_v11 }
  0x99   :  { %v38_v12 = vmul.f32 %v36_v10, %v36_v10 }
  0x9b   :  { %v42_v13 = vsel %vm25_vm0, %v38_v12, 0.0 }
  0x9c   :  { %43 = vadd.xlane.f32.xlu1 %v42_v13 }
 0x125   :  { %v41_v14 = vpop.xlane.xlu1 %40 }
 0x126   :  { %v45_v15 = vmul.f32 0.015625, %v41_v14 }
 0x128   :  { %v47_v16 = vadd.f32 1e-05, %v45_v15 }
 0x129   :  { %v44_v17 = vpop.xlane.xlu1 %43 }
 0x12a   :  { %208 = vrsqrt.f32 %v47_v16  ;;  %v46_v18 = vmul.f32 0.015625, %v44_v17 }
 0x12c   :  { %v48_v19 = vadd.f32 1e-05, %v46_v18 }
 0x12e   :  { %210 = vrsqrt.f32 %v48_v19 }
 0x134   :  { %v209_v20 = vpop.eup %208 }
 0x135   :  { %v51_v22 = vmul.f32 %v209_v20, %v35_v6 }
 0x137   :  { %v59_v24 = vmul.f32 %v201_v21, %v51_v22 }
 0x138   :  { %v211_v25 = vpop.eup %210 }
 0x139   :  { %v67_v27 = vadd.f32 %v202_v23, %v59_v24  ;;  %v52_v28 = vmul.f32 %v211_v25, %v36_v10 }
 0x13b   :  { %v70_v29 = vmul.f32 %v69_v26, %v67_v27  ;;  %v60_v30 = vmul.f32 %v201_v21, %v52_v28 }
 0x13d   :  { %v72_v31 = vsel %vm25_vm0, %v70_v29, 0.0  ;;  %v68_v32 = vadd.f32 %v202_v23, %v60_v30 }
 0x13e   :  { %73 = vadd.xlane.f32.xlu0 %v72_v31 }
 0x13f   :  { %v71_v33 = vmul.f32 %v69_v26, %v68_v32 }
 0x141   :  { %v75_v34 = vsel %vm25_vm0, %v71_v33, 0.0 }
 0x142   :  { %76 = vadd.xlane.f32.xlu1 %v75_v34 }
 0x154   :  { %85 = vbcast.lane.b32.xlu0 %v203_v35, 256 }
 0x1cb   :  { %v74_v37 = vpop.xlane.xlu0 %73 }
 0x1cf   :  { %v86_v38 = vpop.permute.xlu0 %85  ;;  %v77_v40 = vpop.xlane.xlu1 %76 }
 0x1d0   :  { %v88_v39 = vadd.f32 %v86_v38, %v74_v37  ;;  %v89_v41 = vadd.f32 %v86_v38, %v77_v40 }
 0x1d2   :  { %93 = vperm.xlu1 %206, %v88_v39  }
 0x1d6   :  { %96 = vperm.xlu1 %206, %v89_v41  }
 0x251   :  { %v94_v45 = vpop.permute.xlu1 %93 }
 0x252   :  { %v103_v48 = vrot.slane %v94_v45, %v102_v46 }
 0x255   :  { %v97_v47 = vpop.permute.xlu1 %96 }
 0x256   :  { %v107_v49 = vrot.slane %v97_v47, %v102_v46 }
 0x258   :  { %v109_v50 = vsel %vm108_vm1, %v107_v49, %v103_v48 }
 0x259   :  { %v112_v51 = vsel %vm111_vm2, %v109_v50, -inf }
 0x25a   :  { %113 = vmax.xlane.f32.xlu1 %v112_v51 }
 0x2e7   :  { %v114_v54 = vpop.xlane.xlu1 %113 }
 0x2e8   :  { %v119_v55 = vrot.slane %v114_v54, %v118_v52  ;;  %v123_v56 = vrot.slane %v114_v54, %v122_v53 }
 0x2ea   :  { %v126_v57 = vsub.f32 %v88_v39, %v119_v55  ;;  %v127_v58 = vsub.f32 %v89_v41, %v123_v56 }
 0x2ec   :  { %v128_v59 = vmul.f32 1.442695, %v126_v57  ;;  %v130_v60 = vmul.f32 1.442695, %v127_v58 }
 0x2ee   :  { %212 = vpow2.f32 %v128_v59 }
 0x2ef   :  { %214 = vpow2.f32 %v130_v60 }
 0x2f8   :  { %v213_v61 = vpop.eup %212 }
 0x2f9   :  { %135 = vperm.xlu0 %207, %v213_v61   ;;  %v215_v62 = vpop.eup %214 }
 0x2fd   :  { %138 = vperm.xlu0 %207, %v215_v62  }
 0x378   :  { %v136_v63 = vpop.permute.xlu0 %135 }
 0x379   :  { %v143_v1 = vrot.slane %v136_v63, %v102_v46 }
 0x37c   :  { %v139_v0 = vpop.permute.xlu0 %138 }
 0x37d   :  { %v147_v2 = vrot.slane %v139_v0, %v102_v46 }
 0x37f   :  { %v148_v3 = vsel %vm108_vm1, %v147_v2, %v143_v1 }
 0x380   :  { %v150_v4 = vsel %vm111_vm2, %v148_v3, 0.0 }
 0x381   :  { %151 = vadd.xlane.f32.xlu0 %v150_v4 }
 0x40e   :  { %v152_v5 = vpop.xlane.xlu0 %151 }
 0x40f   :  { %216 = vlog2.f32 %v152_v5 }
 0x419   :  { %v217_v6 = vpop.eup %216 }
 0x41a   :  { %v154_v7 = vmul.f32 0.6931472, %v217_v6 }
 0x41c   :  { %v159_v8 = vrot.slane %v154_v7, %v118_v52  ;;  %v163_v9 = vrot.slane %v154_v7, %v122_v53 }
 0x41e   :  { %v167_v10 = vsub.f32 %v127_v58, %v163_v9  ;;  %v166_v11 = vsub.f32 %v126_v57, %v159_v8 }
 0x420   :  { %174 = vperm.xlu0 %207, %v167_v10   ;;  %171 = vperm.xlu1 %206, %v166_v11  }
 0x49f   :  { %v175_v12 = vpop.permute.xlu0 %174  ;;  %v172_v13 = vpop.permute.xlu1 %171 }
 0x4a0   :  { %v183_v14 = vrot.slane %v175_v12, %v102_v46  ;;  %v179_v15 = vrot.slane %v172_v13, %v102_v46 }
 0x4a2   :  { %v184_v16 = vsel %vm108_vm1, %v183_v14, %v179_v15 }
 0x4a3   :  { %186 = vst.msk [vmem:[#allocation2] sm:$0x3] %vm111_vm2, %v184_v16 }
 0x4a4   :  { %229 = shalt.err (!%p226_p4)
}
 0x4a5   :  { %s230_s30 = scalar_lea.hbm %s321_s5, 32 }
 0x4a6   :  { %p231_p5 = scmp.ne.s32.totalorder %s321_s5, %s230_s30  ;;  %p234_p6 = scmp.lt.u32.totalorder %s230_s30, %s321_s5 }
 0x4a8   :  { %p236_p7 = pnand %p234_p6, %p231_p5 }
 0x4aa   :  { %239 = shalt.err (!%p236_p7)
}
 0x4ab   :  { %196 = dma.vmem_to_hbm [thread:$0]  %s194_s4, 32, %s321_s5, [#allocation3]  }
 0x4ac   :  { %240 = dma.done.wait [#allocation3], 32  }
 0x4ad   :  { %241 = vsyncadd [#allocation3], 4294967264 }
 0x4ae   :  { %200 = vsyncpa [#allocation3], 1 }

</bundles_post_ra>
